<compile_context>
chip_gen: v7x
topology: tpu7x:2x2x1
jax: 0.10.0
libtpu: 0.0.40
codegen_flags: <defaults>
</compile_context>

<pallas_src>
import functools

import jax
import jax.numpy as jnp
from jax.experimental import pallas as pl
from jax.experimental.pallas import tpu as pltpu


def bilinear_matrix(n_in, n_out):
    """Interpolation matrix M (n_out, n_in) s.t. y = M @ x reproduces
    torch F.interpolate(..., mode='bilinear', align_corners=True) along one axis."""
    if n_out == 1:
        return jnp.zeros((1, n_in), jnp.float32).at[0, 0].set(1.0)
    src = jnp.arange(n_out, dtype=jnp.float32) * (n_in - 1) / (n_out - 1)
    i0 = jnp.clip(jnp.floor(src), 0, n_in - 1).astype(jnp.int32)
    i1 = jnp.clip(i0 + 1, 0, n_in - 1)
    frac = src - i0.astype(jnp.float32)
    rows = jnp.arange(n_out)
    m = jnp.zeros((n_out, n_in), jnp.float32)
    m = m.at[rows, i0].add(1.0 - frac)
    m = m.at[rows, i1].add(frac)
    return m


def _psp_fused_kernel(wh_ref, wwt_ref, x_ref, w_ref, scale_ref, bias_ref, alpha_ref,
                      o_ref, *, use_im2col, conv_dtype):
    # Block shapes:
    #   wh_ref    : (H2+2, H)        bilinear rows + zero halo rows (conv H-pad)
    #   wwt_ref   : (W, W2+2)        bilinear cols + zero halo cols (conv W-pad)
    #   x_ref     : (1, Cin, H, W)   NCHW input image
    #   w_ref     : (9*Cin, Cout)    conv weight, rows ordered (kh, kw, cin)
    #   scale/bias/alpha : (1, Cout) folded BN scale/bias and PReLU slopes
    #   o_ref     : (1, Cout, S*W2)  lane-dense NCHW output strip (flattened H2*W2)
    Cin, H, W = x_ref.shape[1], x_ref.shape[2], x_ref.shape[3]
    W2p = wwt_ref.shape[1]
    W2 = W2p - 2
    Cout = o_ref.shape[1]
    S = o_ref.shape[2] // W2          # output rows produced by this grid step

    # ---- bilinear 2x upsample (align_corners=True) of the rows this strip needs;
    #      conv zero-padding is baked into the interpolation matrices ----
    x = x_ref[0]                                                      # (Cin, H, W)
    # width interpolation (+ width zero-pad): one 2D matmul, M = Cin*H
    xw = jnp.dot(x.reshape(Cin * H, W), wwt_ref[...],
                 preferred_element_type=jnp.float32)                  # (Cin*H, W2+2)
    t3 = xw.reshape(Cin, H, W2p)                                      # (Cin, H, W2+2)

    # rows of the padded, upsampled image touched by this strip: r0 .. r0+S+1
    r0 = pl.program_id(1) * S
    if S % 8 == 0:
        r0 = pl.multiple_of(r0, 8)
    wh_s = wh_ref[pl.ds(r0, S + 2), :]                                # (S+2, H)

    # height interpolation (+ height zero-pad): per-channel 2D matmuls (no
    # weight broadcasting), assembled channels-last (HWC) for the conv.
    ph = jnp.stack(
        [jnp.dot(wh_s, t3[c], preferred_element_type=jnp.float32) for c in range(Cin)],
        axis=-1)                                                      # (S+2, W2+2, Cin)
    ph = ph.astype(conv_dtype)

    # ---- 3x3 conv (padding already applied) as large 2D matmuls on the MXU ----
    w_mat = w_ref[...].astype(conv_dtype)                             # (9*Cin, Cout)

    def tap(kh, kw):
        # window of the padded strip for one conv tap, rows = output pixels
        return ph[kh:kh + S, kw:kw + W2, :].reshape(S * W2, Cin)

    if use_im2col:
        patches = jnp.concatenate(
            [tap(kh, kw) for kh in range(3) for kw in range(3)], axis=1)   # (S*W2, 9*Cin)
        acc = jnp.dot(patches, w_mat, preferred_element_type=jnp.float32)  # (S*W2, Cout)
    else:
        acc = jnp.zeros((S * W2, Cout), jnp.float32)
        for kh in range(3):
            for kw in range(3):
                i = (kh * 3 + kw) * Cin
                acc = acc + jnp.dot(tap(kh, kw), w_mat[i:i + Cin, :],
                                    preferred_element_type=jnp.float32)

    # ---- fused BatchNorm (inference, folded) + PReLU, f32 on the VPU ----
    y = acc * scale_ref[...] + bias_ref[...]                          # (S*W2, Cout)
    y = jnp.where(y > 0.0, y, alpha_ref[...] * y)

    # lane-dense NCHW store: flattened spatial (S*W2) sits on the lane axis
    o_ref[0] = jnp.transpose(y, (1, 0)).astype(o_ref.dtype)           # (Cout, S*W2)


def _vmem_bytes(S, H, W, H2, W2, Cin, Cout, conv_bytes, use_im2col):
    """Rough per-grid-step VMEM working-set estimate (bytes)."""
    W2p = W2 + 2
    e = 2 * Cin * H * W * 4                                   # x block (double-buffered)
    e += 2 * Cout * S * W2 * 4                                # output block (double-buffered)
    e += (H2 + 2) * H * 4 + W * W2p * 4                       # interp matrices
    e += 9 * Cin * Cout * conv_bytes + 3 * Cout * 4           # conv weight + BN/PReLU params
    e += 2 * Cin * H * W2p * 4                                # width-interp intermediate
    e += (S + 2) * W2p * Cin * (4 + conv_bytes)               # upsampled strip (f32 + cast)
    e += (S * W2 * 9 * Cin * conv_bytes) if use_im2col else (S * W2 * Cin * conv_bytes)
    e += 3 * S * W2 * Cout * 4                                # acc / epilogue / transposed copy
    return e


def _choose_strip(H, W, H2, W2, Cin, Cout, conv_bytes, use_im2col,
                  max_rows_per_strip=None, budget=20 << 20):
    """Pick the output-strip height S (divides H2, BlockSpec-legal, fits VMEM budget)."""
    cands = [d for d in range(8, H2, 8) if H2 % d == 0 and (d * W2) % 128 == 0]
    cands.append(H2)                                           # whole image always legal
    cands = sorted(set(cands))
    if max_rows_per_strip is not None:
        ok = [d for d in cands if d <= max_rows_per_strip]
        cands = ok if ok else cands[:1]
    fitting = [d for d in cands
               if _vmem_bytes(d, H, W, H2, W2, Cin, Cout, conv_bytes, use_im2col) <= budget]
    S = max(fitting) if fitting else min(cands)
    return S, _vmem_bytes(S, H, W, H2, W2, Cin, Cout, conv_bytes, use_im2col)


def psp_upsample_forward(x, conv_w, gamma, beta, run_mean, run_var, alpha,
                         eps=1e-5, conv_dtype=jnp.bfloat16, use_im2col=None,
                         max_rows_per_strip=None):
    N, Cin, H, W = x.shape
    Cout = conv_w.shape[0]
    H2, W2 = 2 * H, 2 * W

    if use_im2col is None:
        # im2col pays off while K = Cin underfills the MXU contraction depth
        use_im2col = Cin <= 128

    # interpolation matrices with the conv's zero padding baked in
    wh_halo = jnp.pad(bilinear_matrix(H, H2), ((1, 1), (0, 0)))       # (H2+2, H)
    wwt_pad = jnp.pad(bilinear_matrix(W, W2).T, ((0, 0), (1, 1)))     # (W, W2+2)

    # conv weight -> (9*Cin, Cout), rows ordered (kh, kw, cin); MXU operand dtype
    w_mat = jnp.transpose(conv_w, (2, 3, 1, 0)).reshape(9 * Cin, Cout).astype(conv_dtype)

    # fold BatchNorm (inference: running stats) into per-channel scale/bias (kept f32)
    bn_scale = gamma * jax.lax.rsqrt(run_var + eps)
    bn_bias = beta - run_mean * bn_scale
    scale2 = bn_scale.reshape(1, Cout).astype(jnp.float32)
    bias2 = bn_bias.reshape(1, Cout).astype(jnp.float32)
    alpha2 = alpha.reshape(1, Cout).astype(jnp.float32)

    conv_bytes = jnp.dtype(conv_dtype).itemsize
    S, est = _choose_strip(H, W, H2, W2, Cin, Cout, conv_bytes, use_im2col,
                           max_rows_per_strip=max_rows_per_strip)
    n_strips = H2 // S
    # raise scoped VMEM explicitly, sized from the estimated working set
    vmem_limit = int(max(32 << 20, min(2 * est, 56 << 20)))

    kernel = functools.partial(_psp_fused_kernel,
                               use_im2col=use_im2col, conv_dtype=conv_dtype)

    out_flat = pl.pallas_call(
        kernel,
        out_shape=jax.ShapeDtypeStruct((N, Cout, H2 * W2), jnp.float32),
        grid=(N, n_strips),
        in_specs=[
            pl.BlockSpec((H2 + 2, H), lambda n, s: (0, 0)),            # wh (+ zero halo)
            pl.BlockSpec((W, W2 + 2), lambda n, s: (0, 0)),            # ww^T (+ zero halo)
            pl.BlockSpec((1, Cin, H, W), lambda n, s: (n, 0, 0, 0)),   # x (NCHW image)
            pl.BlockSpec((9 * Cin, Cout), lambda n, s: (0, 0)),        # conv weight
            pl.BlockSpec((1, Cout), lambda n, s: (0, 0)),              # BN scale
            pl.BlockSpec((1, Cout), lambda n, s: (0, 0)),              # BN bias
            pl.BlockSpec((1, Cout), lambda n, s: (0, 0)),              # PReLU slopes
        ],
        out_specs=pl.BlockSpec((1, Cout, S * W2), lambda n, s: (n, 0, s)),
        compiler_params=pltpu.CompilerParams(
            dimension_semantics=("parallel", "parallel"),
            vmem_limit_bytes=vmem_limit),
    )(wh_halo, wwt_pad, x, w_mat, scale2, bias2, alpha2)

    # free (bitcast) reshape of the flattened spatial dim; output stays NCHW
    return out_flat.reshape(N, Cout, H2, W2)


def reference_forward(x, conv_w, gamma, beta, run_mean, run_var, alpha, eps=1e-5):
    """Pure-JAX reference with the exact PSPUpsample forward semantics (eval-mode BN)."""
    N, Cin, H, W = x.shape
    wh = bilinear_matrix(H, 2 * H)
    ww = bilinear_matrix(W, 2 * W)
    p = jnp.einsum('ah,nchw->ncaw', wh, x, precision=jax.lax.Precision.HIGHEST)
    p = jnp.einsum('bw,ncaw->ncab', ww, p, precision=jax.lax.Precision.HIGHEST)
    y = jax.lax.conv_general_dilated(
        p, conv_w, (1, 1), ((1, 1), (1, 1)),
        dimension_numbers=('NCHW', 'OIHW', 'NCHW'),
        precision=jax.lax.Precision.HIGHEST)
    s = gamma * jax.lax.rsqrt(run_var + eps)
    b = beta - run_mean * s
    y = y * s[None, :, None, None] + b[None, :, None, None]
    return jnp.where(y > 0, y, alpha[None, :, None, None] * y)


if __name__ == "__main__":
    key = jax.random.PRNGKey(0)
    kx, kw, kg, kb, km, kv, ka = jax.random.split(key, 7)

    N, Cin, Cout, H, W = 2, 4, 8, 16, 16
    x = jax.random.normal(kx, (N, Cin, H, W), jnp.float32)

    # deterministic synthetic parameters (shapes from PSPUpsample.__init__)
    conv_w = 0.1 * jax.random.normal(kw, (Cout, Cin, 3, 3), jnp.float32)   # Conv2d weight
    gamma = 1.0 + 0.1 * jax.random.normal(kg, (Cout,), jnp.float32)        # BN weight
    beta = 0.1 * jax.random.normal(kb, (Cout,), jnp.float32)               # BN bias
    run_mean = 0.1 * jax.random.normal(km, (Cout,), jnp.float32)           # BN running mean
    run_var = jax.random.uniform(kv, (Cout,), jnp.float32, 0.5, 1.5)       # BN running var
    alpha = jax.random.uniform(ka, (Cout,), jnp.float32, 0.1, 0.4)         # PReLU slopes

    ref = reference_forward(x, conv_w, gamma, beta, run_mean, run_var, alpha)

    # variant 1: f32 MXU operands, per-tap matmuls, 2 row-strips/image (exercises tiling)
    fwd_f32 = jax.jit(functools.partial(psp_upsample_forward,
                                        conv_dtype=jnp.float32,
                                        use_im2col=False,
                                        max_rows_per_strip=16))
    out_f32 = jax.block_until_ready(
        fwd_f32(x, conv_w, gamma, beta, run_mean, run_var, alpha))
    assert out_f32.shape == (N, Cout, 2 * H, 2 * W), out_f32.shape
    assert jnp.allclose(out_f32, ref, atol=1e-2, rtol=1e-2), \
        float(jnp.max(jnp.abs(out_f32 - ref)))

    # variant 2: bf16 MXU operands + im2col single matmul, whole-image strip
    fwd_bf16 = jax.jit(functools.partial(psp_upsample_forward,
                                         conv_dtype=jnp.bfloat16,
                                         use_im2col=True))
    out_bf16 = jax.block_until_ready(
        fwd_bf16(x, conv_w, gamma, beta, run_mean, run_var, alpha))
    assert out_bf16.shape == (N, Cout, 2 * H, 2 * W), out_bf16.shape
    assert jnp.allclose(out_bf16, ref, atol=2e-2, rtol=2e-2), \
        float(jnp.max(jnp.abs(out_bf16 - ref)))

    print("KERNEL_OK")
</pallas_src>

<mosaic_0001>
module attributes {stable_mosaic.version = 11 : i64} {
  func.func private @main(%arg0: i32) attributes {dimension_semantics = [#tpu.dimension_semantics<core_parallel>], iteration_bounds = array<i64: 2>, tpu.core_type = #tpu.core_type<sc_scalar_subcore>, window_params = []} {
    return
  }
}

module attributes {stable_mosaic.version = 11 : i64} {
  func.func private @main(%arg0: i32) attributes {dimension_semantics = [#tpu.dimension_semantics<core_parallel>], iteration_bounds = array<i64: 2>, tpu.core_type = #tpu.core_type<sc_scalar_subcore>, window_params = []} {
    return
  }
}

module attributes {stable_mosaic.version = 11 : i64} {
  func.func @_psp_fused_kernel(%arg0: i32, %arg1: i32, %arg2: memref<34x16xf32, #tpu.memory_space<vmem>>, %arg3: memref<16x34xf32, #tpu.memory_space<vmem>>, %arg4: memref<1x4x16x16xf32, #tpu.memory_space<vmem>>, %arg5: memref<36x8xf32, #tpu.memory_space<vmem>>, %arg6: memref<1x8xf32, #tpu.memory_space<vmem>>, %arg7: memref<1x8xf32, #tpu.memory_space<vmem>>, %arg8: memref<1x8xf32, #tpu.memory_space<vmem>>, %arg9: memref<1x8x512xf32, #tpu.memory_space<vmem>>) attributes {dimension_semantics = [#tpu.dimension_semantics<parallel>, #tpu.dimension_semantics<parallel>], iteration_bounds = array<i64: 2, 2>, scalar_prefetch = 0 : i64, scratch_operands = 0 : i64, tpu.core_type = #tpu.core_type<tc>, window_params = [{pipeline_mode = #tpu.pipeline_mode<synchronous>, transform_indices = @transform_0, window_bounds = array<i64: 34, 16>}, {pipeline_mode = #tpu.pipeline_mode<synchronous>, transform_indices = @transform_1, window_bounds = array<i64: 16, 34>}, {transform_indices = @transform_2, window_bounds = array<i64: 1, 4, 16, 16>}, {pipeline_mode = #tpu.pipeline_mode<synchronous>, transform_indices = @transform_3, window_bounds = array<i64: 36, 8>}, {pipeline_mode = #tpu.pipeline_mode<synchronous>, transform_indices = @transform_4, window_bounds = array<i64: 1, 8>}, {pipeline_mode = #tpu.pipeline_mode<synchronous>, transform_indices = @transform_5, window_bounds = array<i64: 1, 8>}, {pipeline_mode = #tpu.pipeline_mode<synchronous>, transform_indices = @transform_6, window_bounds = array<i64: 1, 8>}, {transform_indices = @transform_7, window_bounds = array<i64: 1, 8, 512>}]} {
    %c0 = arith.constant 0 : index
    %c0_0 = arith.constant 0 : index
    %c0_1 = arith.constant 0 : index
    %c0_2 = arith.constant 0 : index
    %0 = vector.load %arg4[%c0, %c0_0, %c0_1, %c0_2] : memref<1x4x16x16xf32, #tpu.memory_space<vmem>>, vector<1x4x16x16xf32>
    %1 = vector.shape_cast %0 : vector<1x4x16x16xf32> to vector<4x16x16xf32>
    %2 = vector.shape_cast %1 : vector<4x16x16xf32> to vector<64x16xf32>
    %c0_3 = arith.constant 0 : index
    %c0_4 = arith.constant 0 : index
    %3 = vector.load %arg3[%c0_3, %c0_4] : memref<16x34xf32, #tpu.memory_space<vmem>>, vector<16x34xf32>
    %cst = arith.constant dense<0.000000e+00> : vector<64x34xf32>
    %4 = tpu.matmul %2, %3, %cst {dimension_numbers = #tpu.dot_dimension_numbers<[1], [0], [0], [1], [0, 0, 1, 1], [], []>} : vector<64x16xf32>, vector<16x34xf32>, vector<64x34xf32> -> vector<64x34xf32>
    %5 = vector.shape_cast %4 : vector<64x34xf32> to vector<4x16x34xf32>
    %c16_i32 = arith.constant 16 : i32
    %6 = arith.muli %arg1, %c16_i32 : i32
    %7 = tpu.assume_multiple %6, 8 : i32
    %8 = arith.index_cast %7 : i32 to index
    %c0_5 = arith.constant 0 : index
    %9 = vector.load %arg2[%8, %c0_5] : memref<34x16xf32, #tpu.memory_space<vmem>>, vector<18x16xf32>
    %10 = vector.extract_strided_slice %5 {offsets = [0, 0, 0], sizes = [1, 16, 34], strides = [1, 1, 1]} : vector<4x16x34xf32> to vector<1x16x34xf32>
    %11 = vector.shape_cast %10 : vector<1x16x34xf32> to vector<16x34xf32>
    %cst_6 = arith.constant dense<0.000000e+00> : vector<18x34xf32>
    %12 = tpu.matmul %9, %11, %cst_6 {dimension_numbers = #tpu.dot_dimension_numbers<[1], [0], [0], [1], [0, 0, 1, 1], [], []>} : vector<18x16xf32>, vector<16x34xf32>, vector<18x34xf32> -> vector<18x34xf32>
    %13 = vector.extract_strided_slice %5 {offsets = [1, 0, 0], sizes = [1, 16, 34], strides = [1, 1, 1]} : vector<4x16x34xf32> to vector<1x16x34xf32>
    %14 = vector.shape_cast %13 : vector<1x16x34xf32> to vector<16x34xf32>
    %cst_7 = arith.constant dense<0.000000e+00> : vector<18x34xf32>
    %15 = tpu.matmul %9, %14, %cst_7 {dimension_numbers = #tpu.dot_dimension_numbers<[1], [0], [0], [1], [0, 0, 1, 1], [], []>} : vector<18x16xf32>, vector<16x34xf32>, vector<18x34xf32> -> vector<18x34xf32>
    %16 = vector.extract_strided_slice %5 {offsets = [2, 0, 0], sizes = [1, 16, 34], strides = [1, 1, 1]} : vector<4x16x34xf32> to vector<1x16x34xf32>
    %17 = vector.shape_cast %16 : vector<1x16x34xf32> to vector<16x34xf32>
    %cst_8 = arith.constant dense<0.000000e+00> : vector<18x34xf32>
    %18 = tpu.matmul %9, %17, %cst_8 {dimension_numbers = #tpu.dot_dimension_numbers<[1], [0], [0], [1], [0, 0, 1, 1], [], []>} : vector<18x16xf32>, vector<16x34xf32>, vector<18x34xf32> -> vector<18x34xf32>
    %19 = vector.extract_strided_slice %5 {offsets = [3, 0, 0], sizes = [1, 16, 34], strides = [1, 1, 1]} : vector<4x16x34xf32> to vector<1x16x34xf32>
    %20 = vector.shape_cast %19 : vector<1x16x34xf32> to vector<16x34xf32>
    %cst_9 = arith.constant dense<0.000000e+00> : vector<18x34xf32>
    %21 = tpu.matmul %9, %20, %cst_9 {dimension_numbers = #tpu.dot_dimension_numbers<[1], [0], [0], [1], [0, 0, 1, 1], [], []>} : vector<18x16xf32>, vector<16x34xf32>, vector<18x34xf32> -> vector<18x34xf32>
    %22 = vector.shape_cast %12 : vector<18x34xf32> to vector<18x34x1xf32>
    %23 = vector.shape_cast %15 : vector<18x34xf32> to vector<18x34x1xf32>
    %24 = vector.shape_cast %18 : vector<18x34xf32> to vector<18x34x1xf32>
    %25 = vector.shape_cast %21 : vector<18x34xf32> to vector<18x34x1xf32>
    %26 = tpu.concatenate %22, %23, %24, %25 in 2 : vector<18x34x1xf32>, vector<18x34x1xf32>, vector<18x34x1xf32>, vector<18x34x1xf32> -> vector<18x34x4xf32>
    %c0_10 = arith.constant 0 : index
    %c0_11 = arith.constant 0 : index
    %27 = vector.load %arg5[%c0_10, %c0_11] : memref<36x8xf32, #tpu.memory_space<vmem>>, vector<36x8xf32>
    %cst_12 = arith.constant 0.000000e+00 : f32
    %28 = vector.broadcast %cst_12 : f32 to vector<512x8xf32>
    %29 = vector.extract_strided_slice %26 {offsets = [0, 0, 0], sizes = [16, 32, 4], strides = [1, 1, 1]} : vector<18x34x4xf32> to vector<16x32x4xf32>
    %30 = vector.shape_cast %29 : vector<16x32x4xf32> to vector<512x4xf32>
    %31 = vector.extract_strided_slice %27 {offsets = [0, 0], sizes = [4, 8], strides = [1, 1]} : vector<36x8xf32> to vector<4x8xf32>
    %cst_13 = arith.constant dense<0.000000e+00> : vector<512x8xf32>
    %32 = tpu.matmul %30, %31, %cst_13 {dimension_numbers = #tpu.dot_dimension_numbers<[1], [0], [0], [1], [0, 0, 1, 1], [], []>} : vector<512x4xf32>, vector<4x8xf32>, vector<512x8xf32> -> vector<512x8xf32>
    %33 = arith.addf %28, %32 : vector<512x8xf32>
    %34 = vector.extract_strided_slice %26 {offsets = [0, 1, 0], sizes = [16, 32, 4], strides = [1, 1, 1]} : vector<18x34x4xf32> to vector<16x32x4xf32>
    %35 = vector.shape_cast %34 : vector<16x32x4xf32> to vector<512x4xf32>
    %36 = vector.extract_strided_slice %27 {offsets = [4, 0], sizes = [4, 8], strides = [1, 1]} : vector<36x8xf32> to vector<4x8xf32>
    %cst_14 = arith.constant dense<0.000000e+00> : vector<512x8xf32>
    %37 = tpu.matmul %35, %36, %cst_14 {dimension_numbers = #tpu.dot_dimension_numbers<[1], [0], [0], [1], [0, 0, 1, 1], [], []>} : vector<512x4xf32>, vector<4x8xf32>, vector<512x8xf32> -> vector<512x8xf32>
    %38 = arith.addf %33, %37 : vector<512x8xf32>
    %39 = vector.extract_strided_slice %26 {offsets = [0, 2, 0], sizes = [16, 32, 4], strides = [1, 1, 1]} : vector<18x34x4xf32> to vector<16x32x4xf32>
    %40 = vector.shape_cast %39 : vector<16x32x4xf32> to vector<512x4xf32>
    %41 = vector.extract_strided_slice %27 {offsets = [8, 0], sizes = [4, 8], strides = [1, 1]} : vector<36x8xf32> to vector<4x8xf32>
    %cst_15 = arith.constant dense<0.000000e+00> : vector<512x8xf32>
    %42 = tpu.matmul %40, %41, %cst_15 {dimension_numbers = #tpu.dot_dimension_numbers<[1], [0], [0], [1], [0, 0, 1, 1], [], []>} : vector<512x4xf32>, vector<4x8xf32>, vector<512x8xf32> -> vector<512x8xf32>
    %43 = arith.addf %38, %42 : vector<512x8xf32>
    %44 = vector.extract_strided_slice %26 {offsets = [1, 0, 0], sizes = [16, 32, 4], strides = [1, 1, 1]} : vector<18x34x4xf32> to vector<16x32x4xf32>
    %45 = vector.shape_cast %44 : vector<16x32x4xf32> to vector<512x4xf32>
    %46 = vector.extract_strided_slice %27 {offsets = [12, 0], sizes = [4, 8], strides = [1, 1]} : vector<36x8xf32> to vector<4x8xf32>
    %cst_16 = arith.constant dense<0.000000e+00> : vector<512x8xf32>
    %47 = tpu.matmul %45, %46, %cst_16 {dimension_numbers = #tpu.dot_dimension_numbers<[1], [0], [0], [1], [0, 0, 1, 1], [], []>} : vector<512x4xf32>, vector<4x8xf32>, vector<512x8xf32> -> vector<512x8xf32>
    %48 = arith.addf %43, %47 : vector<512x8xf32>
    %49 = vector.extract_strided_slice %26 {offsets = [1, 1, 0], sizes = [16, 32, 4], strides = [1, 1, 1]} : vector<18x34x4xf32> to vector<16x32x4xf32>
    %50 = vector.shape_cast %49 : vector<16x32x4xf32> to vector<512x4xf32>
    %51 = vector.extract_strided_slice %27 {offsets = [16, 0], sizes = [4, 8], strides = [1, 1]} : vector<36x8xf32> to vector<4x8xf32>
    %cst_17 = arith.constant dense<0.000000e+00> : vector<512x8xf32>
    %52 = tpu.matmul %50, %51, %cst_17 {dimension_numbers = #tpu.dot_dimension_numbers<[1], [0], [0], [1], [0, 0, 1, 1], [], []>} : vector<512x4xf32>, vector<4x8xf32>, vector<512x8xf32> -> vector<512x8xf32>
    %53 = arith.addf %48, %52 : vector<512x8xf32>
    %54 = vector.extract_strided_slice %26 {offsets = [1, 2, 0], sizes = [16, 32, 4], strides = [1, 1, 1]} : vector<18x34x4xf32> to vector<16x32x4xf32>
    %55 = vector.shape_cast %54 : vector<16x32x4xf32> to vector<512x4xf32>
    %56 = vector.extract_strided_slice %27 {offsets = [20, 0], sizes = [4, 8], strides = [1, 1]} : vector<36x8xf32> to vector<4x8xf32>
    %cst_18 = arith.constant dense<0.000000e+00> : vector<512x8xf32>
    %57 = tpu.matmul %55, %56, %cst_18 {dimension_numbers = #tpu.dot_dimension_numbers<[1], [0], [0], [1], [0, 0, 1, 1], [], []>} : vector<512x4xf32>, vector<4x8xf32>, vector<512x8xf32> -> vector<512x8xf32>
    %58 = arith.addf %53, %57 : vector<512x8xf32>
    %59 = vector.extract_strided_slice %26 {offsets = [2, 0, 0], sizes = [16, 32, 4], strides = [1, 1, 1]} : vector<18x34x4xf32> to vector<16x32x4xf32>
    %60 = vector.shape_cast %59 : vector<16x32x4xf32> to vector<512x4xf32>
    %61 = vector.extract_strided_slice %27 {offsets = [24, 0], sizes = [4, 8], strides = [1, 1]} : vector<36x8xf32> to vector<4x8xf32>
    %cst_19 = arith.constant dense<0.000000e+00> : vector<512x8xf32>
    %62 = tpu.matmul %60, %61, %cst_19 {dimension_numbers = #tpu.dot_dimension_numbers<[1], [0], [0], [1], [0, 0, 1, 1], [], []>} : vector<512x4xf32>, vector<4x8xf32>, vector<512x8xf32> -> vector<512x8xf32>
    %63 = arith.addf %58, %62 : vector<512x8xf32>
    %64 = vector.extract_strided_slice %26 {offsets = [2, 1, 0], sizes = [16, 32, 4], strides = [1, 1, 1]} : vector<18x34x4xf32> to vector<16x32x4xf32>
    %65 = vector.shape_cast %64 : vector<16x32x4xf32> to vector<512x4xf32>
    %66 = vector.extract_strided_slice %27 {offsets = [28, 0], sizes = [4, 8], strides = [1, 1]} : vector<36x8xf32> to vector<4x8xf32>
    %cst_20 = arith.constant dense<0.000000e+00> : vector<512x8xf32>
    %67 = tpu.matmul %65, %66, %cst_20 {dimension_numbers = #tpu.dot_dimension_numbers<[1], [0], [0], [1], [0, 0, 1, 1], [], []>} : vector<512x4xf32>, vector<4x8xf32>, vector<512x8xf32> -> vector<512x8xf32>
    %68 = arith.addf %63, %67 : vector<512x8xf32>
    %69 = vector.extract_strided_slice %26 {offsets = [2, 2, 0], sizes = [16, 32, 4], strides = [1, 1, 1]} : vector<18x34x4xf32> to vector<16x32x4xf32>
    %70 = vector.shape_cast %69 : vector<16x32x4xf32> to vector<512x4xf32>
    %71 = vector.extract_strided_slice %27 {offsets = [32, 0], sizes = [4, 8], strides = [1, 1]} : vector<36x8xf32> to vector<4x8xf32>
    %cst_21 = arith.constant dense<0.000000e+00> : vector<512x8xf32>
    %72 = tpu.matmul %70, %71, %cst_21 {dimension_numbers = #tpu.dot_dimension_numbers<[1], [0], [0], [1], [0, 0, 1, 1], [], []>} : vector<512x4xf32>, vector<4x8xf32>, vector<512x8xf32> -> vector<512x8xf32>
    %73 = arith.addf %68, %72 : vector<512x8xf32>
    %c0_22 = arith.constant 0 : index
    %c0_23 = arith.constant 0 : index
    %74 = vector.load %arg6[%c0_22, %c0_23] : memref<1x8xf32, #tpu.memory_space<vmem>>, vector<1x8xf32>
    %75 = vector.broadcast %74 : vector<1x8xf32> to vector<512x8xf32>
    %76 = arith.mulf %73, %75 : vector<512x8xf32>
    %c0_24 = arith.constant 0 : index
    %c0_25 = arith.constant 0 : index
    %77 = vector.load %arg7[%c0_24, %c0_25] : memref<1x8xf32, #tpu.memory_space<vmem>>, vector<1x8xf32>
    %78 = vector.broadcast %77 : vector<1x8xf32> to vector<512x8xf32>
    %79 = arith.addf %76, %78 : vector<512x8xf32>
    %cst_26 = arith.constant 0.000000e+00 : f32
    %80 = vector.broadcast %cst_26 : f32 to vector<512x8xf32>
    %81 = arith.cmpf ogt, %79, %80 : vector<512x8xf32>
    %c0_27 = arith.constant 0 : index
    %c0_28 = arith.constant 0 : index
    %82 = vector.load %arg8[%c0_27, %c0_28] : memref<1x8xf32, #tpu.memory_space<vmem>>, vector<1x8xf32>
    %83 = vector.broadcast %82 : vector<1x8xf32> to vector<512x8xf32>
    %84 = arith.mulf %83, %79 : vector<512x8xf32>
    %85 = arith.select %81, %79, %84 : vector<512x8xi1>, vector<512x8xf32>
    %86 = tpu.transpose %85, [1, 0] : vector<512x8xf32> -> vector<8x512xf32>
    %c0_29 = arith.constant 0 : index
    %c0_30 = arith.constant 0 : index
    %c0_31 = arith.constant 0 : index
    %87 = vector.load %arg9[%c0_29, %c0_30, %c0_31] : memref<1x8x512xf32, #tpu.memory_space<vmem>>, vector<1x8x512xf32>
    %88 = vector.shape_cast %87 : vector<1x8x512xf32> to vector<8x512xf32>
    %89 = vector.shape_cast %86 : vector<8x512xf32> to vector<1x8x512xf32>
    tpu.vector_store %arg9[%c0_29, %c0_30, %c0_31], %89 {strides = array<i32>} : memref<1x8x512xf32, #tpu.memory_space<vmem>>, vector<1x8x512xf32>,
    return
  }
  func.func @transform_0(%arg0: i32, %arg1: i32) -> (i32, i32) {
    %c0_i32 = arith.constant 0 : i32
    %c0_i32_0 = arith.constant 0 : i32
    %c0_i32_1 = arith.constant 0 : i32
    return %c0_i32, %c0_i32_0 : i32, i32
  }
  func.func @transform_1(%arg0: i32, %arg1: i32) -> (i32, i32) {
    %c0_i32 = arith.constant 0 : i32
    %c0_i32_0 = arith.constant 0 : i32
    %c0_i32_1 = arith.constant 0 : i32
    return %c0_i32, %c0_i32_0 : i32, i32
  }
  func.func @transform_2(%arg0: i32, %arg1: i32) -> (i32, i32, i32, i32) {
    %c0_i32 = arith.constant 0 : i32
    %c0_i32_0 = arith.constant 0 : i32
    %c0_i32_1 = arith.constant 0 : i32
    %c0_i32_2 = arith.constant 0 : i32
    return %arg0, %c0_i32, %c0_i32_0, %c0_i32_1 : i32, i32, i32, i32
  }
  func.func @transform_3(%arg0: i32, %arg1: i32) -> (i32, i32) {
    %c0_i32 = arith.constant 0 : i32
    %c0_i32_0 = arith.constant 0 : i32
    %c0_i32_1 = arith.constant 0 : i32
    return %c0_i32, %c0_i32_0 : i32, i32
  }
  func.func @transform_4(%arg0: i32, %arg1: i32) -> (i32, i32) {
    %c0_i32 = arith.constant 0 : i32
    %c0_i32_0 = arith.constant 0 : i32
    %c0_i32_1 = arith.constant 0 : i32
    return %c0_i32, %c0_i32_0 : i32, i32
  }
  func.func @transform_5(%arg0: i32, %arg1: i32) -> (i32, i32) {
    %c0_i32 = arith.constant 0 : i32
    %c0_i32_0 = arith.constant 0 : i32
    %c0_i32_1 = arith.constant 0 : i32
    return %c0_i32, %c0_i32_0 : i32, i32
  }
  func.func @transform_6(%arg0: i32, %arg1: i32) -> (i32, i32) {
    %c0_i32 = arith.constant 0 : i32
    %c0_i32_0 = arith.constant 0 : i32
    %c0_i32_1 = arith.constant 0 : i32
    return %c0_i32, %c0_i32_0 : i32, i32
  }
  func.func @transform_7(%arg0: i32, %arg1: i32) -> (i32, i32, i32) {
    %c0_i32 = arith.constant 0 : i32
    %c0_i32_0 = arith.constant 0 : i32
    return %arg0, %c0_i32, %arg1 : i32, i32, i32
  }
}

</mosaic_0001>

<bundles_post_ra>
// kernel: psp_upsample_forward.1
= control target key start
LH: loop header
LB: loop body
LE: loop exit
PB: predicated region body
PF: predicated region fallthrough
CT: control target
= control target key end

     0   :  { %s10906_s24 = smov 0   ;;  %s10908_s25 = smov 0   ;;  %s14808_s0 = inlined_call_operand.vmem [shape: f32[34,16], index: 0, kind: input, shape index: {}]   ;;  %s14809_s1 = inlined_call_operand.vmem [shape: f32[16,34], index: 1, kind: input, shape index: {}]   ;;  %s14810_s2 = inlined_call_operand.vmem [shape: f32[2,4,16,16], index: 2, kind: input, shape index: {}]   ;;  %s14811_s3 = inlined_call_operand.vmem [shape: f32[36,8], index: 3, kind: input, shape index: {}]   ;;  %s14812_s4 = inlined_call_operand.vmem [shape: f32[1,8], index: 4, kind: input, shape index: {}]   ;;  %s14813_s5 = inlined_call_operand.vmem [shape: f32[1,8], index: 5, kind: input, shape index: {}]   ;;  %s14814_s6 = inlined_call_operand.vmem [shape: f32[1,8], index: 6, kind: input, shape index: {}]   ;;  %s14815_s7 = inlined_call_operand.vmem [shape: f32[2,8,1024], index: 7, kind: output, shape index: {}]  }
   0x1   :  { %s10910_s26 = smov 0   ;;  %s10912_s27 = smov 0  }
   0x2   :  { %s10914_s28 = smov 0  }
   0x3 LB: > { %s26_s29 = sadd.s32 1, %s10853_s26  ;;  %s29_s30 = sadd.s32 1, %s10857_s27  ;;  %s10861_s28 = sphi %s10914_s28, %s17_s28   ;;  %s10857_s27 = sphi %s10912_s27, %s15871_s27   ;;  %s10853_s26 = sphi %s10910_s26, %s15870_s26   ;;  %s10849_s25 = sphi %s10908_s25, %s15869_s25   ;;  %s10845_s24 = sphi %s10906_s24, %s15868_s24  }
   0x4   : > { %p27_p0 = scmp.ge.s32.totalorder %s26_s29, 2  ;;  %p8063_p1 = scmp.ge.s32.totalorder %s10861_s28, 1 }
   0x5   : > { %p251_p2 = scmp.lt.s32.totalorder %s10861_s28, 5 }
   0x6   : > { %s15873_s29 = smov (%p27_p0, %s26_s29), 0  ;;  %s15875_s30 = smov (!%p27_p0, %s29_s30), %s10857_s27 }
   0x7   : > { %p252_p3 = pnand %p8063_p1, %p251_p2  ;;  %p31_p4 = scmp.ge.s32.totalorder %s15875_s30, 2 }
   0x9   : > { %s15877_s30 = smov (%p31_p4, %s15875_s30), 0  ;;  %255 = sbr.rel (%p252_p3) target bundleno = 1980 (0x7bc), region = 48 }
  0x10   : > { %v310_v0 = vld [vmem:[%s14809_s1] sm:$0xff]  ;;  %v311_v1 = vld [vmem:[%s14809_s1 + $0x8] sm:$0xff]  ;;  %p287_p5 = scmp.lt.s32.totalorder %s10849_s25, 1  ;;  %vm312_vm0 = vcmask 130048   ;;  %v10863_v9 = vmov 0.0|0.0   ;;  %vm10864_vm1 = vmmov 0   ;;  %v776_v28 = vlaneseq }
  0x11   : > { %v10246_v2 = vpack.c.bf16 %v311_v1, %v310_v0  ;;  %10250 = vmatprep.subr.bf16.mxu1 %v10863_v9  ;;  %v10865_v10 = vmov 0.0   ;;  %s8077_s16 = sshll.u32 %s10845_s24, 4  ;;  %vm3066_vm2 = vcmask 1043456   ;;  %vm2432_vm3 = vcmask 7168   ;;  %s8066_s22 = sshll.u32 %s10845_s24, 2 }
  0x12   : > { %s15879_s25 = smov (!%p287_p5, %s10849_s25), 1  ;;  %9316 = vmatprep.mubr.msk.f32.mxu1 %vm10864_vm1, %v10865_v10  ;;  %s443_s19 = scalar_lea.vmem %s14808_s0, %s8077_s16  ;;  %v777_v29 = vshrl.u32 %v776_v28, 7  ;;  %vm2614_vm4 = vcmask 23552   ;;  %vm2523_vm5 = vcmask 15360   ;;  %vm2937_vm6 = vcmask 31744  }
  0x13   : > { %10247 = vmatprep.subr.bf16.mxu0 %v10246_v2  ;;  %s8680_s12 = sshll.u32 %s15879_s25, 6  ;;  %v444_v16 = vld [vmem:[%s443_s19] sm:$0xff]  ;;  %v445_v21 = vld [vmem:[%s443_s19 + $0x8] sm:$0xff]  ;;  %v446_v24 = vld [vmem:[%s443_s19 + $0x10] sm:$0x3]  ;;  %vm2790_vm7 = vcmask 1046528  }
  0x14   : > { %10249 = vmatpush3.bf16.msra.mxu0 %v10246_v2  ;;  %s291_s15 = scalar_lea.vmem %s14810_s2, %s8680_s12  ;;  %v10986_v30 = vsub.s32 1, %v777_v29  ;;  %v10988_v31 = vsub.s32 0, %v777_v29  ;;  %v10992_v36 = vsub.s32 2, %v777_v29  ;;  %v11003_v46 = vsub.s32 3, %v777_v29  ;;  %p14709_p6 = scmp.lt.s32.totalorder %s8066_s22, 7 }
  0x15   : > { %v302_v3 = vld [vmem:[%s291_s15] sm:$0xff]  ;;  %v303_v4 = vld [vmem:[%s291_s15 + $0x8] sm:$0xff]  ;;  %v304_v5 = vld [vmem:[%s291_s15 + $0x10] sm:$0xff]  ;;  %10256 = vmatprep.subr.bf16.mxu0 %v10863_v9  ;;  %v11006_v48 = vsub.s32 4, %v777_v29  ;;  %v11009_v50 = vsub.s32 5, %v777_v29  ;;  %v11012_v52 = vsub.s32 6, %v777_v29 }
  0x16   : > { %9300 = vmatprep.mubr.msk.f32.mxu0 %vm312_vm0, %v302_v3  ;;  %v305_v6 = vld [vmem:[%s291_s15 + $0x18] sm:$0xff]  ;;  %v306_v7 = vld [vmem:[%s291_s15 + $0x20] sm:$0xff]  ;;  %v307_v8 = vld [vmem:[%s291_s15 + $0x28] sm:$0xff]  ;;  %15138 = vst [vmem:[#allocation2_spill] sm:$0xff] %v10986_v30  ;;  %v11015_v54 = vsub.s32 7, %v777_v29  ;;  %vm3969_vm8 = vcmask 1045504  }
  0x17   : > { %9301 = vmatmul.mubr.msk.f32.vlgmr.msra.gmra.mrb[0].mxu0 %vm312_vm0, %v303_v4  ;;  %v308_v11 = vld [vmem:[%s291_s15 + $0x30] sm:$0xff]  ;;  %v309_v12 = vld [vmem:[%s291_s15 + $0x38] sm:$0xff]  ;;  %15139 = vst [vmem:[#allocation3_spill] sm:$0xff] %v10988_v31  ;;  %15141 = vst [vmem:[#allocation5_spill] sm:$0xff] %v11009_v50  ;;  %s15881_s22 = smov (!%p14709_p6, %s8066_s22), 7  ;;  %s8067_s8 = sshll.u32 %s15879_s25, 3 }
  0x18   : > { %9303 = vmatprep.mubr.msk.f32.mxu0 %vm312_vm0, %v304_v5  ;;  %15142 = vst [vmem:[#allocation6_spill] sm:$0xff] %v11012_v52  ;;  %15143 = vst [vmem:[#allocation7_spill] sm:$0xff] %v11015_v54  ;;  %s298_s24 = sadd.s32 %s8067_s8, %s15881_s22 }
  0x19   : > { %s8068_s25 = sshll.u32 %s298_s24, 3 }
  0x1a   : > { %s14761_s11 = scalar_lea.vmem %s14815_s7, %s8068_s25 }
  0x1b   : > { %9304 = vmatmul.mubr.msk.f32.gmra.mrb[2].mxu0 %vm312_vm0, %v305_v6 }
  0x1c   : > { %9306 = vmatprep.mubr.msk.f32.mxu0 %vm312_vm0, %v306_v7 }
  0x1f   : > { %9307 = vmatmul.mubr.msk.f32.gmra.mrb[4].mxu0 %vm312_vm0, %v307_v8 }
  0x20   : > { %9309 = vmatprep.mubr.msk.f32.mxu0 %vm312_vm0, %v308_v11 }
  0x23   : > { %9310 = vmatmul.mubr.msk.f32.gmra.mrb[6].mxu0 %vm312_vm0, %v309_v12 }
  0x24   : > { %9342 = vmatprep.mubr.msk.f32.mxu0 %vm10864_vm1, %v10865_v10 }
  0xea   : > { %v9302_v13 = vpop.f32.mrb[0].mxu0 }
  0xeb   : > { %v403_v14 = vpop.f32.mrb[1].mxu0 }
  0xec   : > { %v10251_v15 = vpack.c.bf16 %v9302_v13, %v403_v14 }
  0xee   : > { %10252 = vmatpush3.bf16.msra.mxu1 %v10251_v15  ;;  %v9305_v17 = vpop.f32.mrb[2].mxu0 }
  0xef   : > { %v413_v18 = vpop.f32.mrb[3].mxu0  ;;  %10253 = vmatprep.subr.bf16.mxu1 %v10863_v9 }
  0xf0   : > { %v10254_v19 = vpack.c.bf16 %v9305_v17, %v413_v18 }
  0xf1   : > { %9317 = vmatmul.mubr.msk.f32.vlgmr.msra.gmra.mrb[0].mxu1 %vm312_vm0, %v444_v16 }
  0xf2   : > { %v9308_v20 = vpop.f32.mrb[4].mxu0  ;;  %10255 = vmatpush3.bf16.msra.mxu1 %v10254_v19  ;;  %9319 = vmatprep.mubr.msk.f32.mxu1 %vm10864_vm1, %v10865_v10 }
  0xf3   : > { %v423_v22 = vpop.f32.mrb[5].mxu0  ;;  %10259 = vmatprep.subr.bf16.mxu1 %v10863_v9 }
  0xf4   : > { %v10257_v23 = vpack.c.bf16 %v9308_v20, %v423_v22 }
  0xf5   : > { %9320 = vmatmul.mubr.msk.f32.gmra.mrb[2].mxu1 %vm312_vm0, %v445_v21 }
  0xf6   : > { %10258 = vmatpush3.bf16.msra.mxu0 %v10257_v23  ;;  %9322 = vmatprep.mubr.msk.f32.mxu1 %vm10864_vm1, %v10865_v10  ;;  %v9311_v25 = vpop.f32.mrb[6].mxu0 }
  0xf7   : > { %v433_v26 = vpop.f32.mrb[7].mxu0 }
  0xf8   : > { %v10260_v27 = vpack.c.bf16 %v9311_v25, %v433_v26 }
  0xf9   : > { %9343 = vmatmul.mubr.msk.f32.vlgmr.msra.gmra.mrb[8].mxu0 %vm312_vm0, %v444_v16  ;;  %9323 = vmatmul.mubr.msk.f32.gmra.mrb[4].mxu1 %vm312_vm0, %v446_v24 }
  0xfa   : > { %9329 = vmatprep.mubr.msk.f32.mxu1 %vm10864_vm1, %v10865_v10  ;;  %9345 = vmatprep.mubr.msk.f32.mxu0 %vm10864_vm1, %v10865_v10 }
  0xfd   : > { %9330 = vmatmul.mubr.msk.f32.vlgmr.msra.gmra.mrb[6].mxu1 %vm312_vm0, %v444_v16  ;;  %9346 = vmatmul.mubr.msk.f32.gmra.mrb[10].mxu0 %vm312_vm0, %v445_v21 }
  0xfe   : > { %9332 = vmatprep.mubr.msk.f32.mxu1 %vm10864_vm1, %v10865_v10  ;;  %9348 = vmatprep.mubr.msk.f32.mxu0 %vm10864_vm1, %v10865_v10 }
  0xff   : > { %10261 = vmatpush3.bf16.msra.mxu1 %v10260_v27 }
 0x101   : > { %9333 = vmatmul.mubr.msk.f32.gmra.mrb[8].mxu1 %vm312_vm0, %v445_v21  ;;  %9349 = vmatmul.mubr.msk.f32.gmra.mrb[12].mxu0 %vm312_vm0, %v446_v24 }
 0x102   : > { %9335 = vmatprep.mubr.msk.f32.mxu1 %vm10864_vm1, %v10865_v10 }
 0x105   : > { %9336 = vmatmul.mubr.msk.f32.gmra.mrb[10].mxu1 %vm312_vm0, %v446_v24 }
 0x106   : > { %9355 = vmatprep.mubr.msk.f32.mxu1 %vm10864_vm1, %v10865_v10 }
 0x109   : > { %9356 = vmatmul.mubr.msk.f32.vlgmr.msra.gmra.mrb[12].mxu1 %vm312_vm0, %v444_v16 }
 0x10a   : > { %9358 = vmatprep.mubr.msk.f32.mxu1 %vm10864_vm1, %v10865_v10 }
 0x10d   : > { %9359 = vmatmul.mubr.msk.f32.gmra.mrb[14].mxu1 %vm312_vm0, %v445_v21 }
 0x10e   : > { %9361 = vmatprep.mubr.msk.f32.mxu1 %vm10864_vm1, %v10865_v10 }
 0x111   : > { %9362 = vmatmul.mubr.msk.f32.gmra.mrb[16].mxu1 %vm312_vm0, %v446_v24 }
 0x1c4   : > { %v522_v32 = vpop.f32.mrb[0].mxu1 }
 0x1c5   : > { %v9318_v33 = vpop.f32.mrb[1].mxu1  ;;  %v802_v34 = vrot.slane %v522_v32, %v10986_v30  ;;  %v779_v35 = vrot.slane %v522_v32, %v10988_v31  ;;  %v825_v38 = vrot.slane %v522_v32, %v10992_v36  ;;  %v848_v47 = vrot.slane %v522_v32, %v11003_v46 }
 0x1c6   : > { %v871_v49 = vrot.slane %v522_v32, %v11006_v48  ;;  %v894_v51 = vrot.slane %v522_v32, %v11009_v50  ;;  %v917_v53 = vrot.slane %v522_v32, %v11012_v52  ;;  %v940_v55 = vrot.slane %v522_v32, %v11015_v54 }
 0x1c7   : > { %804 = vbcast.lane.b32.xlu0 %v802_v34, 256  ;;  %785 = vbcast.lane.b32.xlu1 %v779_v35, 264 }
 0x1c8   : > { %v10994_v37 = vpop.f32.mrb[2].mxu1 }
 0x1c9   : > { %v9321_v39 = vpop.f32.mrb[3].mxu1  ;;  %v11020_v56 = vrot.slane %v10994_v37, %v10988_v31  ;;  %v11025_v57 = vrot.slane %v10994_v37, %v10986_v30  ;;  %v11030_v58 = vrot.slane %v10994_v37, %v10992_v36  ;;  %v11035_v59 = vrot.slane %v10994_v37, %v11003_v46 }
 0x1cb   : > { %808 = vbcast.lane.b32.xlu0 %v802_v34, 264  ;;  %831 = vbcast.lane.b32.xlu1 %v825_v38, 264 }
 0x1cc   : > { %v10997_v40 = vpop.f32.mrb[8].mxu0  ;;  %v10999_v41 = vpop.f32.mrb[4].mxu1 }
 0x1cd   : > { %15140 = vst [vmem:[#allocation4_spill] sm:$0xff] %v10999_v41  ;;  %v9344_v42 = vpop.f32.mrb[9].mxu0  ;;  %v9324_v43 = vpop.f32.mrb[5].mxu1  ;;  %v11040_v60 = vrot.slane %v10997_v40, %v10986_v30  ;;  %v11046_v61 = vrot.slane %v10997_v40, %v10988_v31  ;;  %v11051_v62 = vrot.slane %v10997_v40, %v10992_v36  ;;  %v11059_v63 = vrot.slane %v10997_v40, %v11003_v46 }
 0x1ce   : > { %v11065_v0 = vrot.slane %v10997_v40, %v11006_v48  ;;  %v11071_v1 = vrot.slane %v10997_v40, %v11009_v50  ;;  %v11077_v2 = vrot.slane %v10997_v40, %v11012_v52  ;;  %v11089_v7 = vrot.slane %v10997_v40, %v11015_v54 }
 0x1cf   : > { %812 = vbcast.lane.b32.xlu0 %v802_v34, 272  ;;  %835 = vbcast.lane.b32.xlu1 %v825_v38, 272 }
 0x1d0   : > { %v11001_v44 = vpop.f32.mrb[6].mxu1  ;;  %v11081_v3 = vpop.f32.mrb[10].mxu0 }
 0x1d1   : > { %v9331_v45 = vpop.f32.mrb[7].mxu1  ;;  %v9347_v4 = vpop.f32.mrb[11].mxu0  ;;  %v1216_v10 = vrot.slane %v11001_v44, %v10986_v30  ;;  %v11133_v25 = vrot.slane %v11001_v44, %v10988_v31  ;;  %v11143_v28 = vrot.slane %v11001_v44, %v10992_v36  ;;  %v11171_v42 = vrot.slane %v11001_v44, %v11003_v46 }
 0x1d3   : > { %816 = vbcast.lane.b32.xlu0 %v802_v34, 280  ;;  %839 = vbcast.lane.b32.xlu1 %v825_v38, 280 }
 0x1d4   : > { %v11125_v21 = vpop.f32.mrb[8].mxu1 }
 0x1d5   : > { %15146 = vst [vmem:[#allocation10_spill] sm:$0xff] %v11125_v21  ;;  %v9334_v22 = vpop.f32.mrb[9].mxu1 }
 0x1d7   : > { %820 = vbcast.lane.b32.xlu0 %v802_v34, 288  ;;  %843 = vbcast.lane.b32.xlu1 %v825_v38, 288 }
 0x1db   : > { %854 = vbcast.lane.b32.xlu1 %v848_v47, 264  ;;  %781 = vbcast.lane.b32.xlu0 %v779_v35, 256 }
 0x1df   : > { %877 = vbcast.lane.b32.xlu1 %v871_v49, 264  ;;  %827 = vbcast.lane.b32.xlu0 %v825_v38, 256 }
 0x1e3   : > { %900 = vbcast.lane.b32.xlu1 %v894_v51, 264  ;;  %789 = vbcast.lane.b32.xlu0 %v779_v35, 272 }
 0x1e7   : > { %923 = vbcast.lane.b32.xlu1 %v917_v53, 264  ;;  %793 = vbcast.lane.b32.xlu0 %v779_v35, 280 }
 0x1eb   : > { %946 = vbcast.lane.b32.xlu1 %v940_v55, 264  ;;  %797 = vbcast.lane.b32.xlu0 %v779_v35, 288 }
 0x1ef   : > { %850 = vbcast.lane.b32.xlu0 %v848_v47, 256  ;;  %969 = vbcast.lane.b32.xlu1 %v11020_v56, 264 }
 0x1f3   : > { %858 = vbcast.lane.b32.xlu0 %v848_v47, 272  ;;  %992 = vbcast.lane.b32.xlu1 %v11025_v57, 264 }
 0x1f7   : > { %862 = vbcast.lane.b32.xlu0 %v848_v47, 280  ;;  %1015 = vbcast.lane.b32.xlu1 %v11030_v58, 264 }
 0x1fb   : > { %866 = vbcast.lane.b32.xlu0 %v848_v47, 288  ;;  %1038 = vbcast.lane.b32.xlu1 %v11035_v59, 264 }
 0x1ff   : > { %873 = vbcast.lane.b32.xlu0 %v871_v49, 256  ;;  %1636 = vbcast.lane.b32.xlu1 %v11040_v60, 264 }
 0x203   : > { %881 = vbcast.lane.b32.xlu0 %v871_v49, 272  ;;  %1648 = vbcast.lane.b32.xlu1 %v11040_v60, 288 }
 0x207   : > { %885 = vbcast.lane.b32.xlu0 %v871_v49, 280  ;;  %1613 = vbcast.lane.b32.xlu1 %v11046_v61, 264 }
 0x20b   : > { %889 = vbcast.lane.b32.xlu0 %v871_v49, 288  ;;  %1659 = vbcast.lane.b32.xlu1 %v11051_v62, 264 }
 0x20f   : > { %896 = vbcast.lane.b32.xlu0 %v894_v51, 256  ;;  %1663 = vbcast.lane.b32.xlu1 %v11051_v62, 272 }
 0x213   : > { %904 = vbcast.lane.b32.xlu0 %v894_v51, 272  ;;  %1667 = vbcast.lane.b32.xlu1 %v11051_v62, 280 }
 0x217   : > { %908 = vbcast.lane.b32.xlu0 %v894_v51, 280  ;;  %1671 = vbcast.lane.b32.xlu1 %v11051_v62, 288 }
 0x21b   : > { %912 = vbcast.lane.b32.xlu0 %v894_v51, 288  ;;  %1682 = vbcast.lane.b32.xlu1 %v11059_v63, 264 }
 0x21f   : > { %919 = vbcast.lane.b32.xlu0 %v917_v53, 256  ;;  %1694 = vbcast.lane.b32.xlu1 %v11059_v63, 288 }
 0x223   : > { %927 = vbcast.lane.b32.xlu0 %v917_v53, 272  ;;  %1705 = vbcast.lane.b32.xlu1 %v11065_v0, 264 }
 0x227   : > { %931 = vbcast.lane.b32.xlu0 %v917_v53, 280  ;;  %1717 = vbcast.lane.b32.xlu1 %v11065_v0, 288 }
 0x22b   : > { %935 = vbcast.lane.b32.xlu0 %v917_v53, 288  ;;  %1728 = vbcast.lane.b32.xlu1 %v11071_v1, 264 }
 0x22f   : > { %942 = vbcast.lane.b32.xlu0 %v940_v55, 256  ;;  %1740 = vbcast.lane.b32.xlu1 %v11071_v1, 288 }
 0x233   : > { %950 = vbcast.lane.b32.xlu0 %v940_v55, 272  ;;  %1751 = vbcast.lane.b32.xlu1 %v11077_v2, 264 }
 0x237   : > { %954 = vbcast.lane.b32.xlu0 %v940_v55, 280  ;;  %1763 = vbcast.lane.b32.xlu1 %v11077_v2, 288 }
 0x239   : > { %v11083_v5 = vpop.permute.xlu0 %804  ;;  %v11085_v6 = vpop.permute.xlu1 %785 }
 0x23b   : > { %958 = vbcast.lane.b32.xlu0 %v940_v55, 288  ;;  %1774 = vbcast.lane.b32.xlu1 %v11089_v7, 264 }
 0x23d   : > { %v11092_v8 = vpop.permute.xlu0 %808  ;;  %v11094_v9 = vpop.permute.xlu1 %831 }
 0x23f   : > { %965 = vbcast.lane.b32.xlu0 %v11020_v56, 256  ;;  %1786 = vbcast.lane.b32.xlu1 %v11089_v7, 288 }
 0x241   : > { %v11100_v11 = vpop.permute.xlu0 %812  ;;  %v11102_v12 = vpop.permute.xlu1 %835 }
 0x243   : > { %973 = vbcast.lane.b32.xlu0 %v11020_v56, 272  ;;  %1218 = vbcast.lane.b32.xlu1 %v1216_v10, 256 }
 0x245   : > { %v11105_v13 = vpop.permute.xlu0 %816  ;;  %v11107_v14 = vpop.permute.xlu1 %839 }
 0x247   : > { %977 = vbcast.lane.b32.xlu0 %v11020_v56, 280  ;;  %1222 = vbcast.lane.b32.xlu1 %v1216_v10, 264 }
 0x249   : > { %v11110_v15 = vpop.permute.xlu0 %820  ;;  %v11112_v16 = vpop.permute.xlu1 %843 }
 0x24b   : > { %981 = vbcast.lane.b32.xlu0 %v11020_v56, 288  ;;  %1226 = vbcast.lane.b32.xlu1 %v1216_v10, 272 }
 0x24d   : > { %v11115_v17 = vpop.permute.xlu1 %854  ;;  %v11117_v18 = vpop.permute.xlu0 %781 }
 0x24e   : > { %15144 = vst [vmem:[#allocation8_spill] sm:$0xff] %v11115_v17 }
 0x24f   : > { %988 = vbcast.lane.b32.xlu0 %v11025_v57, 256  ;;  %1230 = vbcast.lane.b32.xlu1 %v1216_v10, 280 }
 0x251   : > { %v11120_v19 = vpop.permute.xlu1 %877  ;;  %v11122_v20 = vpop.permute.xlu0 %827 }
 0x252   : > { %15145 = vst [vmem:[#allocation9_spill] sm:$0xff] %v11120_v19 }
 0x253   : > { %996 = vbcast.lane.b32.xlu0 %v11025_v57, 272  ;;  %1234 = vbcast.lane.b32.xlu1 %v1216_v10, 288 }
 0x255   : > { %v11127_v23 = vpop.permute.xlu1 %900  ;;  %v11129_v24 = vpop.permute.xlu0 %789 }
 0x256   : > { %15147 = vst [vmem:[#allocation11_spill] sm:$0xff] %v11127_v23 }
 0x257   : > { %1000 = vbcast.lane.b32.xlu0 %v11025_v57, 280  ;;  %1199 = vbcast.lane.b32.xlu1 %v11133_v25, 264 }
 0x259   : > { %v11137_v26 = vpop.permute.xlu1 %923  ;;  %v11139_v27 = vpop.permute.xlu0 %793 }
 0x25a   : > { %15148 = vst [vmem:[#allocation12_spill] sm:$0xff] %v11137_v26  ;;  %15149 = vst [vmem:[#allocation13_spill] sm:$0xff] %v11139_v27 }
 0x25b   : > { %1004 = vbcast.lane.b32.xlu0 %v11025_v57, 288  ;;  %1245 = vbcast.lane.b32.xlu1 %v11143_v28, 264  ;;  %v11199_v57 = vrot.slane %v11001_v44, %v11006_v48 }
 0x25d   : > { %v11147_v29 = vpop.permute.xlu1 %946  ;;  %v11149_v32 = vpop.permute.xlu0 %797 }
 0x25e   : > { %15150 = vst [vmem:[#allocation14_spill] sm:$0xff] %v11147_v29  ;;  %15151 = vst [vmem:[#allocation15_spill] sm:$0xff] %v11149_v32 }
 0x25f   : > { %1011 = vbcast.lane.b32.xlu0 %v11030_v58, 256  ;;  %1249 = vbcast.lane.b32.xlu1 %v11143_v28, 272 }
 0x261   : > { %v11153_v33 = vpop.permute.xlu0 %850  ;;  %v11155_v34 = vpop.permute.xlu1 %969 }
 0x262   : > { %15152 = vst [vmem:[#allocation16_spill] sm:$0xff] %v11153_v33  ;;  %15153 = vst [vmem:[#allocation17_spill] sm:$0xff] %v11155_v34 }
 0x263   : > { %1019 = vbcast.lane.b32.xlu0 %v11030_v58, 272  ;;  %1253 = vbcast.lane.b32.xlu1 %v11143_v28, 280 }
 0x265   : > { %v11159_v35 = vpop.permute.xlu0 %858  ;;  %v11161_v38 = vpop.permute.xlu1 %992 }
 0x266   : > { %15154 = vst [vmem:[#allocation18_spill] sm:$0xff] %v11159_v35  ;;  %15155 = vst [vmem:[#allocation19_spill] sm:$0xff] %v11161_v38  ;;  %v11227_v38 = vrot.slane %v11001_v44, %v11009_v50 }
 0x267   : > { %1023 = vbcast.lane.b32.xlu0 %v11030_v58, 280  ;;  %1257 = vbcast.lane.b32.xlu1 %v11143_v28, 288 }
 0x269   : > { %v11165_v39 = vpop.permute.xlu0 %862  ;;  %v11167_v40 = vpop.permute.xlu1 %1015 }
 0x26a   : > { %15156 = vst [vmem:[#allocation20_spill] sm:$0xff] %v11165_v39  ;;  %15157 = vst [vmem:[#allocation21_spill] sm:$0xff] %v11167_v40 }
 0x26b   : > { %1027 = vbcast.lane.b32.xlu0 %v11030_v58, 288  ;;  %1268 = vbcast.lane.b32.xlu1 %v11171_v42, 264 }
 0x26d   : > { %v11175_v43 = vpop.permute.xlu0 %866  ;;  %v11177_v45 = vpop.permute.xlu1 %1038 }
 0x26e   : > { %15158 = vst [vmem:[#allocation22_spill] sm:$0xff] %v11175_v43  ;;  %15159 = vst [vmem:[#allocation23_spill] sm:$0xff] %v11177_v45 }
 0x26f   : > { %1034 = vbcast.lane.b32.xlu0 %v11035_v59, 256  ;;  %1272 = vbcast.lane.b32.xlu1 %v11171_v42, 272 }
 0x271   : > { %v11181_v47 = vpop.permute.xlu0 %873  ;;  %v11183_v49 = vpop.permute.xlu1 %1636 }
 0x272   : > { %15160 = vst [vmem:[#allocation24_spill] sm:$0xff] %v11181_v47  ;;  %v11363_v47 = vrot.slane %v11081_v3, %v11003_v46 }
 0x273   : > { %1042 = vbcast.lane.b32.xlu0 %v11035_v59, 272  ;;  %1276 = vbcast.lane.b32.xlu1 %v11171_v42, 280 }
 0x275   : > { %v11187_v51 = vpop.permute.xlu0 %881  ;;  %v11189_v53 = vpop.permute.xlu1 %1648 }
 0x276   : > { %15161 = vst [vmem:[#allocation25_spill] sm:$0xff] %v11187_v51 }
 0x277   : > { %1046 = vbcast.lane.b32.xlu0 %v11035_v59, 280  ;;  %1280 = vbcast.lane.b32.xlu1 %v11171_v42, 288 }
 0x279   : > { %v11193_v55 = vpop.permute.xlu0 %885  ;;  %v11195_v56 = vpop.permute.xlu1 %1613 }
 0x27a   : > { %15162 = vst [vmem:[#allocation26_spill] sm:$0xff] %v11193_v55 }
 0x27b   : > { %1050 = vbcast.lane.b32.xlu0 %v11035_v59, 288  ;;  %1291 = vbcast.lane.b32.xlu1 %v11199_v57, 264 }
 0x27d   : > { %v11203_v58 = vpop.permute.xlu0 %889  ;;  %v11205_v4 = vpop.permute.xlu1 %1659 }
 0x27e   : > { %15163 = vst [vmem:[#allocation27_spill] sm:$0xff] %v11203_v58  ;;  %v11347_v58 = vrot.slane %v11081_v3, %v10992_v36 }
 0x27f   : > { %1632 = vbcast.lane.b32.xlu0 %v11040_v60, 256  ;;  %1295 = vbcast.lane.b32.xlu1 %v11199_v57, 272 }
 0x281   : > { %v11209_v10 = vpop.permute.xlu0 %896  ;;  %v11211_v22 = vpop.permute.xlu1 %1663 }
 0x282   : > { %15164 = vst [vmem:[#allocation28_spill] sm:$0xff] %v11209_v10 }
 0x283   : > { %1640 = vbcast.lane.b32.xlu0 %v11040_v60, 272  ;;  %1299 = vbcast.lane.b32.xlu1 %v11199_v57, 280 }
 0x285   : > { %v11215_v41 = vpop.permute.xlu0 %904  ;;  %v11217_v59 = vpop.permute.xlu1 %1667 }
 0x286   : > { %15165 = vst [vmem:[#allocation29_spill] sm:$0xff] %v11215_v41 }
 0x287   : > { %1644 = vbcast.lane.b32.xlu0 %v11040_v60, 280  ;;  %1303 = vbcast.lane.b32.xlu1 %v11199_v57, 288  ;;  %v11237_v60 = vpop.f32.mrb[10].mxu1 }
 0x288   : > { %15169 = vst [vmem:[#allocation33_spill] sm:$0xff] %v11237_v60  ;;  %v9337_v26 = vpop.f32.mrb[11].mxu1  ;;  %v11259_v60 = vrot.slane %v11001_v44, %v11012_v52 }
 0x289   : > { %v11221_v45 = vpop.permute.xlu0 %908  ;;  %v11223_v40 = vpop.permute.xlu1 %1671 }
 0x28a   : > { %15166 = vst [vmem:[#allocation30_spill] sm:$0xff] %v11221_v45  ;;  %v11245_v23 = vpop.f32.mrb[12].mxu1 }
 0x28b   : > { %1314 = vbcast.lane.b32.xlu1 %v11227_v38, 264  ;;  %1609 = vbcast.lane.b32.xlu0 %v11046_v61, 256  ;;  %v2113_v27 = vrot.slane %v11245_v23, %v11006_v48 }
 0x28d   : > { %v11231_v34 = vpop.permute.xlu0 %912  ;;  %v11233_v29 = vpop.permute.xlu1 %1682 }
 0x28e   : > { %15167 = vst [vmem:[#allocation31_spill] sm:$0xff] %v11231_v34  ;;  %15168 = vst [vmem:[#allocation32_spill] sm:$0xff] %v11233_v29  ;;  %v9357_v34 = vpop.f32.mrb[13].mxu1 }
 0x28f   : > { %1318 = vbcast.lane.b32.xlu1 %v11227_v38, 272  ;;  %1655 = vbcast.lane.b32.xlu0 %v11051_v62, 256 }
 0x291   : > { %v11239_v45 = vpop.permute.xlu0 %919  ;;  %v11241_v41 = vpop.permute.xlu1 %1694 }
 0x292   : > { %15170 = vst [vmem:[#allocation34_spill] sm:$0xff] %v11239_v45  ;;  %15171 = vst [vmem:[#allocation35_spill] sm:$0xff] %v11241_v41 }
 0x293   : > { %1322 = vbcast.lane.b32.xlu1 %v11227_v38, 280  ;;  %1617 = vbcast.lane.b32.xlu0 %v11046_v61, 272 }
 0x295   : > { %v11247_v10 = vpop.permute.xlu0 %927  ;;  %v11249_v55 = vpop.permute.xlu1 %1705 }
 0x296   : > { %15172 = vst [vmem:[#allocation36_spill] sm:$0xff] %v11247_v10  ;;  %15173 = vst [vmem:[#allocation37_spill] sm:$0xff] %v11249_v55 }
 0x297   : > { %1326 = vbcast.lane.b32.xlu1 %v11227_v38, 288  ;;  %1621 = vbcast.lane.b32.xlu0 %v11046_v61, 280 }
 0x299   : > { %v11253_v62 = vpop.permute.xlu0 %931  ;;  %v11255_v26 = vpop.permute.xlu1 %1717 }
 0x29a   : > { %15174 = vst [vmem:[#allocation38_spill] sm:$0xff] %v11253_v62  ;;  %15175 = vst [vmem:[#allocation39_spill] sm:$0xff] %v11255_v26 }
 0x29b   : > { %1337 = vbcast.lane.b32.xlu1 %v11259_v60, 264  ;;  %1625 = vbcast.lane.b32.xlu0 %v11046_v61, 288 }
 0x29d   : > { %v11263_v34 = vpop.permute.xlu0 %935  ;;  %v11265_v10 = vpop.permute.xlu1 %1728 }
 0x29e   : > { %15176 = vst [vmem:[#allocation40_spill] sm:$0xff] %v11263_v34  ;;  %15177 = vst [vmem:[#allocation41_spill] sm:$0xff] %v11265_v10 }
 0x29f   : > { %1341 = vbcast.lane.b32.xlu1 %v11259_v60, 272  ;;  %1678 = vbcast.lane.b32.xlu0 %v11059_v63, 256 }
 0x2a1   : > { %v11269_v45 = vpop.permute.xlu0 %942  ;;  %v11271_v62 = vpop.permute.xlu1 %1740 }
 0x2a2   : > { %15178 = vst [vmem:[#allocation42_spill] sm:$0xff] %v11269_v45  ;;  %15179 = vst [vmem:[#allocation43_spill] sm:$0xff] %v11271_v62  ;;  %v11287_v45 = vrot.slane %v11001_v44, %v11015_v54 }
 0x2a3   : > { %1345 = vbcast.lane.b32.xlu1 %v11259_v60, 280  ;;  %1686 = vbcast.lane.b32.xlu0 %v11059_v63, 272 }
 0x2a5   : > { %v11275_v26 = vpop.permute.xlu0 %950  ;;  %v11277_v55 = vpop.permute.xlu1 %1751 }
 0x2a6   : > { %15180 = vst [vmem:[#allocation44_spill] sm:$0xff] %v11275_v26  ;;  %15181 = vst [vmem:[#allocation45_spill] sm:$0xff] %v11277_v55 }
 0x2a7   : > { %1349 = vbcast.lane.b32.xlu1 %v11259_v60, 288  ;;  %1690 = vbcast.lane.b32.xlu0 %v11059_v63, 280 }
 0x2a9   : > { %v11281_v61 = vpop.permute.xlu0 %954  ;;  %v11283_v34 = vpop.permute.xlu1 %1763 }
 0x2aa   : > { %15182 = vst [vmem:[#allocation46_spill] sm:$0xff] %v11281_v61  ;;  %15183 = vst [vmem:[#allocation47_spill] sm:$0xff] %v11283_v34 }
 0x2ab   : > { %1360 = vbcast.lane.b32.xlu1 %v11287_v45, 264  ;;  %1701 = vbcast.lane.b32.xlu0 %v11065_v0, 256 }
 0x2ad   : > { %v11291_v62 = vpop.permute.xlu0 %958  ;;  %v11293_v26 = vpop.permute.xlu1 %1774 }
 0x2ae   : > { %15184 = vst [vmem:[#allocation48_spill] sm:$0xff] %v11291_v62  ;;  %15185 = vst [vmem:[#allocation49_spill] sm:$0xff] %v11293_v26  ;;  %v11311_v26 = vrot.slane %v11081_v3, %v10988_v31 }
 0x2af   : > { %1364 = vbcast.lane.b32.xlu1 %v11287_v45, 272  ;;  %1709 = vbcast.lane.b32.xlu0 %v11065_v0, 272 }
 0x2b1   : > { %v11297_v63 = vpop.permute.xlu0 %965  ;;  %v11299_v61 = vpop.permute.xlu1 %1786 }
 0x2b2   : > { %15186 = vst [vmem:[#allocation50_spill] sm:$0xff] %v11297_v63  ;;  %15187 = vst [vmem:[#allocation51_spill] sm:$0xff] %v11299_v61 }
 0x2b3   : > { %1368 = vbcast.lane.b32.xlu1 %v11287_v45, 280  ;;  %1713 = vbcast.lane.b32.xlu0 %v11065_v0, 280 }
 0x2b5   : > { %v11303_v44 = vpop.permute.xlu0 %973  ;;  %v11305_v34 = vpop.permute.xlu1 %1218 }
 0x2b6   : > { %15188 = vst [vmem:[#allocation52_spill] sm:$0xff] %v11303_v44 }
 0x2b7   : > { %1372 = vbcast.lane.b32.xlu1 %v11287_v45, 288  ;;  %1724 = vbcast.lane.b32.xlu0 %v11071_v1, 256 }
 0x2b9   : > { %v11313_v62 = vpop.permute.xlu0 %977  ;;  %v11315_v63 = vpop.permute.xlu1 %1222 }
 0x2ba   : > { %15189 = vst [vmem:[#allocation53_spill] sm:$0xff] %v11313_v62  ;;  %v11331_v62 = vrot.slane %v11081_v3, %v10986_v30 }
 0x2bb   : > { %1732 = vbcast.lane.b32.xlu0 %v11071_v1, 272  ;;  %1797 = vbcast.lane.b32.xlu1 %v11311_v26, 264 }
 0x2bd   : > { %v11319_v0 = vpop.permute.xlu0 %981  ;;  %v11321_v44 = vpop.permute.xlu1 %1226 }
 0x2be   : > { %15190 = vst [vmem:[#allocation54_spill] sm:$0xff] %v11319_v0 }
 0x2bf   : > { %1736 = vbcast.lane.b32.xlu0 %v11071_v1, 280  ;;  %1809 = vbcast.lane.b32.xlu1 %v11311_v26, 288 }
 0x2c1   : > { %v11325_v61 = vpop.permute.xlu0 %988  ;;  %v11327_v55 = vpop.permute.xlu1 %1230 }
 0x2c2   : > { %15191 = vst [vmem:[#allocation55_spill] sm:$0xff] %v11325_v61 }
 0x2c3   : > { %1747 = vbcast.lane.b32.xlu0 %v11077_v2, 256  ;;  %1820 = vbcast.lane.b32.xlu1 %v11331_v62, 264 }
 0x2c5   : > { %v11335_v10 = vpop.permute.xlu0 %996  ;;  %v11337_v0 = vpop.permute.xlu1 %1234 }
 0x2c6   : > { %15192 = vst [vmem:[#allocation56_spill] sm:$0xff] %v11335_v10 }
 0x2c7   : > { %1755 = vbcast.lane.b32.xlu0 %v11077_v2, 272  ;;  %1832 = vbcast.lane.b32.xlu1 %v11331_v62, 288 }
 0x2c9   : > { %v11341_v1 = vpop.permute.xlu0 %1000  ;;  %v11343_v61 = vpop.permute.xlu1 %1199 }
 0x2ca   : > { %15193 = vst [vmem:[#allocation57_spill] sm:$0xff] %v11341_v1 }
 0x2cb   : > { %1759 = vbcast.lane.b32.xlu0 %v11077_v2, 280  ;;  %1843 = vbcast.lane.b32.xlu1 %v11347_v58, 264  ;;  %v11369_v2 = vrot.slane %v11125_v21, %v10988_v31 }
 0x2cd   : > { %v11351_v51 = vpop.permute.xlu0 %1004  ;;  %v11353_v10 = vpop.permute.xlu1 %1245 }
 0x2ce   : > { %15194 = vst [vmem:[#allocation58_spill] sm:$0xff] %v11351_v51 }
 0x2cf   : > { %1770 = vbcast.lane.b32.xlu0 %v11089_v7, 256  ;;  %1855 = vbcast.lane.b32.xlu1 %v11347_v58, 288 }
 0x2d1   : > { %v11357_v19 = vpop.permute.xlu0 %1011  ;;  %v11359_v1 = vpop.permute.xlu1 %1249 }
 0x2d2   : > { %15195 = vst [vmem:[#allocation59_spill] sm:$0xff] %v11357_v19 }
 0x2d3   : > { %1778 = vbcast.lane.b32.xlu0 %v11089_v7, 272  ;;  %1866 = vbcast.lane.b32.xlu1 %v11363_v47, 264 }
 0x2d5   : > { %v11371_v51 = vpop.permute.xlu0 %1019  ;;  %v11373_v39 = vpop.permute.xlu1 %1253 }
 0x2d6   : > { %15196 = vst [vmem:[#allocation60_spill] sm:$0xff] %v11371_v51 }
 0x2d7   : > { %1782 = vbcast.lane.b32.xlu0 %v11089_v7, 280  ;;  %1383 = vbcast.lane.b32.xlu1 %v11369_v2, 264 }
 0x2d9   : > { %v11377_v19 = vpop.permute.xlu0 %1023  ;;  %v11379_v41 = vpop.permute.xlu1 %1257 }
 0x2da   : > { %15197 = vst [vmem:[#allocation61_spill] sm:$0xff] %v11377_v19 }
 0x2db   : > { %1195 = vbcast.lane.b32.xlu0 %v11133_v25, 256  ;;  %1387 = vbcast.lane.b32.xlu1 %v11369_v2, 272 }
 0x2dd   : > { %v11383_v29 = vpop.permute.xlu0 %1027  ;;  %v11385_v43 = vpop.permute.xlu1 %1268 }
 0x2de   : > { %15198 = vst [vmem:[#allocation62_spill] sm:$0xff] %v11383_v29  ;;  %15199 = vst [vmem:[#allocation63_spill] sm:$0xff] %v11385_v43  ;;  %v11401_v29 = vrot.slane %v11125_v21, %v10986_v30 }
 0x2df   : > { %1241 = vbcast.lane.b32.xlu0 %v11143_v28, 256  ;;  %1391 = vbcast.lane.b32.xlu1 %v11369_v2, 280 }
 0x2e1   : > { %v11389_v51 = vpop.permute.xlu0 %1034  ;;  %v11391_v7 = vpop.permute.xlu1 %1272 }
 0x2e2   : > { %15200 = vst [vmem:[#allocation64_spill] sm:$0xff] %v11389_v51  ;;  %15201 = vst [vmem:[#allocation65_spill] sm:$0xff] %v11391_v7 }
 0x2e3   : > { %1203 = vbcast.lane.b32.xlu0 %v11133_v25, 272  ;;  %1395 = vbcast.lane.b32.xlu1 %v11369_v2, 288 }
 0x2e5   : > { %v11395_v19 = vpop.permute.xlu0 %1042  ;;  %v11397_v35 = vpop.permute.xlu1 %1276 }
 0x2e6   : > { %15202 = vst [vmem:[#allocation66_spill] sm:$0xff] %v11395_v19  ;;  %15203 = vst [vmem:[#allocation67_spill] sm:$0xff] %v11397_v35  ;;  %v11417_v35 = vpop.f32.mrb[14].mxu1 }
 0x2e7   : > { %1207 = vbcast.lane.b32.xlu0 %v11133_v25, 280  ;;  %1406 = vbcast.lane.b32.xlu1 %v11401_v29, 264  ;;  %v9360_v17 = vpop.f32.mrb[15].mxu1 }
 0x2e9   : > { %v11405_v28 = vpop.permute.xlu0 %1046  ;;  %v11407_v51 = vpop.permute.xlu1 %1280 }
 0x2ea   : > { %15204 = vst [vmem:[#allocation68_spill] sm:$0xff] %v11405_v28  ;;  %15205 = vst [vmem:[#allocation69_spill] sm:$0xff] %v11407_v51 }
 0x2eb   : > { %1211 = vbcast.lane.b32.xlu0 %v11133_v25, 288  ;;  %1410 = vbcast.lane.b32.xlu1 %v11401_v29, 272 }
 0x2ed   : > { %v11411_v7 = vpop.permute.xlu0 %1050  ;;  %v11413_v19 = vpop.permute.xlu1 %1291 }
 0x2ee   : > { %15206 = vst [vmem:[#allocation70_spill] sm:$0xff] %v11411_v7  ;;  %15207 = vst [vmem:[#allocation71_spill] sm:$0xff] %v11413_v19 }
 0x2ef   : > { %1264 = vbcast.lane.b32.xlu0 %v11171_v42, 256  ;;  %1414 = vbcast.lane.b32.xlu1 %v11401_v29, 280  ;;  %v11431_v42 = vrot.slane %v11125_v21, %v10992_v36 }
 0x2f1   : > { %v11419_v43 = vpop.permute.xlu0 %1632  ;;  %v11421_v28 = vpop.permute.xlu1 %1295 }
 0x2f2   : > { %15208 = vst [vmem:[#allocation72_spill] sm:$0xff] %v11421_v28 }
 0x2f3   : > { %1287 = vbcast.lane.b32.xlu0 %v11199_v57, 256  ;;  %1418 = vbcast.lane.b32.xlu1 %v11401_v29, 288 }
 0x2f5   : > { %v11425_v25 = vpop.permute.xlu0 %1640  ;;  %v11427_v7 = vpop.permute.xlu1 %1299 }
 0x2f6   : > { %15209 = vst [vmem:[#allocation73_spill] sm:$0xff] %v11427_v7 }
 0x2f7   : > { %1310 = vbcast.lane.b32.xlu0 %v11227_v38, 256  ;;  %1429 = vbcast.lane.b32.xlu1 %v11431_v42, 264 }
 0x2f9   : > { %v11435_v17 = vpop.permute.xlu0 %1644  ;;  %v11437_v19 = vpop.permute.xlu1 %1303 }
 0x2fa   : > { %15210 = vst [vmem:[#allocation74_spill] sm:$0xff] %v11437_v19 }
 0x2fb   : > { %1333 = vbcast.lane.b32.xlu0 %v11259_v60, 256  ;;  %1433 = vbcast.lane.b32.xlu1 %v11431_v42, 272 }
 0x2fd   : > { %v11441_v57 = vpop.permute.xlu1 %1314  ;;  %v11443_v28 = vpop.permute.xlu0 %1609 }
 0x2fe   : > { %15211 = vst [vmem:[#allocation75_spill] sm:$0xff] %v11441_v57  ;;  %v1446_v57 = vrot.slane %v11125_v21, %v11003_v46 }
 0x2ff   : > { %1356 = vbcast.lane.b32.xlu0 %v11287_v45, 256  ;;  %1437 = vbcast.lane.b32.xlu1 %v11431_v42, 280 }
 0x301   : > { %v11447_v7 = vpop.permute.xlu1 %1318  ;;  %v11449_v38 = vpop.permute.xlu0 %1655 }
 0x302   : > { %15212 = vst [vmem:[#allocation76_spill] sm:$0xff] %v11447_v7 }
 0x303   : > { %1441 = vbcast.lane.b32.xlu1 %v11431_v42, 288  ;;  %1793 = vbcast.lane.b32.xlu0 %v11311_v26, 256 }
 0x305   : > { %v11453_v19 = vpop.permute.xlu1 %1322  ;;  %v11455_v60 = vpop.permute.xlu0 %1617 }
 0x306   : > { %15213 = vst [vmem:[#allocation77_spill] sm:$0xff] %v11453_v19 }
 0x307   : > { %1452 = vbcast.lane.b32.xlu1 %v1446_v57, 264  ;;  %1801 = vbcast.lane.b32.xlu0 %v11311_v26, 272 }
 0x309   : > { %v11460_v45 = vpop.permute.xlu1 %1326  ;;  %v11462_v51 = vpop.permute.xlu0 %1621 }
 0x30a   : > { %15214 = vst [vmem:[#allocation78_spill] sm:$0xff] %v11460_v45  ;;  %15215 = vst [vmem:[#allocation79_spill] sm:$0xff] %v11462_v51  ;;  %v2044_v45 = vrot.slane %v11245_v23, %v10986_v30 }
 0x30b   : > { %1456 = vbcast.lane.b32.xlu1 %v1446_v57, 272  ;;  %1805 = vbcast.lane.b32.xlu0 %v11311_v26, 280 }
 0x30d   : > { %v11465_v7 = vpop.permute.xlu1 %1337  ;;  %v11467_v33 = vpop.permute.xlu0 %1625 }
 0x30e   : > { %15216 = vst [vmem:[#allocation80_spill] sm:$0xff] %v11465_v7  ;;  %15217 = vst [vmem:[#allocation81_spill] sm:$0xff] %v11467_v33 }
 0x30f   : > { %1460 = vbcast.lane.b32.xlu1 %v1446_v57, 280  ;;  %1816 = vbcast.lane.b32.xlu0 %v11331_v62, 256 }
 0x311   : > { %v11470_v19 = vpop.permute.xlu1 %1341  ;;  %v11472_v32 = vpop.permute.xlu0 %1678 }
 0x312   : > { %15218 = vst [vmem:[#allocation82_spill] sm:$0xff] %v11470_v19  ;;  %15219 = vst [vmem:[#allocation83_spill] sm:$0xff] %v11472_v32 }
 0x313   : > { %1464 = vbcast.lane.b32.xlu1 %v1446_v57, 288  ;;  %1824 = vbcast.lane.b32.xlu0 %v11331_v62, 272 }
 0x315   : > { %v11477_v51 = vpop.permute.xlu1 %1345  ;;  %v11479_v26 = vpop.permute.xlu0 %1686 }
 0x316   : > { %15220 = vst [vmem:[#allocation84_spill] sm:$0xff] %v11477_v51  ;;  %15221 = vst [vmem:[#allocation85_spill] sm:$0xff] %v11479_v26 }
 0x317   : > { %2046 = vbcast.lane.b32.xlu1 %v2044_v45, 256  ;;  %1828 = vbcast.lane.b32.xlu0 %v11331_v62, 280  ;;  %v11498_v62 = vrot.slane %v11245_v23, %v10988_v31 }
 0x319   : > { %v11482_v7 = vpop.permute.xlu1 %1349  ;;  %v11484_v33 = vpop.permute.xlu0 %1690 }
 0x31a   : > { %15222 = vst [vmem:[#allocation86_spill] sm:$0xff] %v11482_v7  ;;  %15223 = vst [vmem:[#allocation87_spill] sm:$0xff] %v11484_v33 }
 0x31b   : > { %2054 = vbcast.lane.b32.xlu1 %v2044_v45, 272  ;;  %1839 = vbcast.lane.b32.xlu0 %v11347_v58, 256 }
 0x31d   : > { %v11487_v19 = vpop.permute.xlu1 %1360  ;;  %v11489_v32 = vpop.permute.xlu0 %1701 }
 0x31e   : > { %15224 = vst [vmem:[#allocation88_spill] sm:$0xff] %v11487_v19  ;;  %15225 = vst [vmem:[#allocation89_spill] sm:$0xff] %v11489_v32  ;;  %v2067_v32 = vrot.slane %v11245_v23, %v10992_v36 }
 0x31f   : > { %2062 = vbcast.lane.b32.xlu1 %v2044_v45, 288  ;;  %1847 = vbcast.lane.b32.xlu0 %v11347_v58, 272 }
 0x321   : > { %v11492_v51 = vpop.permute.xlu1 %1364  ;;  %v11494_v26 = vpop.permute.xlu0 %1709 }
 0x322   : > { %15226 = vst [vmem:[#allocation90_spill] sm:$0xff] %v11492_v51  ;;  %15227 = vst [vmem:[#allocation91_spill] sm:$0xff] %v11494_v26 }
 0x323   : > { %2027 = vbcast.lane.b32.xlu1 %v11498_v62, 264  ;;  %1851 = vbcast.lane.b32.xlu0 %v11347_v58, 280 }
 0x325   : > { %v11502_v7 = vpop.permute.xlu1 %1368  ;;  %v11504_v19 = vpop.permute.xlu0 %1713 }
 0x326   : > { %15228 = vst [vmem:[#allocation92_spill] sm:$0xff] %v11502_v7  ;;  %15229 = vst [vmem:[#allocation93_spill] sm:$0xff] %v11504_v19 }
 0x327   : > { %2073 = vbcast.lane.b32.xlu1 %v2067_v32, 264  ;;  %1862 = vbcast.lane.b32.xlu0 %v11363_v47, 256 }
 0x329   : > { %v11509_v51 = vpop.permute.xlu1 %1372  ;;  %v11511_v26 = vpop.permute.xlu0 %1724 }
 0x32a   : > { %15230 = vst [vmem:[#allocation94_spill] sm:$0xff] %v11509_v51  ;;  %15231 = vst [vmem:[#allocation95_spill] sm:$0xff] %v11511_v26  ;;  %v11527_v51 = vld [vmem:[%s14811_s3 + $0x10] sm:$0xff] }
 0x32b   : > { %2077 = vbcast.lane.b32.xlu1 %v2067_v32, 272  ;;  %1870 = vbcast.lane.b32.xlu0 %v11363_v47, 272 }
 0x32c   : > { %9756 = vmatprep.subr.msk.mxu0 %vm3066_vm2, %v11527_v51 }
 0x32d   : > { %v11514_v33 = vpop.permute.xlu0 %1732  ;;  %v11516_v58 = vpop.permute.xlu1 %1797  ;;  %9757 = vmatpush3.msk.msra.mxu0 %vm3066_vm2, %v11527_v51 }
 0x32e   : > { %15232 = vst [vmem:[#allocation96_spill] sm:$0xff] %v11514_v33  ;;  %15233 = vst [vmem:[#allocation97_spill] sm:$0xff] %v11516_v58 }
 0x32f   : > { %2081 = vbcast.lane.b32.xlu1 %v2067_v32, 280  ;;  %1379 = vbcast.lane.b32.xlu0 %v11369_v2, 256  ;;  %v2090_v2 = vrot.slane %v11245_v23, %v11003_v46 }
 0x331   : > { %v11519_v7 = vpop.permute.xlu0 %1736  ;;  %v11521_v19 = vpop.permute.xlu1 %1809 }
 0x332   : > { %15234 = vst [vmem:[#allocation98_spill] sm:$0xff] %v11519_v7  ;;  %15235 = vst [vmem:[#allocation99_spill] sm:$0xff] %v11521_v19 }
 0x333   : > { %2085 = vbcast.lane.b32.xlu1 %v2067_v32, 288  ;;  %1402 = vbcast.lane.b32.xlu0 %v11401_v29, 256 }
 0x335   : > { %v11531_v58 = vpop.permute.xlu0 %1747  ;;  %v11533_v26 = vpop.permute.xlu1 %1820 }
 0x336   : > { %15236 = vst [vmem:[#allocation100_spill] sm:$0xff] %v11531_v58  ;;  %15237 = vst [vmem:[#allocation101_spill] sm:$0xff] %v11533_v26 }
 0x337   : > { %2092 = vbcast.lane.b32.xlu1 %v2090_v2, 256  ;;  %1425 = vbcast.lane.b32.xlu0 %v11431_v42, 256  ;;  %v11557_v42 = vld [vmem:[%s14811_s3] sm:$0xff] }
 0x338   : > { %15244 = vst [vmem:[#allocation108_spill] sm:$0xff] %v11557_v42 }
 0x339   : > { %v11540_v29 = vpop.permute.xlu0 %1755  ;;  %v11542_v19 = vpop.permute.xlu1 %1832 }
 0x33a   : > { %15238 = vst [vmem:[#allocation102_spill] sm:$0xff] %v11540_v29  ;;  %15239 = vst [vmem:[#allocation103_spill] sm:$0xff] %v11542_v19  ;;  %v2159_v29 = vrot.slane %v11245_v23, %v11012_v52  ;;  %v2182_v52 = vrot.slane %v11245_v23, %v11015_v54 }
 0x33b   : > { %2100 = vbcast.lane.b32.xlu1 %v2090_v2, 272  ;;  %1448 = vbcast.lane.b32.xlu0 %v1446_v57, 256  ;;  %v2936_v57 = vrot.slane %v11557_v42, 4 }
 0x33d   : > { %v11544_v7 = vpop.permute.xlu0 %1759  ;;  %v11546_v58 = vpop.permute.xlu1 %1843  ;;  %9364 = vmatprep.subr.msk.mxu1 %vm3066_vm2, %v2936_v57 }
 0x33e   : > { %15240 = vst [vmem:[#allocation104_spill] sm:$0xff] %v11544_v7  ;;  %15241 = vst [vmem:[#allocation105_spill] sm:$0xff] %v11546_v58  ;;  %9365 = vmatpush3.msk.msra.mxu1 %vm3066_vm2, %v2936_v57 }
 0x33f   : > { %2108 = vbcast.lane.b32.xlu1 %v2090_v2, 288  ;;  %2050 = vbcast.lane.b32.xlu0 %v2044_v45, 264 }
 0x340   : > { %9462 = vmatprep.subr.msk.mxu1 %vm3066_vm2, %v11557_v42 }
 0x341   : > { %v11548_v26 = vpop.permute.xlu0 %1770  ;;  %v11550_v33 = vpop.permute.xlu1 %1855 }
 0x342   : > { %15242 = vst [vmem:[#allocation106_spill] sm:$0xff] %v11548_v26  ;;  %15243 = vst [vmem:[#allocation107_spill] sm:$0xff] %v11550_v33 }
 0x343   : > { %2115 = vbcast.lane.b32.xlu1 %v2113_v27, 256  ;;  %2058 = vbcast.lane.b32.xlu0 %v2044_v45, 280 }
 0x345   : > { %v11560_v19 = vpop.permute.xlu0 %1778  ;;  %v11562_v58 = vpop.permute.xlu1 %1866 }
 0x346   : > { %15245 = vst [vmem:[#allocation109_spill] sm:$0xff] %v11560_v19  ;;  %15246 = vst [vmem:[#allocation110_spill] sm:$0xff] %v11562_v58  ;;  %v2136_v58 = vrot.slane %v11245_v23, %v11009_v50 }
 0x347   : > { %2123 = vbcast.lane.b32.xlu1 %v2113_v27, 272  ;;  %2023 = vbcast.lane.b32.xlu0 %v11498_v62, 256 }
 0x349   : > { %v11569_v33 = vpop.permute.xlu0 %1782  ;;  %v11571_v26 = vpop.permute.xlu1 %1383 }
 0x34a   : > { %15247 = vst [vmem:[#allocation111_spill] sm:$0xff] %v11569_v33  ;;  %15248 = vst [vmem:[#allocation112_spill] sm:$0xff] %v11571_v26 }
 0x34b   : > { %2131 = vbcast.lane.b32.xlu1 %v2113_v27, 288  ;;  %2069 = vbcast.lane.b32.xlu0 %v2067_v32, 256 }
 0x34d   : > { %v11573_v45 = vpop.permute.xlu0 %1195  ;;  %v11575_v19 = vpop.permute.xlu1 %1387 }
 0x34e   : > { %15249 = vst [vmem:[#allocation113_spill] sm:$0xff] %v11575_v19 }
 0x34f   : > { %2138 = vbcast.lane.b32.xlu1 %v2136_v58, 256  ;;  %2031 = vbcast.lane.b32.xlu0 %v11498_v62, 272 }
 0x351   : > { %v11580_v57 = vpop.permute.xlu0 %1241  ;;  %v11582_v7 = vpop.permute.xlu1 %1391 }
 0x352   : > { %15250 = vst [vmem:[#allocation114_spill] sm:$0xff] %v11582_v7 }
 0x353   : > { %2146 = vbcast.lane.b32.xlu1 %v2136_v58, 272  ;;  %2035 = vbcast.lane.b32.xlu0 %v11498_v62, 280 }
 0x355   : > { %v11585_v26 = vpop.permute.xlu0 %1203  ;;  %v11587_v32 = vpop.permute.xlu1 %1395 }
 0x356   : > { %15251 = vst [vmem:[#allocation115_spill] sm:$0xff] %v11587_v32 }
 0x357   : > { %2154 = vbcast.lane.b32.xlu1 %v2136_v58, 288  ;;  %2039 = vbcast.lane.b32.xlu0 %v11498_v62, 288 }
 0x359   : > { %v11590_v19 = vpop.permute.xlu0 %1207  ;;  %v11592_v33 = vpop.permute.xlu1 %1406 }
 0x35a   : > { %15252 = vst [vmem:[#allocation116_spill] sm:$0xff] %v11592_v33 }
 0x35b   : > { %2161 = vbcast.lane.b32.xlu1 %v2159_v29, 256  ;;  %2096 = vbcast.lane.b32.xlu0 %v2090_v2, 264 }
 0x35d   : > { %v11596_v7 = vpop.permute.xlu0 %1211  ;;  %v11598_v50 = vpop.permute.xlu1 %1410 }
 0x35e   : > { %15253 = vst [vmem:[#allocation117_spill] sm:$0xff] %v11596_v7  ;;  %15254 = vst [vmem:[#allocation118_spill] sm:$0xff] %v11598_v50 }
 0x35f   : > { %2169 = vbcast.lane.b32.xlu1 %v2159_v29, 272  ;;  %2104 = vbcast.lane.b32.xlu0 %v2090_v2, 280 }
 0x361   : > { %v11600_v42 = vpop.permute.xlu0 %1264  ;;  %v11602_v32 = vpop.permute.xlu1 %1414 }
 0x362   : > { %15255 = vst [vmem:[#allocation119_spill] sm:$0xff] %v11602_v32 }
 0x363   : > { %2177 = vbcast.lane.b32.xlu1 %v2159_v29, 288  ;;  %2119 = vbcast.lane.b32.xlu0 %v2113_v27, 264 }
 0x365   : > { %v11604_v62 = vpop.permute.xlu0 %1287  ;;  %v11606_v33 = vpop.permute.xlu1 %1418 }
 0x366   : > { %15256 = vst [vmem:[#allocation120_spill] sm:$0xff] %v11604_v62  ;;  %15257 = vst [vmem:[#allocation121_spill] sm:$0xff] %v11606_v33  ;;  %v2205_v33 = vrot.slane %v11417_v35, %v10988_v31 }
 0x367   : > { %2184 = vbcast.lane.b32.xlu1 %v2182_v52, 256  ;;  %2127 = vbcast.lane.b32.xlu0 %v2113_v27, 280 }
 0x369   : > { %v11610_v7 = vpop.permute.xlu0 %1310  ;;  %v11612_v50 = vpop.permute.xlu1 %1429 }
 0x36a   : > { %15258 = vst [vmem:[#allocation122_spill] sm:$0xff] %v11610_v7  ;;  %15259 = vst [vmem:[#allocation123_spill] sm:$0xff] %v11612_v50  ;;  %v2442_v7 = vsel %vm2432_vm3, %v11110_v15, %v11337_v0 }
 0x36b   : > { %2192 = vbcast.lane.b32.xlu1 %v2182_v52, 272  ;;  %2142 = vbcast.lane.b32.xlu0 %v2136_v58, 264 }
 0x36d   : > { %v11614_v2 = vpop.permute.xlu0 %1333  ;;  %v11616_v32 = vpop.permute.xlu1 %1433 }
 0x36e   : > { %15260 = vst [vmem:[#allocation124_spill] sm:$0xff] %v11614_v2  ;;  %15261 = vst [vmem:[#allocation125_spill] sm:$0xff] %v11616_v32  ;;  %v2440_v2 = vsel %vm2432_vm3, %v11100_v11, %v11321_v44 }
 0x36f   : > { %2200 = vbcast.lane.b32.xlu1 %v2182_v52, 288  ;;  %2150 = vbcast.lane.b32.xlu0 %v2136_v58, 280 }
 0x371   : > { %v11620_v62 = vpop.permute.xlu0 %1356  ;;  %v11622_v23 = vpop.permute.xlu1 %1437 }
 0x372   : > { %15262 = vst [vmem:[#allocation126_spill] sm:$0xff] %v11620_v62  ;;  %15263 = vst [vmem:[#allocation127_spill] sm:$0xff] %v11622_v23  ;;  %v2228_v23 = vrot.slane %v11417_v35, %v10986_v30  ;;  %v2438_v62 = vsel %vm2432_vm3, %v11083_v5, %v11305_v34 }
 0x373   : > { %2207 = vbcast.lane.b32.xlu1 %v2205_v33, 256  ;;  %2165 = vbcast.lane.b32.xlu0 %v2159_v29, 264 }
 0x375   : > { %v11624_v27 = vpop.permute.xlu1 %1441  ;;  %v11626_v54 = vpop.permute.xlu0 %1793 }
 0x376   : > { %15264 = vst [vmem:[#allocation128_spill] sm:$0xff] %v11624_v27  ;;  %15265 = vst [vmem:[#allocation129_spill] sm:$0xff] %v11626_v54 }
 0x377   : > { %2215 = vbcast.lane.b32.xlu1 %v2205_v33, 272  ;;  %2173 = vbcast.lane.b32.xlu0 %v2159_v29, 280  ;;  %v14829_v29 = vrot.slane %v11527_v51, 4 }
 0x379   : > { %v11628_v50 = vpop.permute.xlu1 %1452  ;;  %v11630_v32 = vpop.permute.xlu0 %1801  ;;  %9854 = vmatprep.subr.msk.mxu0 %vm3066_vm2, %v14829_v29 }
 0x37a   : > { %15266 = vst [vmem:[#allocation130_spill] sm:$0xff] %v11628_v50  ;;  %15267 = vst [vmem:[#allocation131_spill] sm:$0xff] %v11630_v32 }
 0x37b   : > { %2223 = vbcast.lane.b32.xlu1 %v2205_v33, 288  ;;  %2188 = vbcast.lane.b32.xlu0 %v2182_v52, 264 }
 0x37d   : > { %v11632_v58 = vpop.permute.xlu1 %1456  ;;  %v11634_v31 = vpop.permute.xlu0 %1805 }
 0x37e   : > { %15268 = vst [vmem:[#allocation132_spill] sm:$0xff] %v11632_v58  ;;  %15269 = vst [vmem:[#allocation133_spill] sm:$0xff] %v11634_v31 }
 0x37f   : > { %2230 = vbcast.lane.b32.xlu1 %v2228_v23, 256  ;;  %2196 = vbcast.lane.b32.xlu0 %v2182_v52, 280 }
 0x381   : > { %v11638_v27 = vpop.permute.xlu1 %1460  ;;  %v11640_v54 = vpop.permute.xlu0 %1816 }
 0x382   : > { %15270 = vst [vmem:[#allocation134_spill] sm:$0xff] %v11638_v27  ;;  %15271 = vst [vmem:[#allocation135_spill] sm:$0xff] %v11640_v54  ;;  %v2251_v27 = vrot.slane %v11417_v35, %v10992_v36 }
 0x383   : > { %2238 = vbcast.lane.b32.xlu1 %v2228_v23, 272  ;;  %2211 = vbcast.lane.b32.xlu0 %v2205_v33, 264 }
 0x385   : > { %v11643_v50 = vpop.permute.xlu1 %1464  ;;  %v11645_v32 = vpop.permute.xlu0 %1824 }
 0x386   : > { %15272 = vst [vmem:[#allocation136_spill] sm:$0xff] %v11643_v50  ;;  %15273 = vst [vmem:[#allocation137_spill] sm:$0xff] %v11645_v32 }
 0x387   : > { %2246 = vbcast.lane.b32.xlu1 %v2228_v23, 288  ;;  %2219 = vbcast.lane.b32.xlu0 %v2205_v33, 280 }
 0x389   : > { %v2047_v30 = vpop.permute.xlu1 %2046  ;;  %v11650_v52 = vpop.permute.xlu0 %1828 }
 0x38a   : > { %15274 = vst [vmem:[#allocation138_spill] sm:$0xff] %v11650_v52  ;;  %v2274_v52 = vrot.slane %v11417_v35, %v11003_v46 }
 0x38b   : > { %2253 = vbcast.lane.b32.xlu1 %v2251_v27, 256  ;;  %2234 = vbcast.lane.b32.xlu0 %v2228_v23, 264 }
 0x38d   : > { %v2055_v58 = vpop.permute.xlu1 %2054  ;;  %v11654_v54 = vpop.permute.xlu0 %1839 }
 0x38e   : > { %15275 = vst [vmem:[#allocation139_spill] sm:$0xff] %v11654_v54 }
 0x38f   : > { %2261 = vbcast.lane.b32.xlu1 %v2251_v27, 272  ;;  %2242 = vbcast.lane.b32.xlu0 %v2228_v23, 280 }
 0x391   : > { %v2063_v50 = vpop.permute.xlu1 %2062  ;;  %v11656_v32 = vpop.permute.xlu0 %1847 }
 0x392   : > { %15276 = vst [vmem:[#allocation140_spill] sm:$0xff] %v11656_v32 }
 0x393   : > { %2269 = vbcast.lane.b32.xlu1 %v2251_v27, 288  ;;  %2257 = vbcast.lane.b32.xlu0 %v2251_v27, 264 }
 0x395   : > { %v11658_v29 = vpop.permute.xlu1 %2027  ;;  %v11660_v33 = vpop.permute.xlu0 %1851 }
 0x396   : > { %15277 = vst [vmem:[#allocation141_spill] sm:$0xff] %v11660_v33 }
 0x397   : > { %2276 = vbcast.lane.b32.xlu1 %v2274_v52, 256  ;;  %2265 = vbcast.lane.b32.xlu0 %v2251_v27, 280 }
 0x399   : > { %v11664_v36 = vpop.permute.xlu1 %2073  ;;  %v11666_v31 = vpop.permute.xlu0 %1862 }
 0x39a   : > { %15278 = vst [vmem:[#allocation142_spill] sm:$0xff] %v11666_v31  ;;  %v11684_v31 = vrot.slane %v10994_v37, %v11006_v48 }
 0x39b   : > { %2284 = vbcast.lane.b32.xlu1 %v2274_v52, 272  ;;  %2280 = vbcast.lane.b32.xlu0 %v2274_v52, 264 }
 0x39d   : > { %v11668_v23 = vpop.permute.xlu1 %2077  ;;  %v11670_v32 = vpop.permute.xlu0 %1870 }
 0x39e   : > { %15279 = vst [vmem:[#allocation143_spill] sm:$0xff] %v11670_v32 }
 0x39f   : > { %1878 = vbcast.lane.b32.xlu1 %v11363_v47, 288  ;;  %1874 = vbcast.lane.b32.xlu0 %v11363_v47, 280 }
 0x3a1   : > { %v11674_v33 = vpop.permute.xlu1 %2081  ;;  %v11676_v54 = vpop.permute.xlu0 %1379 }
 0x3a2   : > { %15280 = vst [vmem:[#allocation144_spill] sm:$0xff] %v11676_v54  ;;  %v11694_v54 = vrot.slane %v11125_v21, %v11006_v48  ;;  %v2531_v21 = vsel %vm2523_vm5, %v2440_v2, %v11425_v25 }
 0x3a3   : > { %2292 = vbcast.lane.b32.xlu1 %v2274_v52, 288  ;;  %2288 = vbcast.lane.b32.xlu0 %v2274_v52, 280 }
 0x3a5   : > { %v11678_v46 = vpop.permute.xlu1 %2085  ;;  %v11680_v27 = vpop.permute.xlu0 %1402 }
 0x3a6   : > { %15281 = vst [vmem:[#allocation145_spill] sm:$0xff] %v11680_v27 }
 0x3a7   : > { %1061 = vbcast.lane.b32.xlu1 %v11684_v31, 264  ;;  %1057 = vbcast.lane.b32.xlu0 %v11684_v31, 256 }
 0x3a9   : > { %v11688_v32 = vpop.permute.xlu1 %2092  ;;  %v11690_v47 = vpop.permute.xlu0 %1425 }
 0x3aa   : > { %15282 = vst [vmem:[#allocation146_spill] sm:$0xff] %v11690_v47  ;;  %v2439_v47 = vsel %vm2432_vm3, %v11092_v8, %v11315_v63  ;;  %v11724_v8 = vsel %vm2614_vm4, %v2531_v21, %v2055_v58  ;;  %v2533_v63 = vsel %vm2523_vm5, %v2442_v7, %v11189_v53  ;;  %v2434_v53 = vsel %vm2432_vm3, %v11085_v6, %v11343_v61 }
 0x3ab   : > { %1475 = vbcast.lane.b32.xlu1 %v11694_v54, 264  ;;  %1471 = vbcast.lane.b32.xlu0 %v11694_v54, 256  ;;  %15285 = vst [vmem:[#allocation149_spill] sm:$0xff] %v11724_v8  ;;  %v2530_v15 = vsel %vm2523_vm5, %v2439_v47, %v11183_v49  ;;  %v2803_v21 = vrot.slane %v11724_v8, 1  ;;  %v2441_v49 = vsel %vm2432_vm3, %v11105_v13, %v11327_v55 }
 0x3ac   : > { %v11751_v7 = vsel %vm2614_vm4, %v2533_v63, %v2063_v50  ;;  %v2532_v25 = vsel %vm2523_vm5, %v2441_v49, %v11435_v17  ;;  %v11762_v13 = vrot.slane %v11417_v35, %v11006_v48  ;;  %v2433_v50 = vsel %vm2432_vm3, %v11117_v18, %v11573_v45 }
 0x3ad   : > { %v11698_v52 = vpop.permute.xlu1 %2100  ;;  %v11700_v27 = vpop.permute.xlu0 %1448  ;;  %v2807_v61 = vrot.slane %v11751_v7, 1  ;;  %v2525_v17 = vsel %vm2523_vm5, %v2434_v53, %v11195_v56  ;;  %v2444_v18 = vsel %vm2432_vm3, %v11094_v9, %v11353_v10  ;;  %v2445_v45 = vsel %vm2432_vm3, %v11102_v12, %v11359_v1 }
 0x3ae   : > { %15283 = vst [vmem:[#allocation147_spill] sm:$0xff] %v11700_v27  ;;  %v2529_v27 = vsel %vm2523_vm5, %v2438_v62, %v11419_v43  ;;  %v11732_v43 = vrot.slane %v11081_v3, %v11006_v48  ;;  %v2446_v56 = vsel %vm2432_vm3, %v11107_v14, %v11373_v39  ;;  %v2524_v9 = vsel %vm2523_vm5, %v2433_v50, %v11443_v28 }
 0x3af   : > { %1479 = vbcast.lane.b32.xlu1 %v11694_v54, 272  ;;  %1065 = vbcast.lane.b32.xlu0 %v11684_v31, 272  ;;  %v11721_v5 = vsel %vm2614_vm4, %v2529_v27, %v2047_v30  ;;  %v11789_v27 = vsel %vm2614_vm4, %v2525_v17, %v11658_v29  ;;  %v15289_v1 = vrot.slane %v11527_v51, 4  ;;  %v2443_v14 = vsel %vm2432_vm3, %v11122_v20, %v11580_v57 }
 0x3b0   : > { %15284 = vst [vmem:[#allocation148_spill] sm:$0xff] %v11721_v5  ;;  %v2800_v30 = vrot.slane %v11721_v5, 1  ;;  %15288 = vst [vmem:[#allocation152_spill] sm:$0xff] %v11789_v27  ;;  %v2792_v28 = vrot.slane %v11789_v27, 1  ;;  %v2535_v29 = vsel %vm2523_vm5, %v2444_v18, %v11205_v4  ;;  %v2536_v51 = vsel %vm2523_vm5, %v2445_v45, %v11211_v22  ;;  %v15300_v18 = vld [vmem:[#allocation79_spill] sm:$0xff] }
 0x3b1   : > { %v11726_v11 = vpop.permute.xlu1 %2108  ;;  %v2051_v34 = vpop.permute.xlu0 %2050  ;;  %v2447_v20 = vsel %vm2432_vm3, %v11112_v16, %v11379_v41  ;;  %v11830_v57 = vsel %vm2614_vm4, %v2535_v29, %v11664_v36  ;;  %v11834_v4 = vsel %vm2614_vm4, %v2536_v51, %v11668_v23  ;;  %v2537_v22 = vsel %vm2523_vm5, %v2446_v56, %v11217_v59  ;;  %v15301_v56 = vld [vmem:[#allocation117_spill] sm:$0xff] }
 0x3b2   : > { %v11737_v44 = vsel %vm2614_vm4, %v2530_v15, %v2051_v34  ;;  %15291 = vst [vmem:[#allocation154_spill] sm:$0xff] %v11830_v57  ;;  %15292 = vst [vmem:[#allocation155_spill] sm:$0xff] %v11834_v4  ;;  %v11842_v63 = vsel %vm2614_vm4, %v2537_v22, %v11674_v33  ;;  %v2534_v41 = vsel %vm2523_vm5, %v2443_v14, %v11449_v38  ;;  %v15307_v22 = vld [vmem:[#allocation81_spill] sm:$0xff] }
 0x3b3   : > { %15286 = vst [vmem:[#allocation150_spill] sm:$0xff] %v11737_v44  ;;  %v2801_v0 = vrot.slane %v11737_v44, 1  ;;  %1889 = vbcast.lane.b32.xlu1 %v11732_v43, 264  ;;  %1885 = vbcast.lane.b32.xlu0 %v11732_v43, 256  ;;  %15293 = vst [vmem:[#allocation156_spill] sm:$0xff] %v11842_v63  ;;  %v2435_v23 = vsel %vm2432_vm3, %v11129_v24, %v11585_v26  ;;  %v2538_v33 = vsel %vm2523_vm5, %v2447_v20, %v11223_v40 }
 0x3b4   : > { %v11865_v24 = vsel %vm2614_vm4, %v2538_v33, %v11678_v46  ;;  %v2814_v26 = vrot.slane %v11842_v63, 1  ;;  %v2526_v40 = vsel %vm2523_vm5, %v2435_v23, %v11455_v60  ;;  %v15309_v23 = vld [vmem:[#allocation8_spill] sm:$0xff] }
 0x3b5   : > { %v11755_v62 = vpop.permute.xlu1 %2115  ;;  %v2059_v2 = vpop.permute.xlu0 %2058  ;;  %v11758_v58 = vsel %vm2790_vm7, %v2800_v30, %v2801_v0  ;;  %v11765_v55 = vsel %vm2790_vm7, %v2801_v0, %v2803_v21  ;;  %v2812_v0 = vrot.slane %v11834_v4, 1  ;;  %v2816_v46 = vrot.slane %v11865_v24, 1 }
 0x3b6   : > { %v11771_v6 = vsel %vm2614_vm4, %v2532_v25, %v2059_v2  ;;  %9758 = vmatprep.mubr.msk.f32.mxu0 %vm2937_vm6, %v11758_v58  ;;  %v15296_v2 = vld [vmem:[#allocation13_spill] sm:$0xff] }
 0x3b7   : > { %15287 = vst [vmem:[#allocation151_spill] sm:$0xff] %v11771_v6  ;;  %v2805_v48 = vrot.slane %v11771_v6, 1  ;;  %2299 = vbcast.lane.b32.xlu1 %v11762_v13, 256  ;;  %1893 = vbcast.lane.b32.xlu0 %v11732_v43, 272  ;;  %v2436_v50 = vsel %vm2432_vm3, %v15296_v2, %v11590_v19  ;;  %v11893_v19 = vsel %vm2790_vm7, %v2812_v0, %v2814_v26 }
 0x3b8   : > { %9759 = vmatmul.mubr.msk.f32.vlgmr.msra.gmra.mrb[14].mxu0 %vm2937_vm6, %v11765_v55  ;;  %15299 = vst [vmem:[#allocation160_spill] sm:$0xff] %v11893_v19  ;;  %v2527_v45 = vsel %vm2523_vm5, %v2436_v50, %v15300_v18  ;;  %v11913_v29 = vsel %vm2790_vm7, %v2814_v26, %v2816_v46  ;;  %v15313_v26 = vld [vmem:[#allocation85_spill] sm:$0xff] }
 0x3b9   : > { %v11796_v47 = vpop.permute.xlu1 %2123  ;;  %v2024_v10 = vpop.permute.xlu0 %2023  ;;  %v11801_v15 = vsel %vm2790_vm7, %v2803_v21, %v2805_v48  ;;  %v11804_v12 = vsel %vm2790_vm7, %v2805_v48, %v2807_v61  ;;  %9855 = vmatpush3.msk.msra.mxu0 %vm3066_vm2, %v15289_v1  ;;  %v2810_v21 = vrot.slane %v11830_v57, 1  ;;  %15304 = vst [vmem:[#allocation117_spill] sm:$0xff] %v11913_v29  ;;  %v15315_v46 = vld [vmem:[#allocation69_spill] sm:$0xff] }
 0x3ba   : > { %v11813_v39 = vsel %vm2614_vm4, %v2524_v9, %v2024_v10  ;;  %9761 = vmatprep.mubr.msk.f32.mxu0 %vm2937_vm6, %v11801_v15  ;;  %v15302_v9 = vld [vmem:[#allocation15_spill] sm:$0xff] }
 0x3bb   : > { %15290 = vst [vmem:[#allocation153_spill] sm:$0xff] %v11813_v39  ;;  %v2791_v34 = vrot.slane %v11813_v39, 1  ;;  %2307 = vbcast.lane.b32.xlu1 %v11762_v13, 272  ;;  %2303 = vbcast.lane.b32.xlu0 %v11762_v13, 264  ;;  %v11888_v60 = vsel %vm2790_vm7, %v2810_v21, %v2812_v0  ;;  %v2437_v10 = vsel %vm2432_vm3, %v15302_v9, %v15301_v56  ;;  %v15317_v56 = vld [vmem:[#allocation32_spill] sm:$0xff] }
 0x3bc   : > { %9762 = vmatmul.mubr.msk.f32.gmra.mrb[16].mxu0 %vm2937_vm6, %v11804_v12  ;;  %15298 = vst [vmem:[#allocation159_spill] sm:$0xff] %v11888_v60 }
 0x3bd   : > { %v11844_v30 = vpop.permute.xlu1 %2131  ;;  %v2070_v16 = vpop.permute.xlu0 %2069  ;;  %v2793_v36 = vsel %vm2790_vm7, %v2791_v34, %v2792_v28  ;;  %v15306_v34 = vld [vmem:[#allocation108_spill] sm:$0xff] }
 0x3be   : > { %v11853_v59 = vsel %vm2614_vm4, %v2534_v41, %v2070_v16  ;;  %9366 = vmatprep.mubr.msk.f32.mxu1 %vm2937_vm6, %v2793_v36  ;;  %v2528_v41 = vsel %vm2523_vm5, %v2437_v10, %v15307_v22  ;;  %v15308_v36 = vld [vmem:[#allocation63_spill] sm:$0xff] }
 0x3bf   : > { %15294 = vst [vmem:[#allocation157_spill] sm:$0xff] %v11853_v59  ;;  %1483 = vbcast.lane.b32.xlu1 %v11694_v54, 280  ;;  %1069 = vbcast.lane.b32.xlu0 %v11684_v31, 280  ;;  %v2809_v38 = vrot.slane %v11853_v59, 1  ;;  %v2449_v33 = vsel %vm2432_vm3, %v15309_v23, %v15308_v36  ;;  %v15323_v23 = vld [vmem:[#allocation120_spill] sm:$0xff] }
 0x3c0   : > { %v2540_v9 = vsel %vm2523_vm5, %v2449_v33, %v15317_v56  ;;  %v15324_v33 = vld [vmem:[#allocation24_spill] sm:$0xff] }
 0x3c1   : > { %v11868_v49 = vpop.permute.xlu1 %2138  ;;  %v2032_v53 = vpop.permute.xlu0 %2031  ;;  %v11873_v25 = vsel %vm2790_vm7, %v2809_v38, %v2810_v21  ;;  %v15310_v38 = vld [vmem:[#allocation65_spill] sm:$0xff] }
 0x3c2   : > { %15295 = vst [vmem:[#allocation158_spill] sm:$0xff] %v11873_v25  ;;  %v11879_v61 = vsel %vm2614_vm4, %v2526_v40, %v2032_v53  ;;  %9764 = vmatprep.mubr.msk.f32.mxu0 %vm2937_vm6, %v11873_v25  ;;  %v15314_v53 = vld [vmem:[#allocation83_spill] sm:$0xff] }
 0x3c3   : > { %15297 = vst [vmem:[#allocation13_spill] sm:$0xff] %v11879_v61  ;;  %v2794_v17 = vrot.slane %v11879_v61, 1  ;;  %1487 = vbcast.lane.b32.xlu1 %v11694_v54, 288  ;;  %1073 = vbcast.lane.b32.xlu0 %v11684_v31, 288  ;;  %v15372_v61 = vld [vmem:[#allocation36_spill] sm:$0xff] }
 0x3c4   : > { %9765 = vmatmul.mubr.msk.f32.gmra.mrb[18].mxu0 %vm2937_vm6, %v11888_v60 }
 0x3c5   : > { %9767 = vmatprep.mubr.msk.f32.mxu0 %vm2937_vm6, %v11893_v19  ;;  %v11897_v48 = vpop.permute.xlu1 %2146  ;;  %v2036_v54 = vpop.permute.xlu0 %2035  ;;  %v2795_v31 = vsel %vm2790_vm7, %v2792_v28, %v2794_v17  ;;  %v15305_v28 = vld [vmem:[#allocation16_spill] sm:$0xff] }
 0x3c6   : > { %v11906_v1 = vsel %vm2614_vm4, %v2527_v45, %v2036_v54  ;;  %9367 = vmatmul.mubr.msk.f32.vlgmr.msra.gmra.mrb[18].mxu1 %vm2937_vm6, %v2795_v31  ;;  %v2448_v51 = vsel %vm2432_vm3, %v15305_v28, %v11600_v42  ;;  %v15311_v42 = vld [vmem:[#allocation18_spill] sm:$0xff]  ;;  %v15318_v28 = vld [vmem:[#allocation5_spill] sm:$0xff] }
 0x3c7   : > { %15303 = vst [vmem:[#allocation79_spill] sm:$0xff] %v11906_v1  ;;  %v2796_v14 = vrot.slane %v11906_v1, 1  ;;  %1901 = vbcast.lane.b32.xlu1 %v11732_v43, 288  ;;  %1897 = vbcast.lane.b32.xlu0 %v11732_v43, 280  ;;  %v2450_v21 = vsel %vm2432_vm3, %v15311_v42, %v15310_v38  ;;  %v2539_v2 = vsel %vm2523_vm5, %v2448_v51, %v15314_v53 }
 0x3c8   : > { %9768 = vmatmul.mubr.msk.f32.gmra.mrb[20].mxu0 %vm2937_vm6, %v11913_v29  ;;  %9463 = vmatpush3.msk.msra.mxu1 %vm3066_vm2, %v15306_v34  ;;  %v2541_v40 = vsel %vm2523_vm5, %v2450_v21, %v15313_v26  ;;  %v11949_v45 = vsel %vm2614_vm4, %v2539_v2, %v11688_v32  ;;  %v11962_v51 = vrot.slane %v10994_v37, %v15318_v28  ;;  %v15320_v32 = vld [vmem:[#allocation35_spill] sm:$0xff]  ;;  %v11987_v21 = vpop.f32.mrb[12].mxu0 }
 0x3c9   : > { %v11922_v20 = vpop.permute.xlu1 %2154  ;;  %v2040_v16 = vpop.permute.xlu0 %2039  ;;  %v2797_v43 = vsel %vm2790_vm7, %v2794_v17, %v2796_v14  ;;  %v15316_v17 = vld [vmem:[#allocation22_spill] sm:$0xff]  ;;  %v11953_v54 = vsel %vm2614_vm4, %v2541_v40, %v11698_v52  ;;  %v2818_v22 = vrot.slane %v11949_v45, 1  ;;  %v2453_v38 = vsel %vm2432_vm3, %v15324_v33, %v15323_v23  ;;  %15325 = vst [vmem:[#allocation108_spill] sm:$0xff] %v11987_v21  ;;  %v15326_v26 = vld [vmem:[#allocation87_spill] sm:$0xff] }
 0x3ca   : > { %v11934_v0 = vsel %vm2614_vm4, %v2528_v41, %v2040_v16  ;;  %9369 = vmatprep.mubr.msk.f32.mxu1 %vm2937_vm6, %v2797_v43  ;;  %v2452_v18 = vsel %vm2432_vm3, %v15316_v17, %v15315_v46  ;;  %v2821_v41 = vrot.slane %v11953_v54, 1  ;;  %v15321_v16 = vld [vmem:[#allocation67_spill] sm:$0xff]  ;;  %v15322_v43 = vld [vmem:[#allocation20_spill] sm:$0xff]  ;;  %v15328_v46 = vld [vmem:[#allocation10_spill] sm:$0xff] }
 0x3cb   : > { %15312 = vst [vmem:[#allocation15_spill] sm:$0xff] %v11934_v0  ;;  %v2798_v50 = vrot.slane %v11934_v0, 1  ;;  %2315 = vbcast.lane.b32.xlu1 %v11762_v13, 288  ;;  %2311 = vbcast.lane.b32.xlu0 %v11762_v13, 280  ;;  %v2543_v52 = vsel %vm2523_vm5, %v2452_v18, %v15320_v32  ;;  %v2451_v36 = vsel %vm2432_vm3, %v15322_v43, %v15321_v16  ;;  %v15330_v18 = vld [vmem:[#allocation71_spill] sm:$0xff]  ;;  %v15335_v43 = vld [vmem:[#allocation89_spill] sm:$0xff] }
 0x3cc   : > { %v11983_v42 = vsel %vm2614_vm4, %v2543_v52, %v11726_v11  ;;  %v2542_v40 = vsel %vm2523_vm5, %v2451_v36, %v15326_v26  ;;  %v11998_v17 = vrot.slane %v15328_v46, %v15318_v28  ;;  %v9350_v52 = vpop.f32.mrb[13].mxu0  ;;  %v2544_v36 = vsel %vm2523_vm5, %v2453_v38, %v15335_v43  ;;  %v15336_v33 = vld [vmem:[#allocation74_spill] sm:$0xff]  ;;  %v12039_v38 = vpop.f32.mrb[16].mxu1  ;;  %v15355_v0 = vld [vmem:[#allocation95_spill] sm:$0xff] }
 0x3cd   : > { %v11955_v31 = vpop.permute.xlu1 %2161  ;;  %v2097_v10 = vpop.permute.xlu0 %2096  ;;  %v2799_v13 = vsel %vm2790_vm7, %v2796_v14, %v2798_v50  ;;  %v2825_v16 = vrot.slane %v11983_v42, 1  ;;  %15338 = vst [vmem:[#allocation8_spill] sm:$0xff] %v12039_v38  ;;  %v15342_v52 = vld [vmem:[#allocation39_spill] sm:$0xff]  ;;  %v15344_v43 = vld [vmem:[#allocation26_spill] sm:$0xff] }
 0x3ce   : > { %v11965_v34 = vsel %vm2614_vm4, %v2540_v9, %v2097_v10  ;;  %9370 = vmatmul.mubr.msk.f32.gmra.mrb[20].mxu1 %vm2937_vm6, %v2799_v13  ;;  %v15332_v9 = vld [vmem:[#allocation72_spill] sm:$0xff]  ;;  %v15333_v10 = vld [vmem:[#allocation25_spill] sm:$0xff] }
 0x3cf   : > { %15319 = vst [vmem:[#allocation16_spill] sm:$0xff] %v11965_v34  ;;  %1084 = vbcast.lane.b32.xlu1 %v11962_v51, 264  ;;  %1080 = vbcast.lane.b32.xlu0 %v11962_v51, 256  ;;  %v2819_v14 = vrot.slane %v11965_v34, 1  ;;  %v2455_v13 = vsel %vm2432_vm3, %v15333_v10, %v15332_v9 }
 0x3d0   : > { %9372 = vmatprep.mubr.msk.f32.mxu1 %vm2937_vm6, %v11758_v58  ;;  %v15331_v58 = vld [vmem:[#allocation9_spill] sm:$0xff] }
 0x3d1   : > { %v11991_v53 = vpop.permute.xlu1 %2169  ;;  %v2105_v2 = vpop.permute.xlu0 %2104  ;;  %v11994_v50 = vsel %vm2790_vm7, %v2818_v22, %v2819_v14  ;;  %v12001_v11 = vsel %vm2790_vm7, %v2819_v14, %v2821_v41  ;;  %v2454_v56 = vsel %vm2432_vm3, %v15331_v58, %v15330_v18  ;;  %v15334_v22 = vld [vmem:[#allocation91_spill] sm:$0xff]  ;;  %v15339_v58 = vld [vmem:[#allocation37_spill] sm:$0xff] }
 0x3d2   : > { %15327 = vst [vmem:[#allocation81_spill] sm:$0xff] %v11994_v50  ;;  %15329 = vst [vmem:[#allocation63_spill] sm:$0xff] %v12001_v11  ;;  %v12010_v32 = vsel %vm2614_vm4, %v2542_v40, %v2105_v2  ;;  %9373 = vmatmul.mubr.msk.f32.gmra.mrb[22].mxu1 %vm2937_vm6, %v11765_v55  ;;  %9770 = vmatprep.mubr.msk.f32.mxu0 %vm2937_vm6, %v11994_v50  ;;  %v2546_v14 = vsel %vm2523_vm5, %v2455_v13, %v15334_v22  ;;  %v15337_v55 = vld [vmem:[#allocation27_spill] sm:$0xff] }
 0x3d3   : > { %1498 = vbcast.lane.b32.xlu1 %v11998_v17, 264  ;;  %1494 = vbcast.lane.b32.xlu0 %v11998_v17, 256  ;;  %v2823_v23 = vrot.slane %v12010_v32, 1  ;;  %v2457_v26 = vsel %vm2432_vm3, %v15337_v55, %v15336_v33  ;;  %v12029_v40 = vsel %vm2614_vm4, %v2544_v36, %v11755_v62  ;;  %v12033_v2 = vsel %vm2614_vm4, %v2546_v14, %v11796_v47  ;;  %v15345_v36 = vld [vmem:[#allocation122_spill] sm:$0xff] }
 0x3d4   : > { %9375 = vmatprep.mubr.msk.f32.mxu1 %vm2937_vm6, %v11801_v15  ;;  %9771 = vmatmul.mubr.msk.f32.gmra.mrb[22].mxu0 %vm2937_vm6, %v12001_v11  ;;  %v2545_v9 = vsel %vm2523_vm5, %v2454_v56, %v15339_v58  ;;  %v9363_v15 = vpop.f32.mrb[17].mxu1  ;;  %v2548_v56 = vsel %vm2523_vm5, %v2457_v26, %v15342_v52  ;;  %v2830_v14 = vrot.slane %v12033_v2, 1  ;;  %v15347_v26 = vld [vmem:[#allocation93_spill] sm:$0xff]  ;;  %v12088_v52 = vrot.slane %v11081_v3, %v15318_v28 }
 0x3d5   : > { %v12041_v18 = vpop.permute.xlu1 %2177  ;;  %v2120_v10 = vpop.permute.xlu0 %2119  ;;  %v12046_v62 = vsel %vm2790_vm7, %v2821_v41, %v2823_v23  ;;  %v12049_v47 = vsel %vm2790_vm7, %v2823_v23, %v2825_v16  ;;  %v2827_v41 = vrot.slane %v12029_v40, 1  ;;  %v15343_v16 = vld [vmem:[#allocation73_spill] sm:$0xff]  ;;  %v15346_v23 = vld [vmem:[#allocation28_spill] sm:$0xff]  ;;  %v12073_v55 = vsel %vm2614_vm4, %v2548_v56, %v11844_v30  ;;  %v15350_v56 = vld [vmem:[#allocation75_spill] sm:$0xff] }
 0x3d6   : > { %15340 = vst [vmem:[#allocation65_spill] sm:$0xff] %v12046_v62  ;;  %15341 = vst [vmem:[#allocation18_spill] sm:$0xff] %v12049_v47  ;;  %v12052_v13 = vsel %vm2614_vm4, %v2545_v9, %v2120_v10  ;;  %9376 = vmatmul.mubr.msk.f32.gmra.mrb[24].mxu1 %vm2937_vm6, %v11804_v12  ;;  %9773 = vmatprep.mubr.msk.f32.mxu0 %vm2937_vm6, %v12046_v62  ;;  %v2456_v12 = vsel %vm2432_vm3, %v15344_v43, %v15343_v16  ;;  %v15351_v16 = vld [vmem:[#allocation11_spill] sm:$0xff] }
 0x3d7   : > { %1502 = vbcast.lane.b32.xlu1 %v11998_v17, 272  ;;  %1088 = vbcast.lane.b32.xlu0 %v11962_v51, 272  ;;  %v2828_v22 = vrot.slane %v12052_v13, 1  ;;  %v2458_v33 = vsel %vm2432_vm3, %v15346_v23, %v15345_v36  ;;  %v2547_v58 = vsel %vm2523_vm5, %v2456_v12, %v15347_v26  ;;  %v2459_v43 = vsel %vm2432_vm3, %v15351_v16, %v15350_v56  ;;  %v15352_v36 = vld [vmem:[#allocation76_spill] sm:$0xff]  ;;  %v15353_v23 = vld [vmem:[#allocation29_spill] sm:$0xff]  ;;  %v15357_v16 = vld [vmem:[#allocation31_spill] sm:$0xff] }
 0x3d8   : > { %9378 = vmatprep.mubr.msk.f32.mxu1 %vm2937_vm6, %v11873_v25  ;;  %9774 = vmatmul.mubr.msk.f32.gmra.mrb[24].mxu0 %vm2937_vm6, %v12049_v47  ;;  %v2460_v12 = vsel %vm2432_vm3, %v15353_v23, %v15352_v36  ;;  %v2834_v25 = vrot.slane %v12073_v55, 1  ;;  %v2549_v56 = vsel %vm2523_vm5, %v2458_v33, %v15355_v0  ;;  %v15358_v33 = vld [vmem:[#allocation41_spill] sm:$0xff] }
 0x3d9   : > { %v12081_v9 = vpop.permute.xlu1 %2184  ;;  %v2128_v10 = vpop.permute.xlu0 %2127  ;;  %v12084_v15 = vsel %vm2790_vm7, %v2827_v41, %v2828_v22  ;;  %v12091_v30 = vsel %vm2790_vm7, %v2828_v22, %v2830_v14  ;;  %v15354_v41 = vld [vmem:[#allocation96_spill] sm:$0xff]  ;;  %v12119_v23 = vsel %vm2614_vm4, %v2549_v56, %v11868_v49  ;;  %v12138_v49 = vrot.slane %v11417_v35, %v15318_v28 }
 0x3da   : > { %15348 = vst [vmem:[#allocation85_spill] sm:$0xff] %v12084_v15  ;;  %15349 = vst [vmem:[#allocation83_spill] sm:$0xff] %v12091_v30  ;;  %v12100_v26 = vsel %vm2614_vm4, %v2547_v58, %v2128_v10  ;;  %9379 = vmatmul.mubr.msk.f32.gmra.mrb[26].mxu1 %vm2937_vm6, %v11888_v60  ;;  %9776 = vmatprep.mubr.msk.f32.mxu0 %vm2937_vm6, %v12084_v15  ;;  %v2551_v22 = vsel %vm2523_vm5, %v2460_v12, %v15354_v41  ;;  %v15356_v10 = vld [vmem:[#allocation78_spill] sm:$0xff]  ;;  %v2836_v28 = vrot.slane %v12119_v23, 1 }
 0x3db   : > { %1912 = vbcast.lane.b32.xlu1 %v12088_v52, 264  ;;  %1908 = vbcast.lane.b32.xlu0 %v12088_v52, 256  ;;  %v2832_v58 = vrot.slane %v12100_v26, 1  ;;  %v2462_v36 = vsel %vm2432_vm3, %v15357_v16, %v15356_v10  ;;  %v12123_v12 = vsel %vm2614_vm4, %v2551_v22, %v11897_v48  ;;  %v2550_v41 = vsel %vm2523_vm5, %v2459_v43, %v15358_v33  ;;  %v15361_v43 = vld [vmem:[#allocation43_spill] sm:$0xff]  ;;  %v15363_v33 = vld [vmem:[#allocation30_spill] sm:$0xff] }
 0x3dc   : > { %9381 = vmatprep.mubr.msk.f32.mxu1 %vm2937_vm6, %v11893_v19  ;;  %9777 = vmatmul.mubr.msk.f32.gmra.mrb[26].mxu0 %vm2937_vm6, %v12091_v30  ;;  %v2839_v56 = vrot.slane %v12123_v12, 1 }
 0x3dd   : > { %v12129_v0 = vpop.permute.xlu1 %2192  ;;  %v2143_v10 = vpop.permute.xlu0 %2142  ;;  %v12134_v16 = vsel %vm2790_vm7, %v2830_v14, %v2832_v58  ;;  %v12141_v48 = vsel %vm2790_vm7, %v2832_v58, %v2834_v25  ;;  %v2553_v14 = vsel %vm2523_vm5, %v2462_v36, %v15361_v43  ;;  %v15362_v58 = vld [vmem:[#allocation77_spill] sm:$0xff]  ;;  %v15366_v43 = vld [vmem:[#allocation98_spill] sm:$0xff] }
 0x3de   : > { %15359 = vst [vmem:[#allocation69_spill] sm:$0xff] %v12134_v16  ;;  %15360 = vst [vmem:[#allocation22_spill] sm:$0xff] %v12141_v48  ;;  %v12144_v22 = vsel %vm2614_vm4, %v2550_v41, %v2143_v10  ;;  %9382 = vmatmul.mubr.msk.f32.gmra.mrb[28].mxu1 %vm2937_vm6, %v11913_v29  ;;  %9779 = vmatprep.mubr.msk.f32.mxu0 %vm2937_vm6, %v12134_v16  ;;  %v2461_v41 = vsel %vm2432_vm3, %v15363_v33, %v15362_v58  ;;  %v15364_v10 = vld [vmem:[#allocation124_spill] sm:$0xff]  ;;  %v15365_v29 = vld [vmem:[#allocation34_spill] sm:$0xff] }
 0x3df   : > { %2322 = vbcast.lane.b32.xlu1 %v12138_v49, 256  ;;  %1916 = vbcast.lane.b32.xlu0 %v12088_v52, 272  ;;  %v2837_v25 = vrot.slane %v12144_v22, 1  ;;  %v2463_v19 = vsel %vm2432_vm3, %v15365_v29, %v15364_v10  ;;  %v12165_v36 = vsel %vm2614_vm4, %v2553_v14, %v11922_v20  ;;  %v2552_v60 = vsel %vm2523_vm5, %v2461_v41, %v15366_v43  ;;  %v15369_v20 = vld [vmem:[#allocation80_spill] sm:$0xff] }
 0x3e0   : > { %9384 = vmatprep.mubr.msk.f32.mxu1 %vm2937_vm6, %v11994_v50  ;;  %9780 = vmatmul.mubr.msk.f32.gmra.mrb[28].mxu0 %vm2937_vm6, %v12141_v48  ;;  %v15370_v14 = vld [vmem:[#allocation12_spill] sm:$0xff]  ;;  %v15371_v50 = vld [vmem:[#allocation82_spill] sm:$0xff]  ;;  %v2843_v41 = vrot.slane %v12165_v36, 1 }
 0x3e1   : > { %v12173_v1 = vpop.permute.xlu1 %2200  ;;  %v2151_v58 = vpop.permute.xlu0 %2150  ;;  %v12176_v33 = vsel %vm2790_vm7, %v2836_v28, %v2837_v25  ;;  %v12179_v29 = vsel %vm2790_vm7, %v2837_v25, %v2839_v56  ;;  %v2464_v10 = vsel %vm2432_vm3, %v15370_v14, %v15369_v20  ;;  %v2465_v27 = vsel %vm2432_vm3, %v15372_v61, %v15371_v50  ;;  %v15373_v28 = vld [vmem:[#allocation102_spill] sm:$0xff]  ;;  %v15374_v43 = vld [vmem:[#allocation100_spill] sm:$0xff] }
 0x3e2   : > { %15367 = vst [vmem:[#allocation32_spill] sm:$0xff] %v12176_v33  ;;  %15368 = vst [vmem:[#allocation5_spill] sm:$0xff] %v12179_v29  ;;  %v12188_v39 = vsel %vm2614_vm4, %v2552_v60, %v2151_v58  ;;  %9385 = vmatmul.mubr.msk.f32.gmra.mrb[30].mxu1 %vm2937_vm6, %v12001_v11  ;;  %9782 = vmatprep.mubr.msk.f32.mxu0 %vm2937_vm6, %v12176_v33  ;;  %v2556_v25 = vsel %vm2523_vm5, %v2465_v27, %v15373_v28  ;;  %v15375_v60 = vld [vmem:[#allocation86_spill] sm:$0xff]  ;;  %v15376_v50 = vld [vmem:[#allocation40_spill] sm:$0xff] }
 0x3e3   : > { %v2554_v20 = vsel %vm2523_vm5, %v2463_v19, %v15374_v43  ;;  %2330 = vbcast.lane.b32.xlu1 %v12138_v49, 272  ;;  %2326 = vbcast.lane.b32.xlu0 %v12138_v49, 264  ;;  %v2841_v61 = vrot.slane %v12188_v39, 1  ;;  %v2467_v58 = vsel %vm2432_vm3, %v15376_v50, %v15375_v60  ;;  %v12211_v27 = vsel %vm2614_vm4, %v2556_v25, %v11991_v53  ;;  %v15379_v28 = vld [vmem:[#allocation45_spill] sm:$0xff]  ;;  %v15382_v25 = vld [vmem:[#allocation47_spill] sm:$0xff] }
 0x3e4   : > { %v12207_v14 = vsel %vm2614_vm4, %v2554_v20, %v11955_v31  ;;  %15378 = vst [vmem:[#allocation67_spill] sm:$0xff] %v12211_v27  ;;  %9387 = vmatprep.mubr.msk.f32.mxu1 %vm2937_vm6, %v12046_v62  ;;  %9783 = vmatmul.mubr.msk.f32.gmra.mrb[30].mxu0 %vm2937_vm6, %v12179_v29  ;;  %v2555_v43 = vsel %vm2523_vm5, %v2464_v10, %v15379_v28  ;;  %v15384_v28 = vld [vmem:[#allocation38_spill] sm:$0xff] }
 0x3e5   : > { %15377 = vst [vmem:[#allocation35_spill] sm:$0xff] %v12207_v14  ;;  %v12217_v19 = vpop.permute.xlu1 %2207  ;;  %v2166_v60 = vpop.permute.xlu0 %2165  ;;  %v12222_v50 = vsel %vm2790_vm7, %v2839_v56, %v2841_v61  ;;  %v12225_v31 = vsel %vm2790_vm7, %v2841_v61, %v2843_v41  ;;  %v2558_v20 = vsel %vm2523_vm5, %v2467_v58, %v15382_v25  ;;  %v2845_v56 = vrot.slane %v12207_v14, 1  ;;  %v15383_v61 = vld [vmem:[#allocation84_spill] sm:$0xff] }
 0x3e6   : > { %15380 = vst [vmem:[#allocation20_spill] sm:$0xff] %v12222_v50  ;;  %15381 = vst [vmem:[#allocation120_spill] sm:$0xff] %v12225_v31  ;;  %v12228_v53 = vsel %vm2614_vm4, %v2555_v43, %v2166_v60  ;;  %9388 = vmatmul.mubr.msk.f32.gmra.mrb[32].mxu1 %vm2937_vm6, %v12049_v47  ;;  %9785 = vmatprep.mubr.msk.f32.mxu0 %vm2937_vm6, %v12222_v50  ;;  %v2848_v41 = vrot.slane %v12211_v27, 1  ;;  %v2466_v43 = vsel %vm2432_vm3, %v15384_v28, %v15383_v61  ;;  %v15385_v60 = vld [vmem:[#allocation126_spill] sm:$0xff]  ;;  %v15387_v25 = vld [vmem:[#allocation104_spill] sm:$0xff] }
 0x3e7   : > { %1506 = vbcast.lane.b32.xlu1 %v11998_v17, 280  ;;  %1092 = vbcast.lane.b32.xlu0 %v11962_v51, 280  ;;  %v2846_v10 = vrot.slane %v12228_v53, 1  ;;  %v15386_v47 = vld [vmem:[#allocation42_spill] sm:$0xff]  ;;  %v12249_v58 = vsel %vm2614_vm4, %v2558_v20, %v12041_v18  ;;  %v2557_v11 = vsel %vm2523_vm5, %v2466_v43, %v15387_v25  ;;  %v15390_v28 = vld [vmem:[#allocation88_spill] sm:$0xff] }
 0x3e8   : > { %v2468_v62 = vsel %vm2432_vm3, %v15386_v47, %v15385_v60  ;;  %9390 = vmatprep.mubr.msk.f32.mxu1 %vm2937_vm6, %v12084_v15  ;;  %9786 = vmatmul.mubr.msk.f32.gmra.mrb[32].mxu0 %vm2937_vm6, %v12225_v31  ;;  %v15391_v18 = vld [vmem:[#allocation14_spill] sm:$0xff]  ;;  %v15393_v15 = vld [vmem:[#allocation44_spill] sm:$0xff]  ;;  %v2852_v43 = vrot.slane %v12249_v58, 1 }
 0x3e9   : > { %v2216_v38 = vpop.permute.xlu1 %2215  ;;  %v2174_v21 = vpop.permute.xlu0 %2173  ;;  %v12258_v61 = vsel %vm2790_vm7, %v2845_v56, %v2846_v10  ;;  %v12261_v47 = vsel %vm2790_vm7, %v2846_v10, %v2848_v41  ;;  %v2469_v20 = vsel %vm2432_vm3, %v15391_v18, %v15390_v28  ;;  %v15392_v60 = vld [vmem:[#allocation90_spill] sm:$0xff]  ;;  %v15394_v56 = vld [vmem:[#allocation109_spill] sm:$0xff] }
 0x3ea   : > { %15388 = vst [vmem:[#allocation24_spill] sm:$0xff] %v12258_v61  ;;  %15389 = vst [vmem:[#allocation87_spill] sm:$0xff] %v12261_v47  ;;  %v2470_v27 = vsel %vm2432_vm3, %v15393_v15, %v15392_v60  ;;  %v12270_v14 = vsel %vm2614_vm4, %v2557_v11, %v2174_v21  ;;  %9391 = vmatmul.mubr.msk.f32.gmra.mrb[34].mxu1 %vm2937_vm6, %v12091_v30  ;;  %9788 = vmatprep.mubr.msk.f32.mxu0 %vm2937_vm6, %v12258_v61  ;;  %v15395_v25 = vld [vmem:[#allocation106_spill] sm:$0xff]  ;;  %v15397_v15 = vld [vmem:[#allocation48_spill] sm:$0xff] }
 0x3eb   : > { %v2561_v10 = vsel %vm2523_vm5, %v2470_v27, %v15394_v56  ;;  %v2559_v28 = vsel %vm2523_vm5, %v2468_v62, %v15395_v25  ;;  %1510 = vbcast.lane.b32.xlu1 %v11998_v17, 288  ;;  %1096 = vbcast.lane.b32.xlu0 %v11962_v51, 288  ;;  %v2850_v21 = vrot.slane %v12270_v14, 1  ;;  %v15396_v11 = vld [vmem:[#allocation94_spill] sm:$0xff]  ;;  %v15399_v17 = vld [vmem:[#allocation49_spill] sm:$0xff] }
 0x3ec   : > { %v2472_v18 = vsel %vm2432_vm3, %v15397_v15, %v15396_v11  ;;  %v12289_v60 = vsel %vm2614_vm4, %v2559_v28, %v12081_v9  ;;  %v12293_v27 = vsel %vm2614_vm4, %v2561_v10, %v12129_v0  ;;  %9393 = vmatprep.mubr.msk.f32.mxu1 %vm2937_vm6, %v12134_v16  ;;  %9789 = vmatmul.mubr.msk.f32.gmra.mrb[34].mxu0 %vm2937_vm6, %v12261_v47  ;;  %v15402_v10 = vld [vmem:[#allocation51_spill] sm:$0xff]  ;;  %v15404_v11 = vld [vmem:[#allocation46_spill] sm:$0xff] }
 0x3ed   : > { %15398 = vst [vmem:[#allocation10_spill] sm:$0xff] %v12293_v27  ;;  %v2224_v51 = vpop.permute.xlu1 %2223  ;;  %v2560_v62 = vsel %vm2523_vm5, %v2469_v20, %v15399_v17  ;;  %v2189_v56 = vpop.permute.xlu0 %2188  ;;  %v12302_v25 = vsel %vm2790_vm7, %v2848_v41, %v2850_v21  ;;  %v12305_v9 = vsel %vm2790_vm7, %v2850_v21, %v2852_v43  ;;  %v2563_v28 = vsel %vm2523_vm5, %v2472_v18, %v15402_v10  ;;  %v15403_v21 = vld [vmem:[#allocation92_spill] sm:$0xff] }
 0x3ee   : > { %15400 = vst [vmem:[#allocation71_spill] sm:$0xff] %v12302_v25  ;;  %15401 = vst [vmem:[#allocation9_spill] sm:$0xff] %v12305_v9  ;;  %v12308_v0 = vsel %vm2614_vm4, %v2560_v62, %v2189_v56  ;;  %9394 = vmatmul.mubr.msk.f32.gmra.mrb[36].mxu1 %vm2937_vm6, %v12141_v48  ;;  %9791 = vmatprep.mubr.msk.f32.mxu0 %vm2937_vm6, %v12302_v25  ;;  %v2854_v41 = vrot.slane %v12289_v60, 1  ;;  %v2857_v43 = vrot.slane %v12293_v27, 1  ;;  %v15405_v17 = vld [vmem:[#allocation144_spill] sm:$0xff]  ;;  %v15406_v62 = vld [vmem:[#allocation50_spill] sm:$0xff] }
 0x3ef   : > { %1924 = vbcast.lane.b32.xlu1 %v12088_v52, 288  ;;  %1920 = vbcast.lane.b32.xlu0 %v12088_v52, 280  ;;  %v2855_v20 = vrot.slane %v12308_v0, 1  ;;  %v2471_v15 = vsel %vm2432_vm3, %v15404_v11, %v15403_v21  ;;  %v2473_v56 = vsel %vm2432_vm3, %v15406_v62, %v15405_v17  ;;  %v12329_v18 = vsel %vm2614_vm4, %v2563_v28, %v12173_v1  ;;  %v15408_v52 = vld [vmem:[#allocation111_spill] sm:$0xff]  ;;  %v15411_v17 = vld [vmem:[#allocation112_spill] sm:$0xff]  ;;  %v15412_v1 = vld [vmem:[#allocation17_spill] sm:$0xff] }
 0x3f0   : > { %15407 = vst [vmem:[#allocation72_spill] sm:$0xff] %v12329_v18  ;;  %9396 = vmatprep.mubr.msk.f32.mxu1 %vm2937_vm6, %v12176_v33  ;;  %9792 = vmatmul.mubr.msk.f32.gmra.mrb[36].mxu0 %vm2937_vm6, %v12305_v9  ;;  %v2562_v10 = vsel %vm2523_vm5, %v2471_v15, %v15408_v52  ;;  %v2474_v28 = vsel %vm2432_vm3, %v15412_v1, %v15411_v17  ;;  %v15413_v62 = vld [vmem:[#allocation113_spill] sm:$0xff]  ;;  %v15414_v33 = vld [vmem:[#allocation52_spill] sm:$0xff]  ;;  %v2861_v15 = vrot.slane %v12329_v18, 1 }
 0x3f1   : > { %v2231_v48 = vpop.permute.xlu1 %2230  ;;  %v2197_v16 = vpop.permute.xlu0 %2196  ;;  %v12338_v21 = vsel %vm2790_vm7, %v2854_v41, %v2855_v20  ;;  %v12341_v11 = vsel %vm2790_vm7, %v2855_v20, %v2857_v43  ;;  %v2475_v30 = vsel %vm2432_vm3, %v15414_v33, %v15413_v62  ;;  %v15415_v41 = vld [vmem:[#allocation131_spill] sm:$0xff]  ;;  %v15416_v52 = vld [vmem:[#allocation129_spill] sm:$0xff] }
 0x3f2   : > { %15409 = vst [vmem:[#allocation25_spill] sm:$0xff] %v12338_v21  ;;  %15410 = vst [vmem:[#allocation91_spill] sm:$0xff] %v12341_v11  ;;  %v12350_v27 = vsel %vm2614_vm4, %v2562_v10, %v2197_v16  ;;  %9397 = vmatmul.mubr.msk.f32.gmra.mrb[38].mxu1 %vm2937_vm6, %v12179_v29  ;;  %9794 = vmatprep.mubr.msk.f32.mxu0 %vm2937_vm6, %v12338_v21  ;;  %v2566_v20 = vsel %vm2523_vm5, %v2475_v30, %v15415_v41  ;;  %v15417_v33 = vld [vmem:[#allocation115_spill] sm:$0xff]  ;;  %v15418_v10 = vld [vmem:[#allocation54_spill] sm:$0xff] }
 0x3f3   : > { %v2564_v17 = vsel %vm2523_vm5, %v2473_v56, %v15416_v52  ;;  %2338 = vbcast.lane.b32.xlu1 %v12138_v49, 288  ;;  %2334 = vbcast.lane.b32.xlu0 %v12138_v49, 280  ;;  %v2859_v16 = vrot.slane %v12350_v27, 1  ;;  %v2477_v1 = vsel %vm2432_vm3, %v15418_v10, %v15417_v33  ;;  %v12372_v30 = vsel %vm2614_vm4, %v2566_v20, %v2216_v38  ;;  %v15421_v56 = vld [vmem:[#allocation97_spill] sm:$0xff]  ;;  %v15423_v10 = vld [vmem:[#allocation6_spill] sm:$0xff] }
 0x3f4   : > { %v12369_v62 = vsel %vm2614_vm4, %v2564_v17, %v12217_v19  ;;  %15420 = vst [vmem:[#allocation74_spill] sm:$0xff] %v12372_v30  ;;  %9399 = vmatprep.mubr.msk.f32.mxu1 %vm2937_vm6, %v12222_v50  ;;  %9795 = vmatmul.mubr.msk.f32.gmra.mrb[38].mxu0 %vm2937_vm6, %v12341_v11  ;;  %v2565_v41 = vsel %vm2523_vm5, %v2474_v28, %v15421_v56  ;;  %v15426_v28 = vld [vmem:[#allocation99_spill] sm:$0xff]  ;;  %v15427_v56 = vld [vmem:[#allocation114_spill] sm:$0xff] }
 0x3f5   : > { %15419 = vst [vmem:[#allocation89_spill] sm:$0xff] %v12369_v62  ;;  %v2239_v49 = vpop.permute.xlu1 %2238  ;;  %v2212_v52 = vpop.permute.xlu0 %2211  ;;  %v12381_v33 = vsel %vm2790_vm7, %v2857_v43, %v2859_v16  ;;  %v12385_v19 = vrot.slane %v10994_v37, %v15423_v10  ;;  %v12388_v38 = vsel %vm2790_vm7, %v2859_v16, %v2861_v15  ;;  %v2568_v43 = vsel %vm2523_vm5, %v2477_v1, %v15426_v28  ;;  %v15430_v50 = vld [vmem:[#allocation55_spill] sm:$0xff]  ;;  %v15432_v28 = vld [vmem:[#allocation133_spill] sm:$0xff] }
 0x3f6   : > { %15422 = vst [vmem:[#allocation27_spill] sm:$0xff] %v12381_v33  ;;  %15424 = vst [vmem:[#allocation37_spill] sm:$0xff] %v12388_v38  ;;  %v12391_v20 = vsel %vm2614_vm4, %v2565_v41, %v2212_v52  ;;  %9400 = vmatmul.mubr.msk.f32.gmra.mrb[40].mxu1 %vm2937_vm6, %v12225_v31  ;;  %9797 = vmatprep.mubr.msk.f32.mxu0 %vm2937_vm6, %v12381_v33  ;;  %v2863_v17 = vrot.slane %v12369_v62, 1  ;;  %v2866_v16 = vrot.slane %v12372_v30, 1  ;;  %v15428_v41 = vld [vmem:[#allocation53_spill] sm:$0xff] }
 0x3f7   : > { %15425 = vst [vmem:[#allocation39_spill] sm:$0xff] %v12391_v20  ;;  %1107 = vbcast.lane.b32.xlu1 %v12385_v19, 264  ;;  %1103 = vbcast.lane.b32.xlu0 %v12385_v19, 256  ;;  %v2864_v15 = vrot.slane %v12391_v20, 1  ;;  %v2476_v52 = vsel %vm2432_vm3, %v15428_v41, %v15427_v56  ;;  %v15429_v31 = vld [vmem:[#allocation145_spill] sm:$0xff]  ;;  %v12411_v1 = vsel %vm2614_vm4, %v2568_v43, %v2224_v51  ;;  %v15435_v51 = vld [vmem:[#allocation116_spill] sm:$0xff] }
 0x3f8   : > { %v2478_v29 = vsel %vm2432_vm3, %v15430_v50, %v15429_v31  ;;  %15431 = vst [vmem:[#allocation73_spill] sm:$0xff] %v12411_v1  ;;  %9402 = vmatprep.mubr.msk.f32.mxu1 %vm2937_vm6, %v12258_v61  ;;  %9798 = vmatmul.mubr.msk.f32.gmra.mrb[40].mxu0 %vm2937_vm6, %v12388_v38  ;;  %v2567_v30 = vsel %vm2523_vm5, %v2476_v52, %v15432_v28  ;;  %v15436_v43 = vld [vmem:[#allocation19_spill] sm:$0xff]  ;;  %v15437_v61 = vld [vmem:[#allocation118_spill] sm:$0xff]  ;;  %v15438_v20 = vld [vmem:[#allocation56_spill] sm:$0xff] }
 0x3f9   : > { %v12419_v62 = vpop.permute.xlu1 %2246  ;;  %v2220_v18 = vpop.permute.xlu0 %2219  ;;  %v12422_v56 = vsel %vm2790_vm7, %v2863_v17, %v2864_v15  ;;  %v12426_v50 = vrot.slane %v15328_v46, %v15423_v10  ;;  %v12429_v31 = vsel %vm2790_vm7, %v2864_v15, %v2866_v16  ;;  %v2479_v41 = vsel %vm2432_vm3, %v15436_v43, %v15435_v51  ;;  %v12447_v17 = vld [vmem:[%s14811_s3 + $0x18] sm:$0xff] }
 0x3fa   : > { %15433 = vst [vmem:[#allocation26_spill] sm:$0xff] %v12422_v56  ;;  %15434 = vst [vmem:[#allocation122_spill] sm:$0xff] %v12429_v31  ;;  %v2480_v52 = vsel %vm2432_vm3, %v15438_v20, %v15437_v61  ;;  %v12438_v28 = vsel %vm2614_vm4, %v2567_v30, %v2220_v18  ;;  %9403 = vmatmul.mubr.msk.f32.gmra.mrb[42].mxu1 %vm2937_vm6, %v12261_v47  ;;  %9800 = vmatprep.mubr.msk.f32.mxu0 %vm2937_vm6, %v12422_v56  ;;  %v15440_v15 = vld [vmem:[#allocation137_spill] sm:$0xff]  ;;  %v2870_v43 = vrot.slane %v12411_v1, 1  ;;  %v15441_v61 = vld [vmem:[#allocation135_spill] sm:$0xff] }
 0x3fb   : > { %15439 = vst [vmem:[#allocation28_spill] sm:$0xff] %v12447_v17  ;;  %v2571_v51 = vsel %vm2523_vm5, %v2480_v52, %v15440_v15  ;;  %v2569_v18 = vsel %vm2523_vm5, %v2478_v29, %v15441_v61  ;;  %1521 = vbcast.lane.b32.xlu1 %v12426_v50, 264  ;;  %1517 = vbcast.lane.b32.xlu0 %v12426_v50, 256  ;;  %v2868_v30 = vrot.slane %v12438_v28, 1  ;;  %v15444_v29 = vld [vmem:[#allocation101_spill] sm:$0xff] }
 0x3fc   : > { %v12458_v20 = vsel %vm2614_vm4, %v2569_v18, %v2231_v48  ;;  %v12461_v47 = vsel %vm2614_vm4, %v2571_v51, %v2239_v49  ;;  %9405 = vmatprep.mubr.msk.f32.mxu1 %vm2937_vm6, %v12302_v25  ;;  %9801 = vmatmul.mubr.msk.f32.gmra.mrb[42].mxu0 %vm2937_vm6, %v12429_v31  ;;  %v2570_v15 = vsel %vm2523_vm5, %v2479_v41, %v15444_v29 }
 0x3fd   : > { %15442 = vst [vmem:[#allocation93_spill] sm:$0xff] %v12458_v20  ;;  %15443 = vst [vmem:[#allocation75_spill] sm:$0xff] %v12461_v47  ;;  %v12467_v52 = vpop.permute.xlu1 %2253  ;;  %v2235_v61 = vpop.permute.xlu0 %2234  ;;  %v12472_v1 = vsel %vm2790_vm7, %v2866_v16, %v2868_v30  ;;  %v12475_v48 = vsel %vm2790_vm7, %v2868_v30, %v2870_v43  ;;  %9952 = vmatprep.subr.msk.mxu0 %vm3066_vm2, %v12447_v17  ;;  %v2872_v16 = vrot.slane %v12458_v20, 1  ;;  %v14876_v51 = vrot.slane %v12461_v47, 1 }
 0x3fe   : > { %15445 = vst [vmem:[#allocation11_spill] sm:$0xff] %v12472_v1  ;;  %15446 = vst [vmem:[#allocation76_spill] sm:$0xff] %v12475_v48  ;;  %v12480_v49 = vsel %vm2614_vm4, %v2570_v15, %v2235_v61  ;;  %9406 = vmatmul.mubr.msk.f32.gmra.mrb[44].mxu1 %vm2937_vm6, %v12305_v9  ;;  %9803 = vmatprep.mubr.msk.f32.mxu0 %vm2937_vm6, %v12472_v1  ;;  %v3980_v43 = vrot.slane %v11737_v44, 2  ;;  %v12503_v15 = vrot.slane %v11081_v3, %v15423_v10  ;;  %v15455_v44 = vld [vmem:[#allocation121_spill] sm:$0xff] }
 0x3ff   : > { %15447 = vst [vmem:[#allocation29_spill] sm:$0xff] %v12480_v49  ;;  %1525 = vbcast.lane.b32.xlu1 %v12426_v50, 272  ;;  %1111 = vbcast.lane.b32.xlu0 %v12385_v19, 272  ;;  %v2873_v41 = vrot.slane %v12480_v49, 1  ;;  %v12532_v25 = vrot.slane %v11417_v35, %v15423_v10  ;;  %v3988_v10 = vrot.slane %v11853_v59, 2  ;;  %v15458_v59 = vld [vmem:[#allocation21_spill] sm:$0xff] }
 0x400   : > { %9408 = vmatprep.mubr.msk.f32.mxu1 %vm2937_vm6, %v12338_v21  ;;  %9804 = vmatmul.mubr.msk.f32.gmra.mrb[44].mxu0 %vm2937_vm6, %v12475_v48  ;;  %v3979_v21 = vrot.slane %v11721_v5, 2  ;;  %v15456_v5 = vld [vmem:[#allocation58_spill] sm:$0xff] }
 0x401   : > { %v12496_v18 = vpop.permute.xlu1 %2261  ;;  %v2243_v30 = vpop.permute.xlu0 %2242  ;;  %v12499_v29 = vsel %vm2790_vm7, %v2872_v16, %v2873_v41  ;;  %v12508_v61 = vsel %vm2790_vm7, %v2873_v41, %v14876_v51  ;;  %v3984_v16 = vrot.slane %v11771_v6, 2  ;;  %v3982_v51 = vrot.slane %v11724_v8, 2  ;;  %v15453_v6 = vld [vmem:[#allocation119_spill] sm:$0xff]  ;;  %v15454_v8 = vld [vmem:[#allocation57_spill] sm:$0xff]  ;;  %v15459_v49 = vld [vmem:[#allocation138_spill] sm:$0xff] }
 0x402   : > { %15448 = vst [vmem:[#allocation96_spill] sm:$0xff] %v12499_v29  ;;  %15449 = vst [vmem:[#allocation95_spill] sm:$0xff] %v12508_v61  ;;  %9409 = vmatmul.mubr.msk.f32.gmra.mrb[46].mxu1 %vm2937_vm6, %v12341_v11  ;;  %9806 = vmatprep.mubr.msk.f32.mxu0 %vm2937_vm6, %v12499_v29  ;;  %v12523_v41 = vsel %vm3969_vm8, %v3979_v21, %v3980_v43 }
 0x403   : > { %1935 = vbcast.lane.b32.xlu1 %v12503_v15, 264  ;;  %1931 = vbcast.lane.b32.xlu0 %v12503_v15, 256  ;;  %15450 = vst [vmem:[#allocation78_spill] sm:$0xff] %v12523_v41  ;;  %v12539_v21 = vsel %vm3969_vm8, %v3980_v43, %v3982_v51 }
 0x404   : > { %9411 = vmatprep.mubr.msk.f32.mxu1 %vm2937_vm6, %v12381_v33  ;;  %9807 = vmatmul.mubr.msk.f32.gmra.mrb[46].mxu0 %vm2937_vm6, %v12508_v61  ;;  %15451 = vst [vmem:[#allocation31_spill] sm:$0xff] %v12539_v21  ;;  %v12546_v33 = vsel %vm3969_vm8, %v3982_v51, %v3984_v16  ;;  %v3989_v51 = vrot.slane %v11830_v57, 2 }
 0x405   : > { %9856 = vmatprep.mubr.msk.f32.mxu0 %vm2937_vm6, %v12523_v41  ;;  %v12528_v11 = vpop.permute.xlu1 %2269  ;;  %v2258_v9 = vpop.permute.xlu0 %2257  ;;  %15452 = vst [vmem:[#allocation41_spill] sm:$0xff] %v12546_v33 }
 0x406   : > { %9412 = vmatmul.mubr.msk.f32.gmra.mrb[48].mxu1 %vm2937_vm6, %v12388_v38  ;;  %v3986_v38 = vrot.slane %v11751_v7, 2  ;;  %v15465_v7 = vld [vmem:[#allocation128_spill] sm:$0xff] }
 0x407   : > { %2345 = vbcast.lane.b32.xlu1 %v12532_v25, 256  ;;  %1939 = vbcast.lane.b32.xlu0 %v12503_v15, 272 }
 0x408   : > { %9414 = vmatprep.mubr.msk.f32.mxu1 %vm2937_vm6, %v12422_v56  ;;  %9857 = vmatmul.mubr.msk.f32.vlgmr.msra.gmra.mrb[14].mxu0 %vm2937_vm6, %v12539_v21  ;;  %v2481_v56 = vsel %vm2432_vm3, %v15454_v8, %v15453_v6  ;;  %v2482_v21 = vsel %vm2432_vm3, %v15456_v5, %v15455_v44  ;;  %v12574_v5 = vsel %vm3969_vm8, %v3984_v16, %v3986_v38  ;;  %v3991_v44 = vrot.slane %v11834_v4, 2  ;;  %v15464_v16 = vld [vmem:[#allocation7_spill] sm:$0xff]  ;;  %v15472_v4 = vld [vmem:[#allocation60_spill] sm:$0xff] }
 0x409   : > { %9859 = vmatprep.mubr.msk.f32.mxu0 %vm2937_vm6, %v12546_v33  ;;  %v12552_v41 = vpop.permute.xlu1 %2276  ;;  %v2266_v43 = vpop.permute.xlu0 %2265  ;;  %9953 = vmatpush3.msk.msra.mxu0 %vm3066_vm2, %v12447_v17  ;;  %v15457_v33 = vld [vmem:[#allocation123_spill] sm:$0xff]  ;;  %v2572_v8 = vsel %vm2523_vm5, %v2481_v56, %v15459_v49  ;;  %15460 = vst [vmem:[#allocation43_spill] sm:$0xff] %v12574_v5 }
 0x40a   : > { %9415 = vmatmul.mubr.msk.f32.gmra.mrb[50].mxu1 %vm2937_vm6, %v12429_v31  ;;  %v2484_v20 = vsel %vm2432_vm3, %v15458_v59, %v15457_v33  ;;  %v12578_v6 = vsel %vm2614_vm4, %v2572_v8, %v2243_v30  ;;  %v12585_v59 = vsel %vm3969_vm8, %v3988_v10, %v3989_v51  ;;  %v3993_v33 = vrot.slane %v11842_v63, 2  ;;  %v15463_v56 = vld [vmem:[#allocation103_spill] sm:$0xff]  ;;  %v15467_v31 = vld [vmem:[#allocation146_spill] sm:$0xff] }
 0x40b   : > { %2353 = vbcast.lane.b32.xlu1 %v12532_v25, 272  ;;  %2349 = vbcast.lane.b32.xlu0 %v12532_v25, 264  ;;  %15461 = vst [vmem:[#allocation77_spill] sm:$0xff] %v12578_v6  ;;  %15462 = vst [vmem:[#allocation30_spill] sm:$0xff] %v12585_v59  ;;  %v2573_v38 = vsel %vm2523_vm5, %v2482_v21, %v15463_v56  ;;  %v12598_v8 = vrot.slane %v10994_v37, %v15464_v16  ;;  %v15469_v21 = vld [vmem:[#allocation105_spill] sm:$0xff] }
 0x40c   : > { %9417 = vmatprep.mubr.msk.f32.mxu1 %vm2937_vm6, %v12472_v1  ;;  %9860 = vmatmul.mubr.msk.f32.gmra.mrb[16].mxu0 %vm2937_vm6, %v12574_v5  ;;  %v15466_v1 = vld [vmem:[#allocation62_spill] sm:$0xff]  ;;  %v15468_v5 = vld [vmem:[#allocation59_spill] sm:$0xff]  ;;  %v2575_v56 = vsel %vm2523_vm5, %v2484_v20, %v15469_v21  ;;  %v15471_v37 = vld [vmem:[#allocation125_spill] sm:$0xff]  ;;  %v2877_v20 = vrot.slane %v12578_v6, 1 }
 0x40d   : > { %9862 = vmatprep.mubr.msk.f32.mxu0 %vm2937_vm6, %v12585_v59  ;;  %v12592_v49 = vpop.permute.xlu1 %2284  ;;  %v12594_v30 = vpop.permute.xlu0 %2280  ;;  %v2487_v10 = vsel %vm2432_vm3, %v15466_v1, %v15465_v7  ;;  %v2483_v63 = vsel %vm2432_vm3, %v15468_v5, %v15467_v31  ;;  %v15470_v59 = vrot.slane %v12447_v17, 4  ;;  %v2485_v57 = vsel %vm2432_vm3, %v15472_v4, %v15471_v37  ;;  %v15482_v17 = vld [vmem:[#allocation140_spill] sm:$0xff] }
 0x40e   : > { %9418 = vmatmul.mubr.msk.f32.gmra.mrb[52].mxu1 %vm2937_vm6, %v12475_v48  ;;  %v3995_v1 = vrot.slane %v11865_v24, 2  ;;  %v12620_v31 = vsel %vm3969_vm8, %v3989_v51, %v3991_v44  ;;  %v12625_v7 = vsel %vm2614_vm4, %v2573_v38, %v12419_v62  ;;  %v12628_v5 = vsel %vm2614_vm4, %v2575_v56, %v2258_v9  ;;  %v15476_v51 = vld [vmem:[#allocation127_spill] sm:$0xff]  ;;  %v15478_v62 = vld [vmem:[#allocation130_spill] sm:$0xff] }
 0x40f   : > { %10050 = vmatprep.subr.msk.mxu0 %vm3066_vm2, %v15470_v59  ;;  %1529 = vbcast.lane.b32.xlu1 %v12426_v50, 280  ;;  %15473 = vst [vmem:[#allocation124_spill] sm:$0xff] %v12620_v31  ;;  %15474 = vst [vmem:[#allocation34_spill] sm:$0xff] %v12628_v5  ;;  %v12635_v4 = vsel %vm3969_vm8, %v3991_v44, %v3993_v33  ;;  %v3998_v24 = vrot.slane %v11965_v34, 2  ;;  %v15477_v59 = vld [vmem:[#allocation61_spill] sm:$0xff]  ;;  %v15479_v38 = vld [vmem:[#allocation23_spill] sm:$0xff]  ;;  %v2576_v34 = vsel %vm2523_vm5, %v2485_v57, %v15482_v17 }
 0x410   : > { %1115 = vbcast.lane.b32.xlu0 %v12385_v19, 280  ;;  %9420 = vmatprep.mubr.msk.f32.mxu1 %vm2937_vm6, %v12499_v29  ;;  %15475 = vst [vmem:[#allocation98_spill] sm:$0xff] %v12635_v4  ;;  %v2486_v21 = vsel %vm2432_vm3, %v15477_v59, %v15476_v51  ;;  %v2489_v9 = vsel %vm2432_vm3, %v15479_v38, %v15478_v62  ;;  %v15480_v56 = vld [vmem:[#allocation139_spill] sm:$0xff]  ;;  %v15483_v51 = vld [vmem:[#allocation141_spill] sm:$0xff]  ;;  %v15485_v57 = vrot.slane %v12461_v47, 1 }
 0x411   : > { %9863 = vmatmul.mubr.msk.f32.gmra.mrb[18].mxu0 %vm2937_vm6, %v12620_v31  ;;  %v2574_v37 = vsel %vm2523_vm5, %v2483_v63, %v15480_v56  ;;  %v15481_v29 = vld [vmem:[#allocation107_spill] sm:$0xff]  ;;  %v12650_v44 = vpop.permute.xlu1 %1878  ;;  %v1875_v31 = vpop.permute.xlu0 %1874  ;;  %v2577_v59 = vsel %vm2523_vm5, %v2486_v21, %v15483_v51  ;;  %v3997_v63 = vrot.slane %v11949_v45, 2  ;;  %v12677_v21 = vsel %vm2614_vm4, %v2576_v34, %v12496_v18  ;;  %v15493_v51 = vld [vmem:[#allocation132_spill] sm:$0xff] }
 0x412   : > { %v2578_v48 = vsel %vm2523_vm5, %v2487_v10, %v15481_v29  ;;  %9865 = vmatprep.mubr.msk.f32.mxu0 %vm2937_vm6, %v12635_v4  ;;  %v12658_v62 = vsel %vm2614_vm4, %v2574_v37, %v12467_v52  ;;  %9421 = vmatmul.mubr.msk.f32.gmra.mrb[54].mxu1 %vm2937_vm6, %v12508_v61  ;;  %v2879_v29 = vrot.slane %v12625_v7, 1  ;;  %v12669_v17 = vsel %vm2790_vm7, %v15485_v57, %v2877_v20  ;;  %v15495_v57 = vld [vmem:[#allocation134_spill] sm:$0xff]  ;;  %v15498_v61 = vld [vmem:[#allocation64_spill] sm:$0xff] }
 0x413   : > { %15484 = vst [vmem:[#allocation80_spill] sm:$0xff] %v12658_v62  ;;  %1533 = vbcast.lane.b32.xlu1 %v12426_v50, 288  ;;  %15486 = vst [vmem:[#allocation12_spill] sm:$0xff] %v12669_v17  ;;  %v12672_v10 = vsel %vm3969_vm8, %v3993_v33, %v3995_v1  ;;  %v2882_v52 = vrot.slane %v12628_v5, 1  ;;  %v12680_v38 = vsel %vm2614_vm4, %v2577_v59, %v2266_v43  ;;  %9423 = vmatprep.mubr.msk.f32.mxu1 %vm2937_vm6, %v12669_v17  ;;  %v15491_v33 = vld [vmem:[#allocation110_spill] sm:$0xff]  ;;  %v15496_v17 = vld [vmem:[#allocation68_spill] sm:$0xff] }
 0x414   : > { %1119 = vbcast.lane.b32.xlu0 %v12385_v19, 288  ;;  %15487 = vst [vmem:[#allocation82_spill] sm:$0xff] %v12672_v10  ;;  %15488 = vst [vmem:[#allocation36_spill] sm:$0xff] %v12677_v21  ;;  %v12687_v19 = vsel %vm3969_vm8, %v3997_v63, %v3998_v24  ;;  %v4002_v50 = vrot.slane %v12010_v32, 2  ;;  %v2580_v1 = vsel %vm2523_vm5, %v2489_v9, %v15491_v33  ;;  %v2881_v56 = vrot.slane %v12658_v62, 1  ;;  %v15494_v59 = vld [vmem:[#allocation66_spill] sm:$0xff] }
 0x415   : > { %15489 = vst [vmem:[#allocation102_spill] sm:$0xff] %v12680_v38  ;;  %9866 = vmatmul.mubr.msk.f32.gmra.mrb[20].mxu0 %vm2937_vm6, %v12672_v10  ;;  %15490 = vst [vmem:[#allocation100_spill] sm:$0xff] %v12687_v19  ;;  %v2293_v34 = vpop.permute.xlu1 %2292  ;;  %v2289_v18 = vpop.permute.xlu0 %2288  ;;  %v12695_v43 = vsel %vm2790_vm7, %v2877_v20, %v2879_v29  ;;  %v4000_v37 = vrot.slane %v11953_v54, 2  ;;  %v2490_v63 = vsel %vm2432_vm3, %v15494_v59, %v15493_v51  ;;  %v15497_v33 = vld [vmem:[#allocation147_spill] sm:$0xff]  ;;  %v4004_v10 = vrot.slane %v11983_v42, 2  ;;  %v15504_v59 = vld [vmem:[#allocation70_spill] sm:$0xff] }
 0x416   : > { %9868 = vmatprep.mubr.msk.f32.mxu0 %vm2937_vm6, %v12687_v19  ;;  %15492 = vst [vmem:[#allocation86_spill] sm:$0xff] %v12695_v43  ;;  %v2491_v9 = vsel %vm2432_vm3, %v15496_v17, %v15495_v57  ;;  %v2488_v19 = vsel %vm2432_vm3, %v15498_v61, %v15497_v33  ;;  %9424 = vmatmul.mubr.msk.f32.gmra.mrb[56].mxu1 %vm2937_vm6, %v12695_v43  ;;  %v2884_v17 = vrot.slane %v12677_v21, 1  ;;  %v2886_v51 = vrot.slane %v12680_v38, 1 }
 0x417   : > { %1947 = vbcast.lane.b32.xlu1 %v12503_v15, 288  ;;  %v12714_v20 = vsel %vm2790_vm7, %v2881_v56, %v2882_v52  ;;  %v12717_v29 = vsel %vm3969_vm8, %v3998_v24, %v4000_v37  ;;  %v12723_v42 = vsel %vm2614_vm4, %v2578_v48, %v12528_v11  ;;  %v12727_v61 = vsel %vm2614_vm4, %v2580_v1, %v12594_v30  ;;  %v15503_v56 = vld [vmem:[#allocation136_spill] sm:$0xff]  ;;  %v15505_v48 = vld [vmem:[#allocation143_spill] sm:$0xff]  ;;  %v15506_v30 = vld [vmem:[#allocation142_spill] sm:$0xff] }
 0x418   : > { %1943 = vbcast.lane.b32.xlu0 %v12503_v15, 280  ;;  %15499 = vst [vmem:[#allocation40_spill] sm:$0xff] %v12714_v20  ;;  %15500 = vst [vmem:[#allocation45_spill] sm:$0xff] %v12717_v29  ;;  %9426 = vmatprep.mubr.msk.f32.mxu1 %vm2937_vm6, %v12714_v20  ;;  %v12734_v15 = vsel %vm3969_vm8, %v4000_v37, %v4002_v50  ;;  %v4007_v24 = vrot.slane %v12052_v13, 2  ;;  %v2492_v11 = vsel %vm2432_vm3, %v15504_v59, %v15503_v56 }
 0x419   : > { %15501 = vst [vmem:[#allocation47_spill] sm:$0xff] %v12727_v61  ;;  %9869 = vmatmul.mubr.msk.f32.gmra.mrb[22].mxu0 %vm2937_vm6, %v12717_v29  ;;  %15502 = vst [vmem:[#allocation84_spill] sm:$0xff] %v12734_v15  ;;  %v2581_v57 = vsel %vm2523_vm5, %v2490_v63, %v15505_v48  ;;  %v2579_v1 = vsel %vm2523_vm5, %v2488_v19, %v15506_v30  ;;  %v12746_v33 = vpop.permute.xlu1 %1061  ;;  %v12748_v20 = vpop.permute.xlu0 %1057  ;;  %v12751_v37 = vsel %vm2790_vm7, %v2882_v52, %v2884_v17 }
 0x41a   : > { %9871 = vmatprep.mubr.msk.f32.mxu0 %vm2937_vm6, %v12734_v15  ;;  %15507 = vst [vmem:[#allocation38_spill] sm:$0xff] %v12751_v37  ;;  %v12755_v43 = vsel %vm2614_vm4, %v2579_v1, %v12552_v41  ;;  %v12759_v63 = vsel %vm2614_vm4, %v2581_v57, %v12592_v49  ;;  %9427 = vmatmul.mubr.msk.f32.gmra.mrb[58].mxu1 %vm2937_vm6, %v12751_v37  ;;  %v4006_v56 = vrot.slane %v12029_v40, 2  ;;  %v2888_v59 = vrot.slane %v12723_v42, 1 }
 0x41b   : > { %15508 = vst [vmem:[#allocation126_spill] sm:$0xff] %v12755_v43  ;;  %15509 = vst [vmem:[#allocation42_spill] sm:$0xff] %v12759_v63  ;;  %v12764_v19 = vsel %vm3969_vm8, %v4002_v50, %v4004_v10  ;;  %v2582_v52 = vsel %vm2523_vm5, %v2491_v9, %v1875_v31  ;;  %2361 = vbcast.lane.b32.xlu1 %v12532_v25, 288  ;;  %v12772_v41 = vsel %vm2790_vm7, %v2884_v17, %v2886_v51 }
 0x41c   : > { %15510 = vst [vmem:[#allocation104_spill] sm:$0xff] %v12764_v19  ;;  %2357 = vbcast.lane.b32.xlu0 %v12532_v25, 280  ;;  %15511 = vst [vmem:[#allocation88_spill] sm:$0xff] %v12772_v41  ;;  %v2891_v49 = vrot.slane %v12727_v61, 1  ;;  %v12776_v48 = vsel %vm2614_vm4, %v2582_v52, %v2289_v18  ;;  %9429 = vmatprep.mubr.msk.f32.mxu1 %vm2937_vm6, %v12772_v41  ;;  %v12783_v31 = vsel %vm3969_vm8, %v4006_v56, %v4007_v24 }
 0x41d   : > { %15512 = vst [vmem:[#allocation14_spill] sm:$0xff] %v12776_v48  ;;  %9872 = vmatmul.mubr.msk.f32.gmra.mrb[24].mxu0 %vm2937_vm6, %v12764_v19  ;;  %15513 = vst [vmem:[#allocation90_spill] sm:$0xff] %v12783_v31  ;;  %v4009_v10 = vrot.slane %v12033_v2, 2  ;;  %v4011_v25 = vrot.slane %v12100_v26, 2  ;;  %v2583_v50 = vsel %vm2523_vm5, %v2492_v11, %v12650_v44  ;;  %v1476_v18 = vpop.permute.xlu1 %1475  ;;  %v1472_v9 = vpop.permute.xlu0 %1471  ;;  %v12792_v17 = vsel %vm2790_vm7, %v2886_v51, %v2888_v59 }
 0x41e   : > { %9874 = vmatprep.mubr.msk.f32.mxu0 %vm2937_vm6, %v12783_v31  ;;  %15514 = vst [vmem:[#allocation44_spill] sm:$0xff] %v12792_v17  ;;  %v2890_v57 = vrot.slane %v12755_v43, 1  ;;  %v2893_v30 = vrot.slane %v12759_v63, 1  ;;  %v12797_v1 = vsel %vm2614_vm4, %v2583_v50, %v2293_v34  ;;  %9430 = vmatmul.mubr.msk.f32.gmra.mrb[60].mxu1 %vm2937_vm6, %v12792_v17  ;;  %v2895_v11 = vrot.slane %v12776_v48, 1 }
 0x41f   : > { %1130 = vbcast.lane.b32.xlu1 %v12598_v8, 264  ;;  %v12807_v51 = vsel %vm3969_vm8, %v4007_v24, %v4009_v10  ;;  %v12815_v34 = vsel %vm3969_vm8, %v4009_v10, %v4011_v25  ;;  %v4016_v56 = vrot.slane %v12144_v22, 2  ;;  %v4013_v59 = vrot.slane %v12073_v55, 2 }
 0x420   : > { %1126 = vbcast.lane.b32.xlu0 %v12598_v8, 256  ;;  %v12804_v44 = vsel %vm2790_vm7, %v2890_v57, %v2891_v49  ;;  %15516 = vst [vmem:[#allocation106_spill] sm:$0xff] %v12807_v51  ;;  %15517 = vst [vmem:[#allocation94_spill] sm:$0xff] %v12815_v34  ;;  %v2897_v52 = vrot.slane %v12797_v1, 1  ;;  %v12823_v57 = vsel %vm2790_vm7, %v2891_v49, %v2893_v30  ;;  %v4015_v10 = vrot.slane %v12119_v23, 2 }
 0x421   : > { %15515 = vst [vmem:[#allocation109_spill] sm:$0xff] %v12804_v44  ;;  %9432 = vmatprep.mubr.msk.f32.mxu1 %vm2937_vm6, %v12804_v44  ;;  %9875 = vmatmul.mubr.msk.f32.gmra.mrb[26].mxu0 %vm2937_vm6, %v12807_v51  ;;  %v1480_v24 = vpop.permute.xlu1 %1479  ;;  %v1066_v50 = vpop.permute.xlu0 %1065  ;;  %15518 = vst [vmem:[#allocation48_spill] sm:$0xff] %v12823_v57  ;;  %v12827_v44 = vrot.slane %v15328_v46, %v15464_v16  ;;  %v12835_v55 = vsel %vm2790_vm7, %v2893_v30, %v2895_v11  ;;  %v4020_v49 = vrot.slane %v12188_v39, 2 }
 0x422   : > { %9877 = vmatprep.mubr.msk.f32.mxu0 %vm2937_vm6, %v12815_v34  ;;  %9433 = vmatmul.mubr.msk.f32.gmra.mrb[62].mxu1 %vm2937_vm6, %v12823_v57  ;;  %15519 = vst [vmem:[#allocation49_spill] sm:$0xff] %v12835_v55  ;;  %v12838_v17 = vsel %vm3969_vm8, %v4011_v25, %v4013_v59  ;;  %v12845_v46 = vsel %vm3969_vm8, %v4015_v10, %v4016_v56  ;;  %v4018_v25 = vrot.slane %v12123_v12, 2  ;;  %v4025_v10 = vrot.slane %v12228_v53, 2 }
 0x423   : > { %1544 = vbcast.lane.b32.xlu1 %v12827_v44, 264  ;;  %15520 = vst [vmem:[#allocation51_spill] sm:$0xff] %v12838_v17  ;;  %9435 = vmatprep.mubr.msk.f32.mxu1 %vm2937_vm6, %v12835_v55  ;;  %15521 = vst [vmem:[#allocation92_spill] sm:$0xff] %v12845_v46  ;;  %v12851_v41 = vsel %vm2790_vm7, %v2895_v11, %v2897_v52  ;;  %v4022_v52 = vrot.slane %v12165_v36, 2  ;;  %v12872_v37 = vrot.slane %v11081_v3, %v15464_v16 }
 0x424   : > { %1540 = vbcast.lane.b32.xlu0 %v12827_v44, 256  ;;  %15522 = vst [vmem:[#allocation46_spill] sm:$0xff] %v12851_v41  ;;  %v12859_v59 = vsel %vm3969_vm8, %v4016_v56, %v4018_v25  ;;  %v12865_v11 = vsel %vm3969_vm8, %v4018_v25, %v4020_v49  ;;  %v15525_v56 = vld [vmem:[#allocation35_spill] sm:$0xff]  ;;  %v2494_v3 = vsel %vm2432_vm3, %v12746_v33, %v1476_v18  ;;  %v4058_v31 = vrot.slane %v12625_v7, 2 }
 0x425   : > { %9878 = vmatmul.mubr.msk.f32.gmra.mrb[28].mxu0 %vm2937_vm6, %v12838_v17  ;;  %v1890_v57 = vpop.permute.xlu1 %1889  ;;  %v1886_v30 = vpop.permute.xlu0 %1885  ;;  %15523 = vst [vmem:[#allocation144_spill] sm:$0xff] %v12859_v59  ;;  %15524 = vst [vmem:[#allocation50_spill] sm:$0xff] %v12865_v11  ;;  %v2493_v17 = vsel %vm2432_vm3, %v12748_v20, %v1472_v9  ;;  %v12881_v36 = vsel %vm3969_vm8, %v4020_v49, %v4022_v52  ;;  %v4029_v20 = vrot.slane %v12270_v14, 2  ;;  %v4060_v15 = vrot.slane %v12658_v62, 2 }
 0x426   : > { %9880 = vmatprep.mubr.msk.f32.mxu0 %vm2937_vm6, %v12845_v46  ;;  %9436 = vmatmul.mubr.msk.f32.gmra.mrb[64].mxu1 %vm2937_vm6, %v12851_v41  ;;  %v4024_v46 = vrot.slane %v15525_v56, 2  ;;  %15526 = vst [vmem:[#allocation111_spill] sm:$0xff] %v12881_v36  ;;  %v2585_v9 = vsel %vm2523_vm5, %v2494_v3, %v1890_v57  ;;  %v12901_v33 = vrot.slane %v11417_v35, %v15464_v16  ;;  %v4065_v7 = vrot.slane %v12680_v38, 2 }
 0x427   : > { %1548 = vbcast.lane.b32.xlu1 %v12827_v44, 272  ;;  %v4063_v4 = vrot.slane %v12677_v21, 2  ;;  %v4067_v38 = vrot.slane %v12723_v42, 2 }
 0x428   : > { %1134 = vbcast.lane.b32.xlu0 %v12598_v8, 272  ;;  %v12884_v25 = vsel %vm3969_vm8, %v4024_v46, %v4025_v10 }
 0x429   : > { %9881 = vmatmul.mubr.msk.f32.gmra.mrb[30].mxu0 %vm2937_vm6, %v12859_v59  ;;  %v2300_v41 = vpop.permute.xlu1 %2299  ;;  %v1894_v55 = vpop.permute.xlu0 %1893  ;;  %v2584_v59 = vsel %vm2523_vm5, %v2493_v17, %v1886_v30  ;;  %15527 = vst [vmem:[#allocation112_spill] sm:$0xff] %v12884_v25 }
 0x42a   : > { %9883 = vmatprep.mubr.msk.f32.mxu0 %vm2937_vm6, %v12865_v11  ;;  %v2495_v11 = vsel %vm2432_vm3, %v1066_v50, %v1480_v24  ;;  %v12890_v34 = vsel %vm2614_vm4, %v2584_v59, %v2300_v41  ;;  %v15529_v41 = vld [vmem:[#allocation67_spill] sm:$0xff]  ;;  %v4034_v59 = vrot.slane %v12308_v0, 2 }
 0x42b   : > { %1958 = vbcast.lane.b32.xlu1 %v12872_v37, 264  ;;  %15528 = vst [vmem:[#allocation17_spill] sm:$0xff] %v12890_v34  ;;  %v2586_v17 = vsel %vm2523_vm5, %v2495_v11, %v1894_v55  ;;  %v4027_v18 = vrot.slane %v15529_v41, 2  ;;  %v2899_v55 = vrot.slane %v12890_v34, 1  ;;  %v4031_v11 = vrot.slane %v12249_v58, 2 }
 0x42c   : > { %1954 = vbcast.lane.b32.xlu0 %v12872_v37, 256 }
 0x42d   : > { %9884 = vmatmul.mubr.msk.f32.gmra.mrb[32].mxu0 %vm2937_vm6, %v12881_v36  ;;  %v2308_v46 = vpop.permute.xlu1 %2307  ;;  %v2304_v49 = vpop.permute.xlu0 %2303  ;;  %v12913_v57 = vsel %vm3969_vm8, %v4025_v10, %v4027_v18  ;;  %v12921_v30 = vsel %vm3969_vm8, %v4027_v18, %v4029_v20  ;;  %v12941_v58 = vsel %vm3969_vm8, %v4029_v20, %v4031_v11 }
 0x42e   : > { %9886 = vmatprep.mubr.msk.f32.mxu0 %vm2937_vm6, %v12884_v25  ;;  %v12905_v24 = vsel %vm2614_vm4, %v2586_v17, %v2308_v46  ;;  %v12908_v50 = vsel %vm2614_vm4, %v2585_v9, %v2304_v49  ;;  %15532 = vst [vmem:[#allocation131_spill] sm:$0xff] %v12913_v57  ;;  %15533 = vst [vmem:[#allocation129_spill] sm:$0xff] %v12921_v30  ;;  %v4033_v17 = vrot.slane %v12289_v60, 2  ;;  %v4038_v49 = vrot.slane %v12350_v27, 2 }
 0x42f   : > { %15530 = vst [vmem:[#allocation113_spill] sm:$0xff] %v12905_v24  ;;  %15531 = vst [vmem:[#allocation52_spill] sm:$0xff] %v12908_v50  ;;  %2368 = vbcast.lane.b32.xlu1 %v12901_v33, 256  ;;  %v2900_v35 = vrot.slane %v12908_v50, 1  ;;  %v14953_v16 = vrot.slane %v12905_v24, 1 }
 0x430   : > { %1962 = vbcast.lane.b32.xlu0 %v12872_v37, 272  ;;  %15536 = vst [vmem:[#allocation97_spill] sm:$0xff] %v12941_v58  ;;  %v12948_v46 = vsel %vm3969_vm8, %v4033_v17, %v4034_v59  ;;  %v15541_v17 = vld [vmem:[#allocation39_spill] sm:$0xff] }
 0x431   : > { %9887 = vmatmul.mubr.msk.f32.gmra.mrb[34].mxu0 %vm2937_vm6, %v12913_v57  ;;  %v1484_v10 = vpop.permute.xlu1 %1483  ;;  %v1070_v52 = vpop.permute.xlu0 %1069  ;;  %v12928_v3 = vsel %vm2790_vm7, %v2899_v55, %v2900_v35  ;;  %v12933_v9 = vsel %vm2790_vm7, %v2900_v35, %v14953_v16  ;;  %15537 = vst [vmem:[#allocation6_spill] sm:$0xff] %v12948_v46  ;;  %v15538_v35 = vld [vmem:[#allocation10_spill] sm:$0xff]  ;;  %v15543_v57 = vld [vmem:[#allocation89_spill] sm:$0xff] }
 0x432   : > { %9889 = vmatprep.mubr.msk.f32.mxu0 %vm2937_vm6, %v12921_v30  ;;  %15534 = vst [vmem:[#allocation115_spill] sm:$0xff] %v12928_v3  ;;  %15535 = vst [vmem:[#allocation54_spill] sm:$0xff] %v12933_v9  ;;  %9438 = vmatprep.mubr.msk.f32.mxu1 %vm2937_vm6, %v12928_v3  ;;  %v4036_v16 = vrot.slane %v15538_v35, 2  ;;  %v15542_v3 = vld [vmem:[#allocation72_spill] sm:$0xff]  ;;  %v4042_v25 = vrot.slane %v15543_v57, 2 }
 0x433   : > { %2376 = vbcast.lane.b32.xlu1 %v12901_v33, 272  ;;  %9439 = vmatmul.mubr.msk.f32.gmra.mrb[66].mxu1 %vm2937_vm6, %v12933_v9  ;;  %v4043_v9 = vrot.slane %v15541_v17, 2 }
 0x434   : > { %2372 = vbcast.lane.b32.xlu0 %v12901_v33, 264  ;;  %v12957_v20 = vsel %vm3969_vm8, %v4034_v59, %v4036_v16  ;;  %v12962_v11 = vsel %vm3969_vm8, %v4036_v16, %v4038_v49  ;;  %v2496_v16 = vsel %vm2432_vm3, %v1070_v52, %v1484_v10  ;;  %v15546_v10 = vld [vmem:[#allocation74_spill] sm:$0xff] }
 0x435   : > { %9890 = vmatmul.mubr.msk.f32.gmra.mrb[36].mxu0 %vm2937_vm6, %v12941_v58  ;;  %v1488_v18 = vpop.permute.xlu1 %1487  ;;  %v1074_v55 = vpop.permute.xlu0 %1073  ;;  %15539 = vst [vmem:[#allocation99_spill] sm:$0xff] %v12957_v20  ;;  %15540 = vst [vmem:[#allocation114_spill] sm:$0xff] %v12962_v11  ;;  %v4045_v52 = vrot.slane %v15546_v10, 2 }
 0x436   : > { %9892 = vmatprep.mubr.msk.f32.mxu0 %vm2937_vm6, %v12948_v46  ;;  %v4040_v46 = vrot.slane %v15542_v3, 2  ;;  %v12979_v3 = vsel %vm3969_vm8, %v4042_v25, %v4043_v9  ;;  %v12996_v25 = vld [vmem:[%s14811_s3 + $0x8] sm:$0xff] }
 0x437   : > { %1552 = vbcast.lane.b32.xlu1 %v12827_v44, 280  ;;  %15545 = vst [vmem:[#allocation145_spill] sm:$0xff] %v12979_v3  ;;  %15548 = vst [vmem:[#allocation133_spill] sm:$0xff] %v12996_v25  ;;  %9560 = vmatprep.subr.msk.mxu1 %vm3066_vm2, %v12996_v25 }
 0x438   : > { %1138 = vbcast.lane.b32.xlu0 %v12598_v8, 280  ;;  %v12972_v59 = vsel %vm3969_vm8, %v4038_v49, %v4040_v46 }
 0x439   : > { %9893 = vmatmul.mubr.msk.f32.gmra.mrb[38].mxu0 %vm2937_vm6, %v12957_v20  ;;  %v1902_v58 = vpop.permute.xlu1 %1901  ;;  %v1898_v30 = vpop.permute.xlu0 %1897  ;;  %15544 = vst [vmem:[#allocation53_spill] sm:$0xff] %v12972_v59  ;;  %v2497_v20 = vsel %vm2432_vm3, %v1074_v55, %v1488_v18 }
 0x43a   : > { %9895 = vmatprep.mubr.msk.f32.mxu0 %vm2937_vm6, %v12962_v11  ;;  %v4047_v11 = vrot.slane %v12438_v28, 2  ;;  %v2588_v36 = vsel %vm2523_vm5, %v2497_v20, %v1902_v58  ;;  %v13002_v58 = vsel %vm3969_vm8, %v4043_v9, %v4045_v52  ;;  %v15551_v20 = vld [vmem:[#allocation29_spill] sm:$0xff] }
 0x43b   : > { %1556 = vbcast.lane.b32.xlu1 %v12827_v44, 288  ;;  %v2587_v44 = vsel %vm2523_vm5, %v2496_v16, %v1898_v30  ;;  %15549 = vst [vmem:[#allocation116_spill] sm:$0xff] %v13002_v58  ;;  %v4052_v16 = vrot.slane %v15551_v20, 2 }
 0x43c   : > { %1142 = vbcast.lane.b32.xlu0 %v12598_v8, 288  ;;  %v13008_v55 = vsel %vm3969_vm8, %v4045_v52, %v4047_v11 }
 0x43d   : > { %9896 = vmatmul.mubr.msk.f32.gmra.mrb[40].mxu0 %vm2937_vm6, %v12972_v59  ;;  %v2316_v8 = vpop.permute.xlu1 %2315  ;;  %v2312_v46 = vpop.permute.xlu0 %2311  ;;  %15550 = vst [vmem:[#allocation19_spill] sm:$0xff] %v13008_v55 }
 0x43e   : > { %9898 = vmatprep.mubr.msk.f32.mxu0 %vm2937_vm6, %v12979_v3  ;;  %v12988_v49 = vsel %vm2614_vm4, %v2588_v36, %v2316_v8  ;;  %v12991_v18 = vsel %vm2614_vm4, %v2587_v44, %v2312_v46  ;;  %v15552_v44 = vld [vmem:[#allocation73_spill] sm:$0xff]  ;;  %v15553_v46 = vrot.slane %v12905_v24, 1 }
 0x43f   : > { %15547 = vst [vmem:[#allocation55_spill] sm:$0xff] %v12991_v18  ;;  %v2906_v30 = vrot.slane %v12988_v49, 1  ;;  %1970 = vbcast.lane.b32.xlu1 %v12872_v37, 288  ;;  %v2904_v36 = vrot.slane %v12991_v18, 1  ;;  %v4049_v8 = vrot.slane %v15552_v44, 2 }
 0x440   : > { %1966 = vbcast.lane.b32.xlu0 %v12872_v37, 280 }
 0x441   : > { %9899 = vmatmul.mubr.msk.f32.gmra.mrb[42].mxu0 %vm2937_vm6, %v13002_v58  ;;  %v1085_v37 = vpop.permute.xlu1 %1084  ;;  %v1081_v9 = vpop.permute.xlu0 %1080  ;;  %v13019_v3 = vsel %vm2790_vm7, %v15553_v46, %v2904_v36  ;;  %v13022_v52 = vsel %vm2790_vm7, %v2904_v36, %v2906_v30  ;;  %v15556_v58 = vld [vmem:[#allocation93_spill] sm:$0xff]  ;;  %v13030_v44 = vsel %vm3969_vm8, %v4047_v11, %v4049_v8  ;;  %v4056_v36 = vrot.slane %v12578_v6, 2  ;;  %v15559_v46 = vld [vmem:[#allocation3_spill] sm:$0xff]  ;;  %v15569_v6 = vld [vmem:[#allocation8_spill] sm:$0xff] }
 0x442   : > { %9901 = vmatprep.mubr.msk.f32.mxu0 %vm2937_vm6, %v13008_v55  ;;  %15554 = vst [vmem:[#allocation118_spill] sm:$0xff] %v13019_v3  ;;  %15555 = vst [vmem:[#allocation56_spill] sm:$0xff] %v13022_v52  ;;  %9441 = vmatprep.mubr.msk.f32.mxu1 %vm2937_vm6, %v13019_v3  ;;  %v4051_v59 = vrot.slane %v15556_v58, 2  ;;  %v15560_v3 = vld [vmem:[#allocation4_spill] sm:$0xff]  ;;  %v4054_v8 = vrot.slane %v12461_v47, 2  ;;  %v13107_v47 = vsel %vm3969_vm8, %v4065_v7, %v4067_v38 }
 0x443   : > { %2384 = vbcast.lane.b32.xlu1 %v12901_v33, 288  ;;  %15557 = vst [vmem:[#allocation137_spill] sm:$0xff] %v13030_v44  ;;  %9442 = vmatmul.mubr.msk.f32.gmra.mrb[68].mxu1 %vm2937_vm6, %v13022_v52  ;;  %v13042_v55 = vrot.slane %v15560_v3, %v15559_v46  ;;  %15570 = vst [vmem:[#allocation21_spill] sm:$0xff] %v13107_v47 }
 0x444   : > { %2380 = vbcast.lane.b32.xlu0 %v12901_v33, 280  ;;  %v13037_v30 = vsel %vm3969_vm8, %v4051_v59, %v4052_v16  ;;  %v13050_v59 = vsel %vm3969_vm8, %v4052_v16, %v4054_v8  ;;  %v13055_v52 = vsel %vm3969_vm8, %v4054_v8, %v4056_v36  ;;  %v13069_v8 = vsel %vm3969_vm8, %v4056_v36, %v4058_v31  ;;  %v15567_v36 = vld [vmem:[#allocation108_spill] sm:$0xff] }
 0x445   : > { %9902 = vmatmul.mubr.msk.f32.gmra.mrb[44].mxu0 %vm2937_vm6, %v13030_v44  ;;  %15558 = vst [vmem:[#allocation135_spill] sm:$0xff] %v13037_v30  ;;  %v1499_v33 = vpop.permute.xlu1 %1498  ;;  %v1495_v11 = vpop.permute.xlu0 %1494  ;;  %15561 = vst [vmem:[#allocation101_spill] sm:$0xff] %v13050_v59  ;;  %v4061_v44 = vrot.slane %v12628_v5, 2  ;;  %v4069_v5 = vrot.slane %v12755_v43, 2 }
 0x446   : > { %9904 = vmatprep.mubr.msk.f32.mxu0 %vm2937_vm6, %v13037_v30  ;;  %15562 = vst [vmem:[#allocation119_spill] sm:$0xff] %v13055_v52  ;;  %v15563_v30 = vld [vmem:[#allocation33_spill] sm:$0xff]  ;;  %15564 = vst [vmem:[#allocation57_spill] sm:$0xff] %v13069_v8  ;;  %v2498_v62 = vsel %vm2432_vm3, %v1081_v9, %v1495_v11  ;;  %v2499_v9 = vsel %vm2432_vm3, %v1085_v37, %v1499_v33  ;;  %v4076_v33 = vrot.slane %v12797_v1, 2 }
 0x447   : > { %1153 = vbcast.lane.b32.xlu1 %v13042_v55, 264  ;;  %v13060_v51 = vrot.slane %v15563_v30, %v15559_v46  ;;  %v13083_v31 = vsel %vm3969_vm8, %v4061_v44, %v4063_v4 }
 0x448   : > { %1149 = vbcast.lane.b32.xlu0 %v13042_v55, 256  ;;  %15566 = vst [vmem:[#allocation58_spill] sm:$0xff] %v13083_v31 }
 0x449   : > { %9905 = vmatmul.mubr.msk.f32.gmra.mrb[46].mxu0 %vm2937_vm6, %v13050_v59  ;;  %v1503_v19 = vpop.permute.xlu1 %1502  ;;  %v1089_v16 = vpop.permute.xlu0 %1088  ;;  %v13074_v59 = vsel %vm3969_vm8, %v4060_v15, %v4061_v44  ;;  %v13087_v15 = vrot.slane %v15567_v36, %v15559_v46 }
 0x44a   : > { %9907 = vmatprep.mubr.msk.f32.mxu0 %vm2937_vm6, %v13055_v52  ;;  %15565 = vst [vmem:[#allocation121_spill] sm:$0xff] %v13074_v59  ;;  %v2500_v11 = vsel %vm2432_vm3, %v1089_v16, %v1503_v19 }
 0x44b   : > { %1567 = vbcast.lane.b32.xlu1 %v13060_v51, 264 }
 0x44c   : > { %1563 = vbcast.lane.b32.xlu0 %v13060_v51, 256 }
 0x44d   : > { %9908 = vmatmul.mubr.msk.f32.gmra.mrb[48].mxu0 %vm2937_vm6, %v13069_v8  ;;  %v1913_v52 = vpop.permute.xlu1 %1912  ;;  %v1909_v29 = vpop.permute.xlu0 %1908  ;;  %v4070_v8 = vrot.slane %v12727_v61, 2  ;;  %v13102_v61 = vrot.slane %v15569_v6, %v15559_v46 }
 0x44e   : > { %9910 = vmatprep.mubr.msk.f32.mxu0 %vm2937_vm6, %v13074_v59  ;;  %v13093_v59 = vsel %vm3969_vm8, %v4063_v4, %v4065_v7  ;;  %v2589_v4 = vsel %vm2523_vm5, %v2498_v62, %v1909_v29  ;;  %v4074_v62 = vrot.slane %v12776_v48, 2  ;;  %v2590_v38 = vsel %vm2523_vm5, %v2499_v9, %v1913_v52 }
 0x44f   : > { %1571 = vbcast.lane.b32.xlu1 %v13060_v51, 272  ;;  %15568 = vst [vmem:[#allocation123_spill] sm:$0xff] %v13093_v59  ;;  %v13112_v42 = vsel %vm3969_vm8, %v4069_v5, %v4070_v8 }
 0x450   : > { %1157 = vbcast.lane.b32.xlu0 %v13042_v55, 272  ;;  %15571 = vst [vmem:[#allocation138_spill] sm:$0xff] %v13112_v42 }
 0x451   : > { %9911 = vmatmul.mubr.msk.f32.gmra.mrb[50].mxu0 %vm2937_vm6, %v13083_v31  ;;  %v2323_v21 = vpop.permute.xlu1 %2322  ;;  %v1917_v44 = vpop.permute.xlu0 %1916  ;;  %v4072_v31 = vrot.slane %v12759_v63, 2 }
 0x452   : > { %9913 = vmatprep.mubr.msk.f32.mxu0 %vm2937_vm6, %v13093_v59  ;;  %v13117_v46 = vsel %vm2614_vm4, %v2589_v4, %v2323_v21  ;;  %v2591_v29 = vsel %vm2523_vm5, %v2500_v11, %v1917_v44 }
 0x453   : > { %1981 = vbcast.lane.b32.xlu1 %v13087_v15, 264  ;;  %15572 = vst [vmem:[#allocation103_spill] sm:$0xff] %v13117_v46  ;;  %v13133_v19 = vsel %vm3969_vm8, %v4070_v8, %v4072_v31  ;;  %v2908_v52 = vrot.slane %v13117_v46, 1  ;;  %v13144_v4 = vsel %vm3969_vm8, %v4072_v31, %v4074_v62  ;;  %v4079_v8 = vrot.slane %v12908_v50, 2 }
 0x454   : > { %1977 = vbcast.lane.b32.xlu0 %v13087_v15, 256  ;;  %15575 = vst [vmem:[#allocation62_spill] sm:$0xff] %v13133_v19  ;;  %15576 = vst [vmem:[#allocation146_spill] sm:$0xff] %v13144_v4  ;;  %v13161_v31 = vsel %vm3969_vm8, %v4074_v62, %v4076_v33  ;;  %v4085_v33 = vrot.slane %v12988_v49, 2 }
 0x455   : > { %9914 = vmatmul.mubr.msk.f32.gmra.mrb[52].mxu0 %vm2937_vm6, %v13107_v47  ;;  %v2331_v5 = vpop.permute.xlu1 %2330  ;;  %v2327_v7 = vpop.permute.xlu0 %2326  ;;  %15579 = vst [vmem:[#allocation125_spill] sm:$0xff] %v13161_v31 }
 0x456   : > { %9916 = vmatprep.mubr.msk.f32.mxu0 %vm2937_vm6, %v13112_v42  ;;  %v13127_v37 = vsel %vm2614_vm4, %v2591_v29, %v2331_v5  ;;  %v13130_v21 = vsel %vm2614_vm4, %v2590_v38, %v2327_v7  ;;  %v4078_v29 = vrot.slane %v12890_v34, 2  ;;  %v4081_v5 = vrot.slane %v12905_v24, 2 }
 0x457   : > { %15573 = vst [vmem:[#allocation7_spill] sm:$0xff] %v13127_v37  ;;  %15574 = vst [vmem:[#allocation128_spill] sm:$0xff] %v13130_v21  ;;  %2391 = vbcast.lane.b32.xlu1 %v13102_v61, 256  ;;  %v2909_v16 = vrot.slane %v13130_v21, 1  ;;  %v2911_v44 = vrot.slane %v13127_v37, 1 }
 0x458   : > { %1985 = vbcast.lane.b32.xlu0 %v13087_v15, 272  ;;  %v13169_v7 = vsel %vm3969_vm8, %v4078_v29, %v4079_v8 }
 0x459   : > { %9917 = vmatmul.mubr.msk.f32.gmra.mrb[54].mxu0 %vm2937_vm6, %v13133_v19  ;;  %v1507_v1 = vpop.permute.xlu1 %1506  ;;  %v1093_v9 = vpop.permute.xlu0 %1092  ;;  %v13150_v11 = vsel %vm2790_vm7, %v2908_v52, %v2909_v16  ;;  %v13153_v38 = vsel %vm2790_vm7, %v2909_v16, %v2911_v44  ;;  %15580 = vst [vmem:[#allocation60_spill] sm:$0xff] %v13169_v7  ;;  %v4083_v52 = vrot.slane %v12991_v18, 2 }
 0x45a   : > { %9919 = vmatprep.mubr.msk.f32.mxu0 %vm2937_vm6, %v13144_v4  ;;  %15577 = vst [vmem:[#allocation59_spill] sm:$0xff] %v13150_v11  ;;  %15578 = vst [vmem:[#allocation105_spill] sm:$0xff] %v13153_v38  ;;  %9444 = vmatprep.mubr.msk.f32.mxu1 %vm2937_vm6, %v13150_v11  ;;  %v4088_v11 = vrot.slane %v13130_v21, 2 }
 0x45b   : > { %9445 = vmatmul.mubr.msk.f32.gmra.mrb[70].mxu1 %vm2937_vm6, %v13153_v38  ;;  %2399 = vbcast.lane.b32.xlu1 %v13102_v61, 272  ;;  %v13176_v38 = vsel %vm3969_vm8, %v4079_v8, %v4081_v5  ;;  %v13183_v29 = vsel %vm3969_vm8, %v4081_v5, %v4083_v52  ;;  %v4087_v8 = vrot.slane %v13117_v46, 2  ;;  %v13191_v4 = vsel %vm3969_vm8, %v4083_v52, %v4085_v33 }
 0x45c   : > { %2395 = vbcast.lane.b32.xlu0 %v13102_v61, 264  ;;  %15581 = vst [vmem:[#allocation127_spill] sm:$0xff] %v13176_v38  ;;  %15582 = vst [vmem:[#allocation61_spill] sm:$0xff] %v13183_v29 }
 0x45d   : > { %9920 = vmatmul.mubr.msk.f32.gmra.mrb[56].mxu0 %vm2937_vm6, %v13161_v31  ;;  %v1511_v16 = vpop.permute.xlu1 %1510  ;;  %v1097_v62 = vpop.permute.xlu0 %1096  ;;  %v4090_v31 = vrot.slane %v13127_v37, 2  ;;  %15583 = vst [vmem:[#allocation130_spill] sm:$0xff] %v13191_v4 }
 0x45e   : > { %9922 = vmatprep.mubr.msk.f32.mxu0 %vm2937_vm6, %v13169_v7  ;;  %v2502_v5 = vsel %vm2432_vm3, %v1097_v62, %v1511_v16 }
 0x45f   : > { %1575 = vbcast.lane.b32.xlu1 %v13060_v51, 280  ;;  %v13211_v16 = vsel %vm3969_vm8, %v4088_v11, %v4090_v31 }
 0x460   : > { %1161 = vbcast.lane.b32.xlu0 %v13042_v55, 280  ;;  %15586 = vst [vmem:[#allocation107_spill] sm:$0xff] %v13211_v16 }
 0x461   : > { %9923 = vmatmul.mubr.msk.f32.gmra.mrb[58].mxu0 %vm2937_vm6, %v13176_v38  ;;  %v1925_v7 = vpop.permute.xlu1 %1924  ;;  %v1921_v49 = vpop.permute.xlu0 %1920  ;;  %v2501_v38 = vsel %vm2432_vm3, %v1093_v9, %v1507_v1 }
 0x462   : > { %9925 = vmatprep.mubr.msk.f32.mxu0 %vm2937_vm6, %v13183_v29  ;;  %v13200_v29 = vsel %vm3969_vm8, %v4087_v8, %v4088_v11  ;;  %v2593_v19 = vsel %vm2523_vm5, %v2502_v5, %v1925_v7  ;;  %v2592_v42 = vsel %vm2523_vm5, %v2501_v38, %v1921_v49 }
 0x463   : > { %1579 = vbcast.lane.b32.xlu1 %v13060_v51, 288  ;;  %15584 = vst [vmem:[#allocation23_spill] sm:$0xff] %v13200_v29 }
 0x464   : > { %1165 = vbcast.lane.b32.xlu0 %v13042_v55, 288 }
 0x465   : > { %9926 = vmatmul.mubr.msk.f32.gmra.mrb[60].mxu0 %vm2937_vm6, %v13191_v4  ;;  %v2339_v51 = vpop.permute.xlu1 %2338  ;;  %v2335_v52 = vpop.permute.xlu0 %2334 }
 0x466   : > { %9928 = vmatprep.mubr.msk.f32.mxu0 %vm2937_vm6, %v13200_v29  ;;  %v2684_v1 = vsel %vm2614_vm4, %v2593_v19, %v2339_v51  ;;  %v13208_v9 = vsel %vm2614_vm4, %v2592_v42, %v2335_v52 }
 0x467   : > { %15585 = vst [vmem:[#allocation139_spill] sm:$0xff] %v13208_v9  ;;  %v2915_v55 = vrot.slane %v2684_v1, 1  ;;  %v4094_v62 = vrot.slane %v2684_v1, 2  ;;  %1993 = vbcast.lane.b32.xlu1 %v13087_v15, 288  ;;  %v2913_v7 = vrot.slane %v13208_v9, 1  ;;  %v4092_v38 = vrot.slane %v13208_v9, 2 }
 0x468   : > { %1989 = vbcast.lane.b32.xlu0 %v13087_v15, 280  ;;  %v15591_v15 = vld [vmem:[#allocation2_spill] sm:$0xff] }
 0x469   : > { %9929 = vmatmul.mubr.msk.f32.gmra.mrb[62].mxu0 %vm2937_vm6, %v13211_v16  ;;  %v1108_v19 = vpop.permute.xlu1 %1107  ;;  %v1104_v33 = vpop.permute.xlu0 %1103  ;;  %v13220_v42 = vsel %vm2790_vm7, %v2911_v44, %v2913_v7  ;;  %v13223_v11 = vsel %vm3969_vm8, %v4090_v31, %v4092_v38  ;;  %v13226_v49 = vsel %vm2790_vm7, %v2913_v7, %v2915_v55  ;;  %v13229_v8 = vsel %vm3969_vm8, %v4092_v38, %v4094_v62 }
 0x46a   : > { %15587 = vst [vmem:[#allocation140_spill] sm:$0xff] %v13220_v42  ;;  %15588 = vst [vmem:[#allocation141_spill] sm:$0xff] %v13223_v11  ;;  %9447 = vmatprep.mubr.msk.f32.mxu1 %vm2937_vm6, %v13220_v42  ;;  %9931 = vmatprep.mubr.msk.f32.mxu0 %vm2937_vm6, %v13223_v11  ;;  %v13243_v44 = vrot.slane %v15563_v30, %v15591_v15  ;;  %v13247_v51 = vrot.slane %v15560_v3, %v15591_v15 }
 0x46b   : > { %15589 = vst [vmem:[#allocation110_spill] sm:$0xff] %v13226_v49  ;;  %15590 = vst [vmem:[#allocation132_spill] sm:$0xff] %v13229_v8  ;;  %9448 = vmatmul.mubr.msk.f32.gmra.mrb[72].mxu1 %vm2937_vm6, %v13226_v49  ;;  %2407 = vbcast.lane.b32.xlu1 %v13102_v61, 288  ;;  %v13261_v3 = vrot.slane %v15569_v6, %v15591_v15 }
 0x46c   : > { %2403 = vbcast.lane.b32.xlu0 %v13102_v61, 280  ;;  %v13255_v61 = vrot.slane %v15567_v36, %v15591_v15 }
 0x46d   : > { %9932 = vmatmul.mubr.msk.f32.gmra.mrb[64].mxu0 %vm2937_vm6, %v13229_v8  ;;  %v1522_v31 = vpop.permute.xlu1 %1521  ;;  %v1518_v5 = vpop.permute.xlu0 %1517 }
 0x46e   : > { %v2503_v62 = vsel %vm2432_vm3, %v1104_v33, %v1518_v5  ;;  %v2504_v36 = vsel %vm2432_vm3, %v1108_v19, %v1522_v31 }
 0x46f   : > { %1586 = vbcast.lane.b32.xlu1 %v13243_v44, 256 }
 0x470   : > { %1172 = vbcast.lane.b32.xlu0 %v13247_v51, 256 }
 0x471   : > { %v1526_v52 = vpop.permute.xlu1 %1525  ;;  %v1112_v1 = vpop.permute.xlu0 %1111 }
 0x472   : > { %v2505_v8 = vsel %vm2432_vm3, %v1112_v1, %v1526_v52 }
 0x473   : > { %1590 = vbcast.lane.b32.xlu1 %v13243_v44, 264 }
 0x474   : > { %1176 = vbcast.lane.b32.xlu0 %v13247_v51, 264 }
 0x475   : > { %v1936_v30 = vpop.permute.xlu1 %1935  ;;  %v1932_v55 = vpop.permute.xlu0 %1931 }
 0x476   : > { %v2594_v49 = vsel %vm2523_vm5, %v2503_v62, %v1932_v55  ;;  %v2595_v6 = vsel %vm2523_vm5, %v2504_v36, %v1936_v30 }
 0x477   : > { %2004 = vbcast.lane.b32.xlu1 %v13255_v61, 264 }
 0x478   : > { %2000 = vbcast.lane.b32.xlu0 %v13255_v61, 256 }
 0x479   : > { %v2346_v7 = vpop.permute.xlu1 %2345  ;;  %v1940_v38 = vpop.permute.xlu0 %1939 }
 0x47a   : > { %v13266_v42 = vsel %vm2614_vm4, %v2594_v49, %v2346_v7  ;;  %v2596_v15 = vsel %vm2523_vm5, %v2505_v8, %v1940_v38 }
 0x47b   : > { %15592 = vst [vmem:[#allocation66_spill] sm:$0xff] %v13266_v42  ;;  %2418 = vbcast.lane.b32.xlu1 %v13261_v3, 264  ;;  %v2917_v55 = vrot.slane %v13266_v42, 1  ;;  %v4096_v19 = vrot.slane %v13266_v42, 2 }
 0x47c   : > { %2414 = vbcast.lane.b32.xlu0 %v13261_v3, 256 }
 0x47d   : > { %v2354_v33 = vpop.permute.xlu1 %2353  ;;  %v2350_v5 = vpop.permute.xlu0 %2349 }
 0x47e   : > { %v13275_v11 = vsel %vm2614_vm4, %v2596_v15, %v2354_v33  ;;  %v13278_v49 = vsel %vm2614_vm4, %v2595_v6, %v2350_v5 }
 0x47f   : > { %15593 = vst [vmem:[#allocation134_spill] sm:$0xff] %v13275_v11  ;;  %15594 = vst [vmem:[#allocation68_spill] sm:$0xff] %v13278_v49  ;;  %1594 = vbcast.lane.b32.xlu1 %v13243_v44, 272  ;;  %v2918_v31 = vrot.slane %v13278_v49, 1  ;;  %v4097_v52 = vrot.slane %v13278_v49, 2  ;;  %v2920_v8 = vrot.slane %v13275_v11, 1 }
 0x480   : > { %v4099_v1 = vrot.slane %v13275_v11, 2  ;;  %1180 = vbcast.lane.b32.xlu0 %v13247_v51, 272 }
 0x481   : > { %v1530_v30 = vpop.permute.xlu1 %1529  ;;  %v13289_v7 = vsel %vm2790_vm7, %v2917_v55, %v2918_v31  ;;  %v13292_v38 = vsel %vm3969_vm8, %v4096_v19, %v4097_v52  ;;  %v13295_v36 = vsel %vm2790_vm7, %v2918_v31, %v2920_v8 }
 0x482   : > { %v1116_v62 = vpop.permute.xlu0 %1115  ;;  %15595 = vst [vmem:[#allocation147_spill] sm:$0xff] %v13289_v7  ;;  %15596 = vst [vmem:[#allocation64_spill] sm:$0xff] %v13292_v38  ;;  %v13298_v6 = vsel %vm3969_vm8, %v4097_v52, %v4099_v1  ;;  %9450 = vmatprep.mubr.msk.f32.mxu1 %vm2937_vm6, %v13289_v7  ;;  %9934 = vmatprep.mubr.msk.f32.mxu0 %vm2937_vm6, %v13292_v38 }
 0x483   : > { %15597 = vst [vmem:[#allocation136_spill] sm:$0xff] %v13295_v36  ;;  %15598 = vst [vmem:[#allocation70_spill] sm:$0xff] %v13298_v6  ;;  %9451 = vmatmul.mubr.msk.f32.gmra.mrb[74].mxu1 %vm2937_vm6, %v13295_v36  ;;  %9935 = vmatmul.mubr.msk.f32.gmra.mrb[66].mxu0 %vm2937_vm6, %v13298_v6  ;;  %v2506_v19 = vsel %vm2432_vm3, %v1116_v62, %v1530_v30 }
 0x484   : > { %1598 = vbcast.lane.b32.xlu1 %v13243_v44, 280  ;;  %1184 = vbcast.lane.b32.xlu0 %v13247_v51, 280 }
 0x485   : > { %v1534_v15 = vpop.permute.xlu1 %1533 }
 0x486   : > { %v1120_v33 = vpop.permute.xlu0 %1119 }
 0x487   : > { %v2507_v31 = vsel %vm2432_vm3, %v1120_v33, %v1534_v15 }
 0x488   : > { %2012 = vbcast.lane.b32.xlu1 %v13255_v61, 280  ;;  %2008 = vbcast.lane.b32.xlu0 %v13255_v61, 272 }
 0x489   : > { %v1948_v5 = vpop.permute.xlu1 %1947 }
 0x48a   : > { %v1944_v55 = vpop.permute.xlu0 %1943  ;;  %v2598_v52 = vsel %vm2523_vm5, %v2507_v31, %v1948_v5 }
 0x48b   : > { %v2597_v36 = vsel %vm2523_vm5, %v2506_v19, %v1944_v55 }
 0x48c   : > { %2426 = vbcast.lane.b32.xlu1 %v13261_v3, 280  ;;  %2422 = vbcast.lane.b32.xlu0 %v13261_v3, 272 }
 0x48d   : > { %v2362_v7 = vpop.permute.xlu1 %2361 }
 0x48e   : > { %v2358_v6 = vpop.permute.xlu0 %2357  ;;  %v2689_v38 = vsel %vm2614_vm4, %v2598_v52, %v2362_v7 }
 0x48f   : > { %v13320_v16 = vsel %vm2614_vm4, %v2597_v36, %v2358_v6  ;;  %v2924_v29 = vrot.slane %v2689_v38, 1  ;;  %v4103_v4 = vrot.slane %v2689_v38, 2 }
 0x490   : > { %15599 = vst [vmem:[#allocation143_spill] sm:$0xff] %v13320_v16  ;;  %v2922_v30 = vrot.slane %v13320_v16, 1  ;;  %v4101_v62 = vrot.slane %v13320_v16, 2  ;;  %1602 = vbcast.lane.b32.xlu1 %v13243_v44, 288  ;;  %1188 = vbcast.lane.b32.xlu0 %v13247_v51, 288 }
 0x491   : > { %v1131_v15 = vpop.permute.xlu1 %1130 }
 0x492   : > { %v1127_v33 = vpop.permute.xlu0 %1126  ;;  %v13327_v5 = vsel %vm2790_vm7, %v2920_v8, %v2922_v30  ;;  %v13330_v7 = vsel %vm3969_vm8, %v4099_v1, %v4101_v62  ;;  %v13333_v36 = vsel %vm2790_vm7, %v2922_v30, %v2924_v29  ;;  %v13336_v38 = vsel %vm3969_vm8, %v4101_v62, %v4103_v4 }
 0x493   : > { %15600 = vst [vmem:[#allocation142_spill] sm:$0xff] %v13327_v5  ;;  %15601 = vst [vmem:[#allocation35_spill] sm:$0xff] %v13330_v7  ;;  %9453 = vmatprep.mubr.msk.f32.mxu1 %vm2937_vm6, %v13327_v5  ;;  %9937 = vmatprep.mubr.msk.f32.mxu0 %vm2937_vm6, %v13330_v7 }
 0x494   : > { %15602 = vst [vmem:[#allocation67_spill] sm:$0xff] %v13333_v36  ;;  %15603 = vst [vmem:[#allocation10_spill] sm:$0xff] %v13336_v38  ;;  %9454 = vmatmul.mubr.msk.f32.gmra.mrb[76].mxu1 %vm2937_vm6, %v13333_v36  ;;  %9938 = vmatmul.mubr.msk.f32.gmra.mrb[68].mxu0 %vm2937_vm6, %v13336_v38 }
 0x495   : > { %2430 = vbcast.lane.b32.xlu1 %v13261_v3, 288  ;;  %2016 = vbcast.lane.b32.xlu0 %v13255_v61, 288  ;;  %v1545_v29 = vpop.permute.xlu1 %1544 }
 0x496   : > { %v1541_v44 = vpop.permute.xlu0 %1540  ;;  %v2509_v30 = vsel %vm2432_vm3, %v1131_v15, %v1545_v29 }
 0x497   : > { %v2508_v6 = vsel %vm2432_vm3, %v1127_v33, %v1541_v44 }
 0x499   : > { %v1549_v4 = vpop.permute.xlu1 %1548 }
 0x49a   : > { %v1135_v51 = vpop.permute.xlu0 %1134 }
 0x49b   : > { %v2510_v3 = vsel %vm2432_vm3, %v1135_v51, %v1549_v4 }
 0x49d   : > { %v1959_v8 = vpop.permute.xlu1 %1958 }
 0x49e   : > { %v1955_v1 = vpop.permute.xlu0 %1954  ;;  %v2600_v61 = vsel %vm2523_vm5, %v2509_v30, %v1959_v8 }
 0x49f   : > { %v2599_v31 = vsel %vm2523_vm5, %v2508_v6, %v1955_v1 }
 0x4a1   : > { %v2369_v55 = vpop.permute.xlu1 %2368 }
 0x4a2   : > { %v1963_v19 = vpop.permute.xlu0 %1962  ;;  %v13351_v52 = vsel %vm2614_vm4, %v2599_v31, %v2369_v55 }
 0x4a3   : > { %15604 = vst [vmem:[#allocation39_spill] sm:$0xff] %v13351_v52  ;;  %v2601_v62 = vsel %vm2523_vm5, %v2510_v3, %v1963_v19  ;;  %v2926_v44 = vrot.slane %v13351_v52, 1  ;;  %v4105_v1 = vrot.slane %v13351_v52, 2 }
 0x4a5   : > { %v2377_v36 = vpop.permute.xlu1 %2376 }
 0x4a6   : > { %v2373_v5 = vpop.permute.xlu0 %2372  ;;  %v13358_v38 = vsel %vm2614_vm4, %v2601_v62, %v2377_v36 }
 0x4a7   : > { %15605 = vst [vmem:[#allocation72_spill] sm:$0xff] %v13358_v38  ;;  %v13361_v33 = vsel %vm2614_vm4, %v2600_v61, %v2373_v5  ;;  %v2929_v4 = vrot.slane %v13358_v38, 1  ;;  %v4108_v51 = vrot.slane %v13358_v38, 2 }
 0x4a8   : > { %15606 = vst [vmem:[#allocation89_spill] sm:$0xff] %v13361_v33  ;;  %v2927_v15 = vrot.slane %v13361_v33, 1  ;;  %v4106_v29 = vrot.slane %v13361_v33, 2 }
 0x4a9   : > { %v1553_v8 = vpop.permute.xlu1 %1552 }
 0x4aa   : > { %v1139_v6 = vpop.permute.xlu0 %1138  ;;  %v13370_v36 = vsel %vm2790_vm7, %v2926_v44, %v2927_v15  ;;  %v13373_v5 = vsel %vm3969_vm8, %v4105_v1, %v4106_v29  ;;  %v13376_v55 = vsel %vm2790_vm7, %v2927_v15, %v2929_v4  ;;  %v13379_v19 = vsel %vm3969_vm8, %v4106_v29, %v4108_v51 }
 0x4ab   : > { %15607 = vst [vmem:[#allocation74_spill] sm:$0xff] %v13370_v36  ;;  %15608 = vst [vmem:[#allocation73_spill] sm:$0xff] %v13373_v5  ;;  %9456 = vmatprep.mubr.msk.f32.mxu1 %vm2937_vm6, %v13370_v36  ;;  %9940 = vmatprep.mubr.msk.f32.mxu0 %vm2937_vm6, %v13373_v5  ;;  %v2511_v62 = vsel %vm2432_vm3, %v1139_v6, %v1553_v8 }
 0x4ac   : > { %15609 = vst [vmem:[#allocation3_spill] sm:$0xff] %v13376_v55  ;;  %15610 = vst [vmem:[#allocation4_spill] sm:$0xff] %v13379_v19  ;;  %9457 = vmatmul.mubr.msk.f32.gmra.mrb[78].mxu1 %vm2937_vm6, %v13376_v55  ;;  %9941 = vmatmul.mubr.msk.f32.gmra.mrb[70].mxu0 %vm2937_vm6, %v13379_v19 }
 0x4ad   : > { %v1557_v31 = vpop.permute.xlu1 %1556 }
 0x4ae   : > { %v1143_v30 = vpop.permute.xlu0 %1142 }
 0x4af   : > { %v2512_v44 = vsel %vm2432_vm3, %v1143_v30, %v1557_v31 }
 0x4b1   : > { %v1971_v3 = vpop.permute.xlu1 %1970 }
 0x4b2   : > { %v1967_v61 = vpop.permute.xlu0 %1966  ;;  %v2603_v1 = vsel %vm2523_vm5, %v2512_v44, %v1971_v3  ;;  %v15620_v44 = vld [vmem:[#allocation148_spill] sm:$0xff] }
 0x4b3   : > { %v2602_v15 = vsel %vm2523_vm5, %v2511_v62, %v1967_v61  ;;  %v15619_v62 = vld [vmem:[#allocation79_spill] sm:$0xff] }
 0x4b5   : > { %v2385_v29 = vpop.permute.xlu1 %2384 }
 0x4b6   : > { %v2381_v36 = vpop.permute.xlu0 %2380  ;;  %v2694_v5 = vsel %vm2614_vm4, %v2603_v1, %v2385_v29  ;;  %v15621_v29 = vld [vmem:[#allocation150_spill] sm:$0xff] }
 0x4b7   : > { %v13395_v55 = vsel %vm2614_vm4, %v2602_v15, %v2381_v36  ;;  %v2933_v19 = vrot.slane %v2694_v5, 1  ;;  %v4112_v7 = vrot.slane %v2694_v5, 2  ;;  %v15618_v5 = vld [vmem:[#allocation13_spill] sm:$0xff] }
 0x4b8   : > { %15611 = vst [vmem:[#allocation33_spill] sm:$0xff] %v13395_v55  ;;  %v2931_v47 = vrot.slane %v13395_v55, 1  ;;  %v4110_v59 = vrot.slane %v13395_v55, 2 }
 0x4b9   : > { %v1154_v8 = vpop.permute.xlu1 %1153 }
 0x4ba   : > { %v1150_v6 = vpop.permute.xlu0 %1149  ;;  %v13400_v31 = vsel %vm2790_vm7, %v2929_v4, %v2931_v47  ;;  %v13403_v30 = vsel %vm3969_vm8, %v4108_v51, %v4110_v59  ;;  %v13406_v3 = vsel %vm2790_vm7, %v2931_v47, %v2933_v19  ;;  %v13409_v36 = vsel %vm3969_vm8, %v4110_v59, %v4112_v7  ;;  %v15616_v4 = vld [vmem:[#allocation153_spill] sm:$0xff]  ;;  %v15617_v7 = vld [vmem:[#allocation152_spill] sm:$0xff] }
 0x4bb   : > { %15612 = vst [vmem:[#allocation108_spill] sm:$0xff] %v13400_v31  ;;  %15613 = vst [vmem:[#allocation8_spill] sm:$0xff] %v13403_v30  ;;  %9459 = vmatprep.mubr.msk.f32.mxu1 %vm2937_vm6, %v13400_v31  ;;  %9943 = vmatprep.mubr.msk.f32.mxu0 %vm2937_vm6, %v13403_v30  ;;  %v15095_v59 = vrot.slane %v12996_v25, 4 }
 0x4bc   : > { %15614 = vst [vmem:[#allocation2_spill] sm:$0xff] %v13406_v3  ;;  %15615 = vst [vmem:[#allocation161_spill] sm:$0xff] %v13409_v36  ;;  %9460 = vmatmul.mubr.msk.f32.gmra.mrb[80].mxu1 %vm2937_vm6, %v13406_v3  ;;  %9944 = vmatmul.mubr.msk.f32.gmra.mrb[72].mxu0 %vm2937_vm6, %v13409_v36  ;;  %v15622_v3 = vld [vmem:[#allocation149_spill] sm:$0xff] }
 0x4bd   : > { %9464 = vmatprep.mubr.msk.f32.mxu1 %vm2937_vm6, %v15616_v4  ;;  %v1568_v47 = vpop.permute.xlu1 %1567 }
 0x4be   : > { %v1564_v51 = vpop.permute.xlu0 %1563  ;;  %v2514_v55 = vsel %vm2432_vm3, %v1154_v8, %v1568_v47 }
 0x4bf   : > { %v2513_v30 = vsel %vm2432_vm3, %v1150_v6, %v1564_v51 }
 0x4c0   : > { %9465 = vmatmul.mubr.msk.f32.vlgmr.msra.gmra.mrb[18].mxu1 %vm2937_vm6, %v15617_v7 }
 0x4c1   : > { %9561 = vmatpush3.msk.msra.mxu1 %vm3066_vm2, %v12996_v25  ;;  %9467 = vmatprep.mubr.msk.f32.mxu1 %vm2937_vm6, %v15618_v5  ;;  %v1572_v19 = vpop.permute.xlu1 %1571  ;;  %v15623_v25 = vld [vmem:[#allocation151_spill] sm:$0xff] }
 0x4c2   : > { %v1158_v61 = vpop.permute.xlu0 %1157  ;;  %9658 = vmatprep.subr.msk.mxu1 %vm3066_vm2, %v15095_v59 }
 0x4c3   : > { %v2515_v59 = vsel %vm2432_vm3, %v1158_v61, %v1572_v19  ;;  %v15628_v61 = vld [vmem:[#allocation154_spill] sm:$0xff] }
 0x4c4   : > { %9468 = vmatmul.mubr.msk.f32.gmra.mrb[20].mxu1 %vm2937_vm6, %v15619_v62 }
 0x4c5   : > { %9470 = vmatprep.mubr.msk.f32.mxu1 %vm2937_vm6, %v15620_v44  ;;  %v1982_v1 = vpop.permute.xlu1 %1981  ;;  %v15624_v44 = vld [vmem:[#allocation157_spill] sm:$0xff] }
 0x4c6   : > { %v1978_v15 = vpop.permute.xlu0 %1977  ;;  %v2605_v6 = vsel %vm2523_vm5, %v2514_v55, %v1982_v1  ;;  %v15633_v1 = vld [vmem:[#allocation16_spill] sm:$0xff] }
 0x4c7   : > { %v2604_v62 = vsel %vm2523_vm5, %v2513_v30, %v1978_v15 }
 0x4c8   : > { %9471 = vmatmul.mubr.msk.f32.gmra.mrb[22].mxu1 %vm2937_vm6, %v15621_v29 }
 0x4c9   : > { %9473 = vmatprep.mubr.msk.f32.mxu1 %vm2937_vm6, %v15622_v3  ;;  %v2392_v31 = vpop.permute.xlu1 %2391 }
 0x4ca   : > { %v1986_v36 = vpop.permute.xlu0 %1985  ;;  %v13448_v29 = vsel %vm2614_vm4, %v2604_v62, %v2392_v31 }
 0x4cb   : > { %15625 = vst [vmem:[#allocation153_spill] sm:$0xff] %v13448_v29  ;;  %v2606_v3 = vsel %vm2523_vm5, %v2515_v59, %v1986_v36  ;;  %v5628_v8 = vrot.slane %v13448_v29, 2  ;;  %v15629_v36 = vld [vmem:[#allocation155_spill] sm:$0xff] }
 0x4cc   : > { %9474 = vmatmul.mubr.msk.f32.gmra.mrb[24].mxu1 %vm2937_vm6, %v15623_v25 }
 0x4cd   : > { %9476 = vmatprep.mubr.msk.f32.mxu1 %vm2937_vm6, %v15624_v44  ;;  %v2400_v5 = vpop.permute.xlu1 %2399 }
 0x4ce   : > { %v13453_v51 = vsel %vm2614_vm4, %v2606_v3, %v2400_v5  ;;  %v2396_v25 = vpop.permute.xlu0 %2395 }
 0x4cf   : > { %15626 = vst [vmem:[#allocation157_spill] sm:$0xff] %v13453_v51  ;;  %v5631_v19 = vrot.slane %v13453_v51, 2  ;;  %v13457_v30 = vsel %vm2614_vm4, %v2605_v6, %v2396_v25  ;;  %v15632_v25 = vld [vmem:[#allocation156_spill] sm:$0xff] }
 0x4d0   : > { %15627 = vst [vmem:[#allocation162_spill] sm:$0xff] %v13457_v30  ;;  %9477 = vmatmul.mubr.msk.f32.gmra.mrb[26].mxu1 %vm2937_vm6, %v15628_v61  ;;  %v5629_v31 = vrot.slane %v13457_v30, 2 }
 0x4d1   : > { %9479 = vmatprep.mubr.msk.f32.mxu1 %vm2937_vm6, %v15629_v36  ;;  %v1576_v55 = vpop.permute.xlu1 %1575 }
 0x4d2   : > { %v1162_v47 = vpop.permute.xlu0 %1161  ;;  %v13466_v3 = vsel %vm3969_vm8, %v5628_v8, %v5629_v31  ;;  %v13469_v59 = vsel %vm3969_vm8, %v5629_v31, %v5631_v19 }
 0x4d3   : > { %15630 = vst [vmem:[#allocation154_spill] sm:$0xff] %v13466_v3  ;;  %15631 = vst [vmem:[#allocation155_spill] sm:$0xff] %v13469_v59  ;;  %9946 = vmatprep.mubr.msk.f32.mxu0 %vm2937_vm6, %v13466_v3  ;;  %v2516_v31 = vsel %vm2432_vm3, %v1162_v47, %v1576_v55 }
 0x4d4   : > { %9480 = vmatmul.mubr.msk.f32.gmra.mrb[28].mxu1 %vm2937_vm6, %v15632_v25  ;;  %9947 = vmatmul.mubr.msk.f32.gmra.mrb[74].mxu0 %vm2937_vm6, %v13469_v59 }
 0x4d5   : > { %9482 = vmatprep.mubr.msk.f32.mxu1 %vm2937_vm6, %v11949_v45  ;;  %v1580_v5 = vpop.permute.xlu1 %1579 }
 0x4d6   : > { %v1166_v62 = vpop.permute.xlu0 %1165 }
 0x4d7   : > { %v2517_v8 = vsel %vm2432_vm3, %v1166_v62, %v1580_v5  ;;  %v15641_v62 = vld [vmem:[#allocation34_spill] sm:$0xff] }
 0x4d8   : > { %9483 = vmatmul.mubr.msk.f32.gmra.mrb[30].mxu1 %vm2937_vm6, %v15633_v1 }
 0x4d9   : > { %9485 = vmatprep.mubr.msk.f32.mxu1 %vm2937_vm6, %v11953_v54  ;;  %v1994_v15 = vpop.permute.xlu1 %1993 }
 0x4da   : > { %v1990_v6 = vpop.permute.xlu0 %1989  ;;  %v2608_v59 = vsel %vm2523_vm5, %v2517_v8, %v1994_v15  ;;  %v15642_v15 = vld [vmem:[#allocation36_spill] sm:$0xff]  ;;  %v15644_v8 = vld [vmem:[#allocation47_spill] sm:$0xff] }
 0x4db   : > { %v2607_v51 = vsel %vm2523_vm5, %v2516_v31, %v1990_v6  ;;  %v15643_v6 = vld [vmem:[#allocation102_spill] sm:$0xff] }
 0x4dc   : > { %9486 = vmatmul.mubr.msk.f32.gmra.mrb[32].mxu1 %vm2937_vm6, %v12010_v32 }
 0x4dd   : > { %9488 = vmatprep.mubr.msk.f32.mxu1 %vm2937_vm6, %v12029_v40  ;;  %v2408_v3 = vpop.permute.xlu1 %2407 }
 0x4de   : > { %v13492_v30 = vsel %vm2614_vm4, %v2608_v59, %v2408_v3  ;;  %v2404_v29 = vpop.permute.xlu0 %2403  ;;  %v15639_v3 = vld [vmem:[#allocation77_spill] sm:$0xff]  ;;  %v15640_v59 = vld [vmem:[#allocation80_spill] sm:$0xff] }
 0x4df   : > { %v5635_v7 = vrot.slane %v13492_v30, 2  ;;  %v13496_v38 = vsel %vm2614_vm4, %v2607_v51, %v2404_v29  ;;  %v13565_v51 = vld [vmem:[%s14811_s3 + $0x20] sm:$0xf] }
 0x4e0   : > { %9489 = vmatmul.mubr.msk.f32.gmra.mrb[34].mxu1 %vm2937_vm6, %v12052_v13  ;;  %v5633_v5 = vrot.slane %v13496_v38, 2 }
 0x4e1   : > { %9491 = vmatprep.mubr.msk.f32.mxu1 %vm2937_vm6, %v12033_v2 }
 0x4e2   : > { %v13504_v55 = vsel %vm3969_vm8, %v5631_v19, %v5633_v5  ;;  %v13507_v47 = vsel %vm3969_vm8, %v5633_v5, %v5635_v7  ;;  %v15636_v7 = vld [vmem:[#allocation28_spill] sm:$0xff]  ;;  %v15638_v19 = vld [vmem:[#allocation75_spill] sm:$0xff]  ;;  %v13681_v31 = vpop.permute.xlu0 %1172  ;;  %v1587_v5 = vpop.permute.xlu1 %1586 }
 0x4e3   : > { %15634 = vst [vmem:[#allocation156_spill] sm:$0xff] %v13504_v55  ;;  %15635 = vst [vmem:[#allocation16_spill] sm:$0xff] %v13507_v47  ;;  %9949 = vmatprep.mubr.msk.f32.mxu0 %vm2937_vm6, %v13504_v55  ;;  %v15637_v29 = vrot.slane %v15636_v7, 4  ;;  %v3970_v7 = vrot.slane %v15616_v4, 2 }
 0x4e4   : > { %9492 = vmatmul.mubr.msk.f32.gmra.mrb[36].mxu1 %vm2937_vm6, %v12100_v26  ;;  %9950 = vmatmul.mubr.msk.f32.gmra.mrb[76].mxu0 %vm2937_vm6, %v13507_v47  ;;  %v15646_v47 = vld [vmem:[#allocation152_spill] sm:$0xff] }
 0x4e5   : > { %9494 = vmatprep.mubr.msk.f32.mxu1 %vm2937_vm6, %v12119_v23  ;;  %9954 = vmatprep.mubr.msk.f32.mxu0 %vm2937_vm6, %v15624_v44  ;;  %v3971_v55 = vrot.slane %v15646_v47, 2  ;;  %v15650_v47 = vld [vmem:[#allocation15_spill] sm:$0xff] }
 0x4e7   : > { %v3972_v4 = vsel %vm3969_vm8, %v3970_v7, %v3971_v55 }
 0x4e8   : > { %9495 = vmatmul.mubr.msk.f32.gmra.mrb[38].mxu1 %vm2937_vm6, %v12144_v22  ;;  %9955 = vmatmul.mubr.msk.f32.vlgmr.msra.gmra.mrb[14].mxu0 %vm2937_vm6, %v15628_v61 }
 0x4e9   : > { %9497 = vmatprep.mubr.msk.f32.mxu1 %vm2937_vm6, %v12123_v12  ;;  %9957 = vmatprep.mubr.msk.f32.mxu0 %vm2937_vm6, %v15629_v36 }
 0x4ea   : > { %10051 = vmatpush3.msk.msra.mxu0 %vm3066_vm2, %v15637_v29  ;;  %v15645_v29 = vld [vmem:[#allocation72_spill] sm:$0xff] }
 0x4eb   : > { %10148 = vmatprep.subr.msk.mxu0 %vm3066_vm2, %v13565_v51 }
 0x4ec   : > { %9498 = vmatmul.mubr.msk.f32.gmra.mrb[40].mxu1 %vm2937_vm6, %v12188_v39  ;;  %9958 = vmatmul.mubr.msk.f32.gmra.mrb[16].mxu0 %vm2937_vm6, %v15632_v25 }
 0x4ed   : > { %9500 = vmatprep.mubr.msk.f32.mxu1 %vm2937_vm6, %v15525_v56  ;;  %9960 = vmatprep.mubr.msk.f32.mxu0 %vm2937_vm6, %v11949_v45 }
 0x4f0   : > { %9501 = vmatmul.mubr.msk.f32.gmra.mrb[42].mxu1 %vm2937_vm6, %v12228_v53  ;;  %9961 = vmatmul.mubr.msk.f32.gmra.mrb[18].mxu0 %vm2937_vm6, %v15633_v1 }
 0x4f1   : > { %9503 = vmatprep.mubr.msk.f32.mxu1 %vm2937_vm6, %v15529_v41  ;;  %9963 = vmatprep.mubr.msk.f32.mxu0 %vm2937_vm6, %v11953_v54 }
 0x4f4   : > { %9504 = vmatmul.mubr.msk.f32.gmra.mrb[44].mxu1 %vm2937_vm6, %v12270_v14  ;;  %9964 = vmatmul.mubr.msk.f32.gmra.mrb[20].mxu0 %vm2937_vm6, %v12010_v32 }
 0x4f5   : > { %9506 = vmatprep.mubr.msk.f32.mxu1 %vm2937_vm6, %v12289_v60  ;;  %9966 = vmatprep.mubr.msk.f32.mxu0 %vm2937_vm6, %v12029_v40 }
 0x4f8   : > { %9507 = vmatmul.mubr.msk.f32.gmra.mrb[46].mxu1 %vm2937_vm6, %v12308_v0  ;;  %9967 = vmatmul.mubr.msk.f32.gmra.mrb[22].mxu0 %vm2937_vm6, %v12052_v13 }
 0x4f9   : > { %9509 = vmatprep.mubr.msk.f32.mxu1 %vm2937_vm6, %v15538_v35  ;;  %9969 = vmatprep.mubr.msk.f32.mxu0 %vm2937_vm6, %v12033_v2 }
 0x4fc   : > { %9510 = vmatmul.mubr.msk.f32.gmra.mrb[48].mxu1 %vm2937_vm6, %v12350_v27  ;;  %9970 = vmatmul.mubr.msk.f32.gmra.mrb[24].mxu0 %vm2937_vm6, %v12100_v26 }
 0x4fd   : > { %9512 = vmatprep.mubr.msk.f32.mxu1 %vm2937_vm6, %v15543_v57  ;;  %9972 = vmatprep.mubr.msk.f32.mxu0 %vm2937_vm6, %v12119_v23 }
 0x500   : > { %9513 = vmatmul.mubr.msk.f32.gmra.mrb[50].mxu1 %vm2937_vm6, %v15541_v17  ;;  %9973 = vmatmul.mubr.msk.f32.gmra.mrb[26].mxu0 %vm2937_vm6, %v12144_v22 }
 0x501   : > { %9515 = vmatprep.mubr.msk.f32.mxu1 %vm2937_vm6, %v15546_v10  ;;  %9975 = vmatprep.mubr.msk.f32.mxu0 %vm2937_vm6, %v12123_v12 }
 0x504   : > { %9516 = vmatmul.mubr.msk.f32.gmra.mrb[52].mxu1 %vm2937_vm6, %v12438_v28  ;;  %9976 = vmatmul.mubr.msk.f32.gmra.mrb[28].mxu0 %vm2937_vm6, %v12188_v39 }
 0x505   : > { %9518 = vmatprep.mubr.msk.f32.mxu1 %vm2937_vm6, %v15556_v58  ;;  %9978 = vmatprep.mubr.msk.f32.mxu0 %vm2937_vm6, %v15525_v56 }
 0x508   : > { %9519 = vmatmul.mubr.msk.f32.gmra.mrb[54].mxu1 %vm2937_vm6, %v15551_v20  ;;  %9979 = vmatmul.mubr.msk.f32.gmra.mrb[30].mxu0 %vm2937_vm6, %v12228_v53 }
 0x509   : > { %9521 = vmatprep.mubr.msk.f32.mxu1 %vm2937_vm6, %v15638_v19  ;;  %9981 = vmatprep.mubr.msk.f32.mxu0 %vm2937_vm6, %v15529_v41 }
 0x50c   : > { %9522 = vmatmul.mubr.msk.f32.gmra.mrb[56].mxu1 %vm2937_vm6, %v15639_v3  ;;  %9982 = vmatmul.mubr.msk.f32.gmra.mrb[32].mxu0 %vm2937_vm6, %v12270_v14 }
 0x50d   : > { %9524 = vmatprep.mubr.msk.f32.mxu1 %vm2937_vm6, %v15640_v59  ;;  %9984 = vmatprep.mubr.msk.f32.mxu0 %vm2937_vm6, %v12289_v60 }
 0x510   : > { %9525 = vmatmul.mubr.msk.f32.gmra.mrb[58].mxu1 %vm2937_vm6, %v15641_v62  ;;  %9985 = vmatmul.mubr.msk.f32.gmra.mrb[34].mxu0 %vm2937_vm6, %v12308_v0 }
 0x511   : > { %9527 = vmatprep.mubr.msk.f32.mxu1 %vm2937_vm6, %v15642_v15  ;;  %9987 = vmatprep.mubr.msk.f32.mxu0 %vm2937_vm6, %v15538_v35 }
 0x514   : > { %9528 = vmatmul.mubr.msk.f32.gmra.mrb[60].mxu1 %vm2937_vm6, %v15643_v6  ;;  %9988 = vmatmul.mubr.msk.f32.gmra.mrb[36].mxu0 %vm2937_vm6, %v12350_v27 }
 0x515   : > { %9530 = vmatprep.mubr.msk.f32.mxu1 %vm2937_vm6, %v12755_v43  ;;  %9990 = vmatprep.mubr.msk.f32.mxu0 %vm2937_vm6, %v15543_v57 }
 0x518   : > { %9531 = vmatmul.mubr.msk.f32.gmra.mrb[62].mxu1 %vm2937_vm6, %v15644_v8  ;;  %9991 = vmatmul.mubr.msk.f32.gmra.mrb[38].mxu0 %vm2937_vm6, %v15541_v17 }
 0x519   : > { %9533 = vmatprep.mubr.msk.f32.mxu1 %vm2937_vm6, %v12759_v63  ;;  %9993 = vmatprep.mubr.msk.f32.mxu0 %vm2937_vm6, %v15546_v10 }
 0x51c   : > { %9534 = vmatmul.mubr.msk.f32.gmra.mrb[64].mxu1 %vm2937_vm6, %v12776_v48  ;;  %9994 = vmatmul.mubr.msk.f32.gmra.mrb[40].mxu0 %vm2937_vm6, %v12438_v28 }
 0x51d   : > { %9536 = vmatprep.mubr.msk.f32.mxu1 %vm2937_vm6, %v12890_v34  ;;  %9996 = vmatprep.mubr.msk.f32.mxu0 %vm2937_vm6, %v15556_v58 }
 0x520   : > { %9537 = vmatmul.mubr.msk.f32.gmra.mrb[66].mxu1 %vm2937_vm6, %v12908_v50  ;;  %9997 = vmatmul.mubr.msk.f32.gmra.mrb[42].mxu0 %vm2937_vm6, %v15551_v20 }
 0x521   : > { %9539 = vmatprep.mubr.msk.f32.mxu1 %vm2937_vm6, %v12905_v24  ;;  %9999 = vmatprep.mubr.msk.f32.mxu0 %vm2937_vm6, %v15638_v19 }
 0x524   : > { %9540 = vmatmul.mubr.msk.f32.gmra.mrb[68].mxu1 %vm2937_vm6, %v12991_v18  ;;  %10000 = vmatmul.mubr.msk.f32.gmra.mrb[44].mxu0 %vm2937_vm6, %v15639_v3  ;;  %v15668_v3 = vld [vmem:[#allocation90_spill] sm:$0xff] }
 0x525   : > { %9542 = vmatprep.mubr.msk.f32.mxu1 %vm2937_vm6, %v13117_v46  ;;  %10002 = vmatprep.mubr.msk.f32.mxu0 %vm2937_vm6, %v15640_v59 }
 0x528   : > { %9543 = vmatmul.mubr.msk.f32.gmra.mrb[70].mxu1 %vm2937_vm6, %v13130_v21  ;;  %10003 = vmatmul.mubr.msk.f32.gmra.mrb[46].mxu0 %vm2937_vm6, %v15641_v62  ;;  %v15651_v62 = vld [vmem:[#allocation133_spill] sm:$0xff] }
 0x529   : > { %9545 = vmatprep.mubr.msk.f32.mxu1 %vm2937_vm6, %v13127_v37  ;;  %10005 = vmatprep.mubr.msk.f32.mxu0 %vm2937_vm6, %v15642_v15  ;;  %v1591_v15 = vpop.permute.xlu1 %1590  ;;  %v15652_v7 = vrot.slane %v15651_v62, 4 }
 0x52c   : > { %9546 = vmatmul.mubr.msk.f32.gmra.mrb[72].mxu1 %vm2937_vm6, %v13208_v9  ;;  %10006 = vmatmul.mubr.msk.f32.gmra.mrb[48].mxu0 %vm2937_vm6, %v15643_v6 }
 0x52d   : > { %9548 = vmatprep.mubr.msk.f32.mxu1 %vm2937_vm6, %v13266_v42  ;;  %10008 = vmatprep.mubr.msk.f32.mxu0 %vm2937_vm6, %v12755_v43  ;;  %v15649_v43 = vld [vmem:[#allocation79_spill] sm:$0xff] }
 0x52e   : > { %v3975_v6 = vrot.slane %v15649_v43, 2 }
 0x530   : > { %9549 = vmatmul.mubr.msk.f32.gmra.mrb[74].mxu1 %vm2937_vm6, %v13278_v49  ;;  %10009 = vmatmul.mubr.msk.f32.gmra.mrb[50].mxu0 %vm2937_vm6, %v15644_v8  ;;  %v15648_v8 = vld [vmem:[#allocation33_spill] sm:$0xff] }
 0x531   : > { %9551 = vmatprep.mubr.msk.f32.mxu1 %vm2937_vm6, %v13275_v11  ;;  %10011 = vmatprep.mubr.msk.f32.mxu0 %vm2937_vm6, %v12759_v63  ;;  %v15647_v63 = vld [vmem:[#allocation13_spill] sm:$0xff] }
 0x534   : > { %9552 = vmatmul.mubr.msk.f32.gmra.mrb[76].mxu1 %vm2937_vm6, %v13320_v16  ;;  %10012 = vmatmul.mubr.msk.f32.gmra.mrb[52].mxu0 %vm2937_vm6, %v12776_v48  ;;  %v1177_v48 = vpop.permute.xlu0 %1176 }
 0x535   : > { %9554 = vmatprep.mubr.msk.f32.mxu1 %vm2937_vm6, %v13351_v52  ;;  %10014 = vmatprep.mubr.msk.f32.mxu0 %vm2937_vm6, %v12890_v34  ;;  %v3973_v34 = vrot.slane %v15647_v63, 2  ;;  %v2519_v19 = vsel %vm2432_vm3, %v1177_v48, %v1591_v15  ;;  %v15670_v48 = vld [vmem:[#allocation94_spill] sm:$0xff] }
 0x537   : > { %v3974_v63 = vsel %vm3969_vm8, %v3971_v55, %v3973_v34  ;;  %v3976_v43 = vsel %vm3969_vm8, %v3973_v34, %v3975_v6  ;;  %v15653_v34 = vld [vmem:[#allocation78_spill] sm:$0xff] }
 0x538   : > { %9555 = vmatmul.mubr.msk.f32.gmra.mrb[78].mxu1 %vm2937_vm6, %v13361_v33  ;;  %10015 = vmatmul.mubr.msk.f32.gmra.mrb[54].mxu0 %vm2937_vm6, %v12908_v50  ;;  %v2001_v50 = vpop.permute.xlu0 %2000 }
 0x539   : > { %9557 = vmatprep.mubr.msk.f32.mxu1 %vm2937_vm6, %v15645_v29  ;;  %10017 = vmatprep.mubr.msk.f32.mxu0 %vm2937_vm6, %v12905_v24  ;;  %v3977_v24 = vrot.slane %v15650_v47, 2  ;;  %v13727_v47 = vld [vmem:[%s14811_s3 + $0x10] sm:$0xff] }
 0x53b   : > { %v3978_v55 = vsel %vm3969_vm8, %v3975_v6, %v3977_v24  ;;  %v15654_v24 = vld [vmem:[#allocation31_spill] sm:$0xff] }
 0x53c   : > { %9558 = vmatmul.mubr.msk.f32.gmra.mrb[80].mxu1 %vm2937_vm6, %v15648_v8  ;;  %10018 = vmatmul.mubr.msk.f32.gmra.mrb[56].mxu0 %vm2937_vm6, %v12991_v18  ;;  %v2415_v62 = vpop.permute.xlu0 %2414  ;;  %v15667_v18 = vld [vmem:[#allocation104_spill] sm:$0xff] }
 0x53d   : > { %9562 = vmatprep.mubr.msk.f32.mxu1 %vm2937_vm6, %v3972_v4  ;;  %10020 = vmatprep.mubr.msk.f32.mxu0 %vm2937_vm6, %v13117_v46  ;;  %v2005_v4 = vpop.permute.xlu1 %2004 }
 0x540   : > { %9563 = vmatmul.mubr.msk.f32.vlgmr.msra.gmra.mrb[18].mxu1 %vm2937_vm6, %v3974_v63  ;;  %10021 = vmatmul.mubr.msk.f32.gmra.mrb[58].mxu0 %vm2937_vm6, %v13130_v21  ;;  %v15655_v63 = vld [vmem:[#allocation41_spill] sm:$0xff] }
 0x541   : > { %9659 = vmatpush3.msk.msra.mxu1 %vm3066_vm2, %v15652_v7  ;;  %9565 = vmatprep.mubr.msk.f32.mxu1 %vm2937_vm6, %v3976_v43  ;;  %v2419_v6 = vpop.permute.xlu1 %2418  ;;  %v1181_v7 = vpop.permute.xlu0 %1180  ;;  %v15656_v43 = vld [vmem:[#allocation43_spill] sm:$0xff] }
 0x542   : > { %10023 = vmatprep.mubr.msk.f32.mxu0 %vm2937_vm6, %v13127_v37  ;;  %10262 = vmatprep.subr.msk.mxu1 %vm3066_vm2, %v13727_v47  ;;  %v15666_v37 = vld [vmem:[#allocation157_spill] sm:$0xff] }
 0x544   : > { %9566 = vmatmul.mubr.msk.f32.gmra.mrb[20].mxu1 %vm2937_vm6, %v3978_v55  ;;  %10024 = vmatmul.mubr.msk.f32.gmra.mrb[60].mxu0 %vm2937_vm6, %v13208_v9  ;;  %v15657_v55 = vld [vmem:[#allocation30_spill] sm:$0xff] }
 0x545   : > { %9568 = vmatprep.mubr.msk.f32.mxu1 %vm2937_vm6, %v15653_v34  ;;  %10026 = vmatprep.mubr.msk.f32.mxu0 %vm2937_vm6, %v13266_v42  ;;  %v1595_v34 = vpop.permute.xlu1 %1594  ;;  %v15663_v42 = vld [vmem:[#allocation45_spill] sm:$0xff]  ;;  %v15664_v9 = vld [vmem:[#allocation162_spill] sm:$0xff] }
 0x548   : > { %9569 = vmatmul.mubr.msk.f32.gmra.mrb[22].mxu1 %vm2937_vm6, %v15654_v24  ;;  %10027 = vmatmul.mubr.msk.f32.gmra.mrb[62].mxu0 %vm2937_vm6, %v13278_v49  ;;  %v15658_v24 = vld [vmem:[#allocation124_spill] sm:$0xff]  ;;  %v15662_v49 = vld [vmem:[#allocation153_spill] sm:$0xff] }
 0x549   : > { %9571 = vmatprep.mubr.msk.f32.mxu1 %vm2937_vm6, %v15655_v63  ;;  %10029 = vmatprep.mubr.msk.f32.mxu0 %vm2937_vm6, %v13275_v11  ;;  %v15659_v63 = vld [vmem:[#allocation98_spill] sm:$0xff]  ;;  %v1599_v11 = vpop.permute.xlu1 %1598 }
 0x54c   : > { %9572 = vmatmul.mubr.msk.f32.gmra.mrb[24].mxu1 %vm2937_vm6, %v15656_v43  ;;  %10030 = vmatmul.mubr.msk.f32.gmra.mrb[64].mxu0 %vm2937_vm6, %v13320_v16  ;;  %v1185_v43 = vpop.permute.xlu0 %1184  ;;  %v15660_v16 = vld [vmem:[#allocation82_spill] sm:$0xff] }
 0x54d   : > { %9574 = vmatprep.mubr.msk.f32.mxu1 %vm2937_vm6, %v15657_v55  ;;  %10032 = vmatprep.mubr.msk.f32.mxu0 %vm2937_vm6, %v13351_v52  ;;  %v15661_v52 = vld [vmem:[#allocation100_spill] sm:$0xff]  ;;  %v2013_v21 = vpop.permute.xlu1 %2012 }
 0x550   : > { %9575 = vmatmul.mubr.msk.f32.gmra.mrb[26].mxu1 %vm2937_vm6, %v15658_v24  ;;  %10033 = vmatmul.mubr.msk.f32.gmra.mrb[66].mxu0 %vm2937_vm6, %v13361_v33  ;;  %v2009_v33 = vpop.permute.xlu0 %2008 }
 0x551   : > { %9577 = vmatprep.mubr.msk.f32.mxu1 %vm2937_vm6, %v15659_v63  ;;  %10035 = vmatprep.mubr.msk.f32.mxu0 %vm2937_vm6, %v15645_v29  ;;  %v15665_v29 = vld [vmem:[#allocation84_spill] sm:$0xff] }
 0x554   : > { %9578 = vmatmul.mubr.msk.f32.gmra.mrb[28].mxu1 %vm2937_vm6, %v15660_v16  ;;  %10036 = vmatmul.mubr.msk.f32.gmra.mrb[68].mxu0 %vm2937_vm6, %v15648_v8  ;;  %v2518_v8 = vsel %vm2432_vm3, %v13681_v31, %v1587_v5  ;;  %v2423_v20 = vpop.permute.xlu0 %2422  ;;  %v15669_v5 = vld [vmem:[#allocation106_spill] sm:$0xff] }
 0x555   : > { %9580 = vmatprep.mubr.msk.f32.mxu1 %vm2937_vm6, %v15661_v52  ;;  %10038 = vmatprep.mubr.msk.f32.mxu0 %vm2937_vm6, %v15662_v49  ;;  %v2609_v46 = vsel %vm2523_vm5, %v2518_v8, %v2001_v50  ;;  %v2610_v50 = vsel %vm2523_vm5, %v2519_v19, %v2005_v4  ;;  %v2520_v8 = vsel %vm2432_vm3, %v1181_v7, %v1595_v34  ;;  %v15671_v4 = vld [vmem:[#allocation51_spill] sm:$0xff]  ;;  %v15677_v34 = vld [vmem:[#allocation160_spill] sm:$0xff] }
 0x556   : > { %v13784_v59 = vsel %vm2614_vm4, %v2609_v46, %v2415_v62  ;;  %v13796_v31 = vsel %vm2614_vm4, %v2610_v50, %v2419_v6  ;;  %v2611_v46 = vsel %vm2523_vm5, %v2520_v8, %v2009_v33  ;;  %v2427_v62 = vpop.permute.xlu1 %2426  ;;  %v2521_v19 = vsel %vm2432_vm3, %v1185_v43, %v1599_v11  ;;  %v15673_v6 = vld [vmem:[#allocation158_spill] sm:$0xff]  ;;  %v15674_v11 = vld [vmem:[#allocation144_spill] sm:$0xff]  ;;  %v15675_v7 = vld [vmem:[#allocation159_spill] sm:$0xff] }
 0x557   : > { %v13802_v58 = vsel %vm2614_vm4, %v2611_v46, %v2423_v20  ;;  %v2612_v33 = vsel %vm2523_vm5, %v2521_v19, %v2013_v21  ;;  %v15672_v20 = vld [vmem:[#allocation92_spill] sm:$0xff]  ;;  %v15676_v21 = vld [vmem:[#allocation50_spill] sm:$0xff]  ;;  %v15678_v43 = vld [vmem:[#allocation111_spill] sm:$0xff] }
 0x558   : > { %9581 = vmatmul.mubr.msk.f32.gmra.mrb[30].mxu1 %vm2937_vm6, %v15663_v42  ;;  %10039 = vmatmul.mubr.msk.f32.gmra.mrb[70].mxu0 %vm2937_vm6, %v15664_v9  ;;  %v13813_v15 = vsel %vm2614_vm4, %v2612_v33, %v2427_v62  ;;  %v15679_v50 = vld [vmem:[#allocation117_spill] sm:$0xff]  ;;  %v15680_v8 = vld [vmem:[#allocation112_spill] sm:$0xff]  ;;  %v15682_v62 = vld [vmem:[#allocation131_spill] sm:$0xff] }
 0x559   : > { %9583 = vmatprep.mubr.msk.f32.mxu1 %vm2937_vm6, %v15665_v29  ;;  %10041 = vmatprep.mubr.msk.f32.mxu0 %vm2937_vm6, %v15666_v37  ;;  %v15681_v46 = vld [vmem:[#allocation81_spill] sm:$0xff]  ;;  %v15683_v19 = vld [vmem:[#allocation63_spill] sm:$0xff] }
 0x55a   : > { %v15684_v33 = vld [vmem:[#allocation129_spill] sm:$0xff] }
 0x55c   : > { %9584 = vmatmul.mubr.msk.f32.gmra.mrb[32].mxu1 %vm2937_vm6, %v15667_v18  ;;  %10042 = vmatmul.mubr.msk.f32.gmra.mrb[72].mxu0 %vm2937_vm6, %v13496_v38 }
 0x55d   : > { %9586 = vmatprep.mubr.msk.f32.mxu1 %vm2937_vm6, %v15668_v3  ;;  %10044 = vmatprep.mubr.msk.f32.mxu0 %vm2937_vm6, %v13784_v59 }
 0x560   : > { %9587 = vmatmul.mubr.msk.f32.gmra.mrb[34].mxu1 %vm2937_vm6, %v15669_v5  ;;  %10045 = vmatmul.mubr.msk.f32.gmra.mrb[74].mxu0 %vm2937_vm6, %v13796_v31 }
 0x561   : > { %9589 = vmatprep.mubr.msk.f32.mxu1 %vm2937_vm6, %v15670_v48  ;;  %10047 = vmatprep.mubr.msk.f32.mxu0 %vm2937_vm6, %v13802_v58 }
 0x564   : > { %9590 = vmatmul.mubr.msk.f32.gmra.mrb[36].mxu1 %vm2937_vm6, %v15671_v4  ;;  %10048 = vmatmul.mubr.msk.f32.gmra.mrb[76].mxu0 %vm2937_vm6, %v13813_v15 }
 0x565   : > { %9592 = vmatprep.mubr.msk.f32.mxu1 %vm2937_vm6, %v15672_v20  ;;  %10052 = vmatprep.mubr.msk.f32.mxu0 %vm2937_vm6, %v15673_v6  ;;  %v15686_v6 = vld [vmem:[#allocation97_spill] sm:$0xff] }
 0x568   : > { %9593 = vmatmul.mubr.msk.f32.gmra.mrb[38].mxu1 %vm2937_vm6, %v15674_v11  ;;  %10053 = vmatmul.mubr.msk.f32.vlgmr.msra.gmra.mrb[14].mxu0 %vm2937_vm6, %v15675_v7  ;;  %v15687_v7 = vld [vmem:[#allocation18_spill] sm:$0xff] }
 0x569   : > { %9595 = vmatprep.mubr.msk.f32.mxu1 %vm2937_vm6, %v15676_v21  ;;  %10055 = vmatprep.mubr.msk.f32.mxu0 %vm2937_vm6, %v15677_v34  ;;  %v15688_v34 = vld [vmem:[#allocation6_spill] sm:$0xff] }
 0x56a   : > { %10149 = vmatpush3.msk.msra.mxu0 %vm3066_vm2, %v13565_v51  ;;  %v15685_v51 = vld [vmem:[#allocation65_spill] sm:$0xff] }
 0x56c   : > { %9596 = vmatmul.mubr.msk.f32.gmra.mrb[40].mxu1 %vm2937_vm6, %v15678_v43  ;;  %10056 = vmatmul.mubr.msk.f32.gmra.mrb[16].mxu0 %vm2937_vm6, %v15679_v50  ;;  %v15689_v50 = vld [vmem:[#allocation85_spill] sm:$0xff] }
 0x56d   : > { %9598 = vmatprep.mubr.msk.f32.mxu1 %vm2937_vm6, %v15680_v8  ;;  %10058 = vmatprep.mubr.msk.f32.mxu0 %vm2937_vm6, %v15681_v46  ;;  %v15690_v46 = vld [vmem:[#allocation99_spill] sm:$0xff] }
 0x570   : > { %9599 = vmatmul.mubr.msk.f32.gmra.mrb[42].mxu1 %vm2937_vm6, %v15682_v62  ;;  %10059 = vmatmul.mubr.msk.f32.gmra.mrb[18].mxu0 %vm2937_vm6, %v15683_v19  ;;  %v15691_v19 = vld [vmem:[#allocation83_spill] sm:$0xff] }
 0x571   : > { %9601 = vmatprep.mubr.msk.f32.mxu1 %vm2937_vm6, %v15684_v33  ;;  %10061 = vmatprep.mubr.msk.f32.mxu0 %vm2937_vm6, %v15685_v51  ;;  %v15692_v33 = vld [vmem:[#allocation114_spill] sm:$0xff]  ;;  %v15693_v51 = vld [vmem:[#allocation69_spill] sm:$0xff] }
 0x574   : > { %9602 = vmatmul.mubr.msk.f32.gmra.mrb[44].mxu1 %vm2937_vm6, %v15686_v6  ;;  %10062 = vmatmul.mubr.msk.f32.gmra.mrb[20].mxu0 %vm2937_vm6, %v15687_v7  ;;  %v15694_v6 = vld [vmem:[#allocation53_spill] sm:$0xff]  ;;  %v15695_v7 = vld [vmem:[#allocation22_spill] sm:$0xff] }
 0x575   : > { %9604 = vmatprep.mubr.msk.f32.mxu1 %vm2937_vm6, %v15688_v34  ;;  %10064 = vmatprep.mubr.msk.f32.mxu0 %vm2937_vm6, %v15689_v50  ;;  %v15696_v34 = vld [vmem:[#allocation145_spill] sm:$0xff]  ;;  %v15697_v50 = vld [vmem:[#allocation32_spill] sm:$0xff] }
 0x578   : > { %9605 = vmatmul.mubr.msk.f32.gmra.mrb[46].mxu1 %vm2937_vm6, %v15690_v46  ;;  %10065 = vmatmul.mubr.msk.f32.gmra.mrb[22].mxu0 %vm2937_vm6, %v15691_v19  ;;  %v15698_v46 = vld [vmem:[#allocation116_spill] sm:$0xff]  ;;  %v15699_v19 = vld [vmem:[#allocation5_spill] sm:$0xff] }
 0x579   : > { %9607 = vmatprep.mubr.msk.f32.mxu1 %vm2937_vm6, %v15692_v33  ;;  %10067 = vmatprep.mubr.msk.f32.mxu0 %vm2937_vm6, %v15693_v51  ;;  %v15700_v33 = vld [vmem:[#allocation19_spill] sm:$0xff]  ;;  %v15701_v51 = vld [vmem:[#allocation20_spill] sm:$0xff] }
 0x57c   : > { %9608 = vmatmul.mubr.msk.f32.gmra.mrb[48].mxu1 %vm2937_vm6, %v15694_v6  ;;  %10068 = vmatmul.mubr.msk.f32.gmra.mrb[24].mxu0 %vm2937_vm6, %v15695_v7  ;;  %v15702_v6 = vld [vmem:[#allocation137_spill] sm:$0xff]  ;;  %v15703_v7 = vld [vmem:[#allocation120_spill] sm:$0xff] }
 0x57d   : > { %9610 = vmatprep.mubr.msk.f32.mxu1 %vm2937_vm6, %v15696_v34  ;;  %10070 = vmatprep.mubr.msk.f32.mxu0 %vm2937_vm6, %v15697_v50  ;;  %v15704_v34 = vld [vmem:[#allocation135_spill] sm:$0xff]  ;;  %v15705_v50 = vld [vmem:[#allocation24_spill] sm:$0xff] }
 0x580   : > { %9611 = vmatmul.mubr.msk.f32.gmra.mrb[50].mxu1 %vm2937_vm6, %v15698_v46  ;;  %10071 = vmatmul.mubr.msk.f32.gmra.mrb[26].mxu0 %vm2937_vm6, %v15699_v19  ;;  %v15706_v46 = vld [vmem:[#allocation101_spill] sm:$0xff]  ;;  %v15707_v19 = vld [vmem:[#allocation87_spill] sm:$0xff] }
 0x581   : > { %9613 = vmatprep.mubr.msk.f32.mxu1 %vm2937_vm6, %v15700_v33  ;;  %10073 = vmatprep.mubr.msk.f32.mxu0 %vm2937_vm6, %v15701_v51  ;;  %v15708_v33 = vld [vmem:[#allocation119_spill] sm:$0xff] }
 0x582   : > { %v15709_v51 = vld [vmem:[#allocation71_spill] sm:$0xff] }
 0x584   : > { %9614 = vmatmul.mubr.msk.f32.gmra.mrb[52].mxu1 %vm2937_vm6, %v15702_v6  ;;  %10074 = vmatmul.mubr.msk.f32.gmra.mrb[28].mxu0 %vm2937_vm6, %v15703_v7  ;;  %v15710_v6 = vld [vmem:[#allocation57_spill] sm:$0xff] }
 0x585   : > { %9616 = vmatprep.mubr.msk.f32.mxu1 %vm2937_vm6, %v15704_v34  ;;  %10076 = vmatprep.mubr.msk.f32.mxu0 %vm2937_vm6, %v15705_v50  ;;  %v15711_v7 = vld [vmem:[#allocation9_spill] sm:$0xff] }
 0x586   : > { %v15712_v34 = vld [vmem:[#allocation121_spill] sm:$0xff] }
 0x587   : > { %v15713_v50 = vld [vmem:[#allocation25_spill] sm:$0xff] }
 0x588   : > { %9617 = vmatmul.mubr.msk.f32.gmra.mrb[54].mxu1 %vm2937_vm6, %v15706_v46  ;;  %10077 = vmatmul.mubr.msk.f32.gmra.mrb[30].mxu0 %vm2937_vm6, %v15707_v19  ;;  %v15714_v46 = vld [vmem:[#allocation58_spill] sm:$0xff]  ;;  %v15715_v19 = vld [vmem:[#allocation91_spill] sm:$0xff] }
 0x589   : > { %9619 = vmatprep.mubr.msk.f32.mxu1 %vm2937_vm6, %v15708_v33  ;;  %10079 = vmatprep.mubr.msk.f32.mxu0 %vm2937_vm6, %v15709_v51  ;;  %v15716_v33 = vld [vmem:[#allocation123_spill] sm:$0xff] }
 0x58a   : > { %v15717_v51 = vld [vmem:[#allocation27_spill] sm:$0xff] }
 0x58c   : > { %9620 = vmatmul.mubr.msk.f32.gmra.mrb[56].mxu1 %vm2937_vm6, %v15710_v6  ;;  %10080 = vmatmul.mubr.msk.f32.gmra.mrb[32].mxu0 %vm2937_vm6, %v15711_v7  ;;  %v15718_v6 = vld [vmem:[#allocation21_spill] sm:$0xff] }
 0x58d   : > { %9622 = vmatprep.mubr.msk.f32.mxu1 %vm2937_vm6, %v15712_v34  ;;  %10082 = vmatprep.mubr.msk.f32.mxu0 %vm2937_vm6, %v15713_v50  ;;  %v15719_v7 = vld [vmem:[#allocation37_spill] sm:$0xff]  ;;  %v15720_v34 = vld [vmem:[#allocation138_spill] sm:$0xff] }
 0x58e   : > { %v15721_v50 = vld [vmem:[#allocation26_spill] sm:$0xff] }
 0x590   : > { %9623 = vmatmul.mubr.msk.f32.gmra.mrb[58].mxu1 %vm2937_vm6, %v15714_v46  ;;  %10083 = vmatmul.mubr.msk.f32.gmra.mrb[34].mxu0 %vm2937_vm6, %v15715_v19  ;;  %v15722_v46 = vld [vmem:[#allocation62_spill] sm:$0xff] }
 0x591   : > { %9625 = vmatprep.mubr.msk.f32.mxu1 %vm2937_vm6, %v15716_v33  ;;  %10085 = vmatprep.mubr.msk.f32.mxu0 %vm2937_vm6, %v15717_v51  ;;  %v15723_v19 = vld [vmem:[#allocation122_spill] sm:$0xff]  ;;  %v15725_v51 = vld [vmem:[#allocation11_spill] sm:$0xff] }
 0x592   : > { %v15724_v33 = vld [vmem:[#allocation146_spill] sm:$0xff] }
 0x594   : > { %9626 = vmatmul.mubr.msk.f32.gmra.mrb[60].mxu1 %vm2937_vm6, %v15718_v6  ;;  %10086 = vmatmul.mubr.msk.f32.gmra.mrb[36].mxu0 %vm2937_vm6, %v15719_v7  ;;  %v15726_v6 = vld [vmem:[#allocation125_spill] sm:$0xff]  ;;  %v15727_v7 = vld [vmem:[#allocation76_spill] sm:$0xff] }
 0x595   : > { %9628 = vmatprep.mubr.msk.f32.mxu1 %vm2937_vm6, %v15720_v34  ;;  %10088 = vmatprep.mubr.msk.f32.mxu0 %vm2937_vm6, %v15721_v50  ;;  %v15728_v34 = vld [vmem:[#allocation60_spill] sm:$0xff] }
 0x596   : > { %v15729_v50 = vld [vmem:[#allocation96_spill] sm:$0xff] }
 0x598   : > { %9629 = vmatmul.mubr.msk.f32.gmra.mrb[62].mxu1 %vm2937_vm6, %v15722_v46  ;;  %10089 = vmatmul.mubr.msk.f32.gmra.mrb[38].mxu0 %vm2937_vm6, %v15723_v19  ;;  %v15730_v46 = vld [vmem:[#allocation127_spill] sm:$0xff] }
 0x599   : > { %9631 = vmatprep.mubr.msk.f32.mxu1 %vm2937_vm6, %v15724_v33  ;;  %10091 = vmatprep.mubr.msk.f32.mxu0 %vm2937_vm6, %v15725_v51  ;;  %v15731_v19 = vld [vmem:[#allocation95_spill] sm:$0xff]  ;;  %v15732_v33 = vld [vmem:[#allocation61_spill] sm:$0xff]  ;;  %v15733_v51 = vld [vmem:[#allocation12_spill] sm:$0xff] }
 0x59c   : > { %9632 = vmatmul.mubr.msk.f32.gmra.mrb[64].mxu1 %vm2937_vm6, %v15726_v6  ;;  %10092 = vmatmul.mubr.msk.f32.gmra.mrb[40].mxu0 %vm2937_vm6, %v15727_v7  ;;  %v15734_v6 = vld [vmem:[#allocation130_spill] sm:$0xff] }
 0x59d   : > { %9634 = vmatprep.mubr.msk.f32.mxu1 %vm2937_vm6, %v15728_v34  ;;  %10094 = vmatprep.mubr.msk.f32.mxu0 %vm2937_vm6, %v15729_v50  ;;  %v15735_v7 = vld [vmem:[#allocation86_spill] sm:$0xff]  ;;  %v15736_v34 = vld [vmem:[#allocation23_spill] sm:$0xff]  ;;  %v15737_v50 = vld [vmem:[#allocation40_spill] sm:$0xff] }
 0x5a0   : > { %9635 = vmatmul.mubr.msk.f32.gmra.mrb[66].mxu1 %vm2937_vm6, %v15730_v46  ;;  %10095 = vmatmul.mubr.msk.f32.gmra.mrb[42].mxu0 %vm2937_vm6, %v15731_v19  ;;  %v15738_v46 = vld [vmem:[#allocation107_spill] sm:$0xff]  ;;  %v15739_v19 = vld [vmem:[#allocation38_spill] sm:$0xff] }
 0x5a1   : > { %9637 = vmatprep.mubr.msk.f32.mxu1 %vm2937_vm6, %v15732_v33  ;;  %10097 = vmatprep.mubr.msk.f32.mxu0 %vm2937_vm6, %v15733_v51  ;;  %v15740_v33 = vld [vmem:[#allocation141_spill] sm:$0xff]  ;;  %v15741_v51 = vld [vmem:[#allocation88_spill] sm:$0xff] }
 0x5a4   : > { %9638 = vmatmul.mubr.msk.f32.gmra.mrb[68].mxu1 %vm2937_vm6, %v15734_v6  ;;  %10098 = vmatmul.mubr.msk.f32.gmra.mrb[44].mxu0 %vm2937_vm6, %v15735_v7  ;;  %v15742_v6 = vld [vmem:[#allocation132_spill] sm:$0xff] }
 0x5a5   : > { %9640 = vmatprep.mubr.msk.f32.mxu1 %vm2937_vm6, %v15736_v34  ;;  %10100 = vmatprep.mubr.msk.f32.mxu0 %vm2937_vm6, %v15737_v50  ;;  %v15743_v7 = vld [vmem:[#allocation44_spill] sm:$0xff]  ;;  %v15745_v50 = vld [vmem:[#allocation109_spill] sm:$0xff] }
 0x5a6   : > { %v15744_v34 = vld [vmem:[#allocation64_spill] sm:$0xff] }
 0x5a8   : > { %9641 = vmatmul.mubr.msk.f32.gmra.mrb[70].mxu1 %vm2937_vm6, %v15738_v46  ;;  %10101 = vmatmul.mubr.msk.f32.gmra.mrb[46].mxu0 %vm2937_vm6, %v15739_v19  ;;  %v15746_v46 = vld [vmem:[#allocation70_spill] sm:$0xff]  ;;  %v15747_v19 = vld [vmem:[#allocation48_spill] sm:$0xff] }
 0x5a9   : > { %9643 = vmatprep.mubr.msk.f32.mxu1 %vm2937_vm6, %v15740_v33  ;;  %10103 = vmatprep.mubr.msk.f32.mxu0 %vm2937_vm6, %v15741_v51  ;;  %v15748_v33 = vld [vmem:[#allocation35_spill] sm:$0xff]  ;;  %v15749_v51 = vld [vmem:[#allocation49_spill] sm:$0xff] }
 0x5ac   : > { %9644 = vmatmul.mubr.msk.f32.gmra.mrb[72].mxu1 %vm2937_vm6, %v15742_v6  ;;  %10104 = vmatmul.mubr.msk.f32.gmra.mrb[48].mxu0 %vm2937_vm6, %v15743_v7  ;;  %v15750_v6 = vld [vmem:[#allocation10_spill] sm:$0xff] }
 0x5ad   : > { %9646 = vmatprep.mubr.msk.f32.mxu1 %vm2937_vm6, %v15744_v34  ;;  %10106 = vmatprep.mubr.msk.f32.mxu0 %vm2937_vm6, %v15745_v50  ;;  %v15751_v7 = vld [vmem:[#allocation46_spill] sm:$0xff]  ;;  %v15752_v34 = vld [vmem:[#allocation73_spill] sm:$0xff]  ;;  %v15753_v50 = vld [vmem:[#allocation115_spill] sm:$0xff] }
 0x5b0   : > { %9647 = vmatmul.mubr.msk.f32.gmra.mrb[74].mxu1 %vm2937_vm6, %v15746_v46  ;;  %10107 = vmatmul.mubr.msk.f32.gmra.mrb[50].mxu0 %vm2937_vm6, %v15747_v19  ;;  %v15754_v46 = vld [vmem:[#allocation4_spill] sm:$0xff]  ;;  %v15755_v19 = vld [vmem:[#allocation54_spill] sm:$0xff] }
 0x5b1   : > { %9649 = vmatprep.mubr.msk.f32.mxu1 %vm2937_vm6, %v15748_v33  ;;  %10109 = vmatprep.mubr.msk.f32.mxu0 %vm2937_vm6, %v15749_v51  ;;  %v15756_v33 = vld [vmem:[#allocation8_spill] sm:$0xff]  ;;  %v15757_v51 = vld [vmem:[#allocation118_spill] sm:$0xff] }
 0x5b4   : > { %9650 = vmatmul.mubr.msk.f32.gmra.mrb[76].mxu1 %vm2937_vm6, %v15750_v6  ;;  %10110 = vmatmul.mubr.msk.f32.gmra.mrb[52].mxu0 %vm2937_vm6, %v15751_v7  ;;  %v15758_v6 = vld [vmem:[#allocation161_spill] sm:$0xff]  ;;  %v15759_v7 = vld [vmem:[#allocation56_spill] sm:$0xff] }
 0x5b5   : > { %9652 = vmatprep.mubr.msk.f32.mxu1 %vm2937_vm6, %v15752_v34  ;;  %10112 = vmatprep.mubr.msk.f32.mxu0 %vm2937_vm6, %v15753_v50  ;;  %v15760_v34 = vld [vmem:[#allocation148_spill] sm:$0xff]  ;;  %v15761_v50 = vld [vmem:[#allocation59_spill] sm:$0xff] }
 0x5b8   : > { %9653 = vmatmul.mubr.msk.f32.gmra.mrb[78].mxu1 %vm2937_vm6, %v15754_v46  ;;  %10113 = vmatmul.mubr.msk.f32.gmra.mrb[54].mxu0 %vm2937_vm6, %v15755_v19  ;;  %v15762_v46 = vld [vmem:[#allocation150_spill] sm:$0xff]  ;;  %v15763_v19 = vld [vmem:[#allocation105_spill] sm:$0xff] }
 0x5b9   : > { %9655 = vmatprep.mubr.msk.f32.mxu1 %vm2937_vm6, %v15756_v33  ;;  %10115 = vmatprep.mubr.msk.f32.mxu0 %vm2937_vm6, %v15757_v51  ;;  %v15764_v51 = vld [vmem:[#allocation149_spill] sm:$0xff] }
 0x5bc   : > { %9656 = vmatmul.mubr.msk.f32.gmra.mrb[80].mxu1 %vm2937_vm6, %v15758_v6  ;;  %10116 = vmatmul.mubr.msk.f32.gmra.mrb[56].mxu0 %vm2937_vm6, %v15759_v7  ;;  %v15765_v6 = vld [vmem:[#allocation140_spill] sm:$0xff]  ;;  %v15766_v7 = vld [vmem:[#allocation151_spill] sm:$0xff] }
 0x5bd   : > { %9660 = vmatprep.mubr.msk.f32.mxu1 %vm2937_vm6, %v15760_v34  ;;  %10118 = vmatprep.mubr.msk.f32.mxu0 %vm2937_vm6, %v15761_v50  ;;  %v15767_v34 = vld [vmem:[#allocation110_spill] sm:$0xff] }
 0x5c0   : > { %9661 = vmatmul.mubr.msk.f32.vlgmr.msra.gmra.mrb[18].mxu1 %vm2937_vm6, %v15762_v46  ;;  %10119 = vmatmul.mubr.msk.f32.gmra.mrb[58].mxu0 %vm2937_vm6, %v15763_v19  ;;  %v15768_v46 = vld [vmem:[#allocation147_spill] sm:$0xff] }
 0x5c1   : > { %10263 = vmatpush3.msk.msra.mxu1 %vm3066_vm2, %v13727_v47  ;;  %9663 = vmatprep.mubr.msk.f32.mxu1 %vm2937_vm6, %v15764_v51  ;;  %v15769_v47 = vld [vmem:[#allocation136_spill] sm:$0xff]  ;;  %v15770_v51 = vld [vmem:[#allocation142_spill] sm:$0xff] }
 0x5c2   : > { %10121 = vmatprep.mubr.msk.f32.mxu0 %vm2937_vm6, %v15765_v6 }
 0x5c4   : > { %9664 = vmatmul.mubr.msk.f32.gmra.mrb[20].mxu1 %vm2937_vm6, %v15766_v7  ;;  %10122 = vmatmul.mubr.msk.f32.gmra.mrb[60].mxu0 %vm2937_vm6, %v15767_v34  ;;  %v15771_v7 = vld [vmem:[#allocation67_spill] sm:$0xff] }
 0x5c5   : > { %9666 = vmatprep.mubr.msk.f32.mxu1 %vm2937_vm6, %v15624_v44  ;;  %10124 = vmatprep.mubr.msk.f32.mxu0 %vm2937_vm6, %v15768_v46  ;;  %v15772_v44 = vld [vmem:[#allocation74_spill] sm:$0xff]  ;;  %v6562_v46 = vrot.slane %v13784_v59, 1 }
 0x5c8   : > { %9667 = vmatmul.mubr.msk.f32.gmra.mrb[22].mxu1 %vm2937_vm6, %v15628_v61  ;;  %10125 = vmatmul.mubr.msk.f32.gmra.mrb[62].mxu0 %vm2937_vm6, %v15769_v47  ;;  %v5160_v61 = vrot.slane %v15664_v9, 1  ;;  %v15773_v47 = vld [vmem:[#allocation3_spill] sm:$0xff] }
 0x5c9   : > { %9669 = vmatprep.mubr.msk.f32.mxu1 %vm2937_vm6, %v15629_v36  ;;  %10127 = vmatprep.mubr.msk.f32.mxu0 %vm2937_vm6, %v15770_v51  ;;  %v1189_v36 = vpop.permute.xlu0 %1188  ;;  %v15775_v51 = vld [vmem:[#allocation2_spill] sm:$0xff] }
 0x5cc   : > { %9670 = vmatmul.mubr.msk.f32.gmra.mrb[24].mxu1 %vm2937_vm6, %v15632_v25  ;;  %10128 = vmatmul.mubr.msk.f32.gmra.mrb[64].mxu0 %vm2937_vm6, %v15771_v7  ;;  %v15774_v25 = vld [vmem:[#allocation108_spill] sm:$0xff]  ;;  %v5162_v7 = vrot.slane %v15666_v37, 1 }
 0x5cd   : > { %9672 = vmatprep.mubr.msk.f32.mxu1 %vm2937_vm6, %v11949_v45  ;;  %10130 = vmatprep.mubr.msk.f32.mxu0 %vm2937_vm6, %v15772_v44  ;;  %v5159_v45 = vrot.slane %v15662_v49, 1  ;;  %v1603_v44 = vpop.permute.xlu1 %1602 }
 0x5d0   : > { %9673 = vmatmul.mubr.msk.f32.gmra.mrb[26].mxu1 %vm2937_vm6, %v15633_v1  ;;  %10131 = vmatmul.mubr.msk.f32.gmra.mrb[66].mxu0 %vm2937_vm6, %v15773_v47  ;;  %v5164_v1 = vrot.slane %v13496_v38, 1  ;;  %v5166_v47 = vrot.slane %v13492_v30, 1 }
 0x5d1   : > { %9675 = vmatprep.mubr.msk.f32.mxu1 %vm2937_vm6, %v11953_v54  ;;  %10133 = vmatprep.mubr.msk.f32.mxu0 %vm2937_vm6, %v15774_v25  ;;  %v14054_v54 = vsel %vm2790_vm7, %v5159_v45, %v5160_v61  ;;  %v2017_v25 = vpop.permute.xlu0 %2016  ;;  %v2431_v45 = vpop.permute.xlu1 %2430 }
 0x5d2   : > { %v14072_v30 = vsel %vm2790_vm7, %v5162_v7, %v5164_v1 }
 0x5d4   : > { %9676 = vmatmul.mubr.msk.f32.gmra.mrb[28].mxu1 %vm2937_vm6, %v12010_v32  ;;  %10134 = vmatmul.mubr.msk.f32.gmra.mrb[68].mxu0 %vm2937_vm6, %v15775_v51  ;;  %v14062_v32 = vsel %vm2790_vm7, %v5160_v61, %v5162_v7  ;;  %v6563_v51 = vrot.slane %v13796_v31, 1  ;;  %v6565_v61 = vrot.slane %v13802_v58, 1 }
 0x5d5   : > { %9678 = vmatprep.mubr.msk.f32.mxu1 %vm2937_vm6, %v12029_v40  ;;  %10136 = vmatprep.mubr.msk.f32.mxu0 %vm2937_vm6, %v14054_v54  ;;  %v2522_v40 = vsel %vm2432_vm3, %v1189_v36, %v1603_v44  ;;  %v14081_v44 = vsel %vm2790_vm7, %v5164_v1, %v5166_v47  ;;  %v6567_v36 = vrot.slane %v13813_v15, 1  ;;  %v15811_v1 = vld [vmem:[#allocation121_spill] sm:$0xff] }
 0x5d6   : > { %v6564_v7 = vsel %vm2790_vm7, %v6562_v46, %v6563_v51  ;;  %v6566_v47 = vsel %vm2790_vm7, %v6563_v51, %v6565_v61  ;;  %v15809_v46 = vld [vmem:[#allocation57_spill] sm:$0xff]  ;;  %v15810_v51 = vld [vmem:[#allocation66_spill] sm:$0xff] }
 0x5d8   : > { %9679 = vmatmul.mubr.msk.f32.gmra.mrb[30].mxu1 %vm2937_vm6, %v12052_v13  ;;  %10137 = vmatmul.mubr.msk.f32.gmra.mrb[70].mxu0 %vm2937_vm6, %v14062_v32  ;;  %v2613_v13 = vsel %vm2523_vm5, %v2522_v40, %v2017_v25  ;;  %v6568_v25 = vsel %vm2790_vm7, %v6565_v61, %v6567_v36  ;;  %v15812_v40 = vld [vmem:[#allocation68_spill] sm:$0xff]  ;;  %v15815_v61 = vld [vmem:[#allocation123_spill] sm:$0xff] }
 0x5d9   : > { %9681 = vmatprep.mubr.msk.f32.mxu1 %vm2937_vm6, %v12033_v2  ;;  %10139 = vmatprep.mubr.msk.f32.mxu0 %vm2937_vm6, %v14072_v30  ;;  %v14085_v2 = vsel %vm2614_vm4, %v2613_v13, %v2431_v45  ;;  %v15813_v45 = vld [vmem:[#allocation58_spill] sm:$0xff] }
 0x5da   : > { %v15814_v13 = vld [vmem:[#allocation134_spill] sm:$0xff] }
 0x5dc   : > { %9682 = vmatmul.mubr.msk.f32.gmra.mrb[32].mxu1 %vm2937_vm6, %v12100_v26  ;;  %10140 = vmatmul.mubr.msk.f32.gmra.mrb[72].mxu0 %vm2937_vm6, %v14081_v44  ;;  %v6569_v26 = vrot.slane %v14085_v2, 1 }
 0x5dd   : > { %9684 = vmatprep.mubr.msk.f32.mxu1 %vm2937_vm6, %v12119_v23  ;;  %10142 = vmatprep.mubr.msk.f32.mxu0 %vm2937_vm6, %v6564_v7  ;;  %v15817_v7 = vld [vmem:[#allocation21_spill] sm:$0xff] }
 0x5de   : > { %v6570_v23 = vsel %vm2790_vm7, %v6567_v36, %v6569_v26  ;;  %v15816_v36 = vld [vmem:[#allocation143_spill] sm:$0xff] }
 0x5df   : > { %v15818_v26 = vld [vmem:[#allocation39_spill] sm:$0xff] }
 0x5e0   : > { %9685 = vmatmul.mubr.msk.f32.gmra.mrb[34].mxu1 %vm2937_vm6, %v12144_v22  ;;  %10143 = vmatmul.mubr.msk.f32.gmra.mrb[74].mxu0 %vm2937_vm6, %v6566_v47  ;;  %v15778_v22 = vld [vmem:[#allocation75_spill] sm:$0xff]  ;;  %v15819_v47 = vld [vmem:[#allocation138_spill] sm:$0xff] }
 0x5e1   : > { %9687 = vmatprep.mubr.msk.f32.mxu1 %vm2937_vm6, %v12123_v12  ;;  %10145 = vmatprep.mubr.msk.f32.mxu0 %vm2937_vm6, %v6568_v25  ;;  %v15777_v12 = vld [vmem:[#allocation29_spill] sm:$0xff] }
 0x5e2   : > { %v15820_v25 = vld [vmem:[#allocation89_spill] sm:$0xff] }
 0x5e4   : > { %9688 = vmatmul.mubr.msk.f32.gmra.mrb[36].mxu1 %vm2937_vm6, %v12188_v39  ;;  %10146 = vmatmul.mubr.msk.f32.gmra.mrb[76].mxu0 %vm2937_vm6, %v6570_v23  ;;  %v15776_v39 = vld [vmem:[#allocation93_spill] sm:$0xff]  ;;  %v15821_v23 = vld [vmem:[#allocation62_spill] sm:$0xff] }
 0x5e5   : > { %9690 = vmatprep.mubr.msk.f32.mxu1 %vm2937_vm6, %v15525_v56  ;;  %10150 = vmatprep.mubr.msk.f32.mxu0 %vm2937_vm6, %v15657_v55  ;;  %v15785_v56 = vld [vmem:[#allocation97_spill] sm:$0xff]  ;;  %v15797_v55 = vld [vmem:[#allocation116_spill] sm:$0xff] }
 0x5e8   : > { %9691 = vmatmul.mubr.msk.f32.gmra.mrb[38].mxu1 %vm2937_vm6, %v12228_v53  ;;  %10151 = vmatmul.mubr.msk.f32.vlgmr.msra.gmra.mrb[14].mxu0 %vm2937_vm6, %v15658_v24  ;;  %v15780_v53 = vld [vmem:[#allocation80_spill] sm:$0xff]  ;;  %v15798_v24 = vld [vmem:[#allocation113_spill] sm:$0xff] }
 0x5e9   : > { %9693 = vmatprep.mubr.msk.f32.mxu1 %vm2937_vm6, %v15529_v41  ;;  %10153 = vmatprep.mubr.msk.f32.mxu0 %vm2937_vm6, %v15659_v63  ;;  %v15786_v41 = vld [vmem:[#allocation126_spill] sm:$0xff]  ;;  %v15799_v63 = vld [vmem:[#allocation19_spill] sm:$0xff] }
 0x5ec   : > { %9694 = vmatmul.mubr.msk.f32.gmra.mrb[40].mxu1 %vm2937_vm6, %v12270_v14  ;;  %10154 = vmatmul.mubr.msk.f32.gmra.mrb[16].mxu0 %vm2937_vm6, %v15660_v16  ;;  %v15779_v14 = vld [vmem:[#allocation77_spill] sm:$0xff]  ;;  %v15792_v16 = vld [vmem:[#allocation14_spill] sm:$0xff] }
 0x5ed   : > { %9696 = vmatprep.mubr.msk.f32.mxu1 %vm2937_vm6, %v12289_v60  ;;  %10156 = vmatprep.mubr.msk.f32.mxu0 %vm2937_vm6, %v15661_v52  ;;  %v15781_v60 = vld [vmem:[#allocation34_spill] sm:$0xff]  ;;  %v15794_v52 = vld [vmem:[#allocation17_spill] sm:$0xff] }
 0x5f0   : > { %9697 = vmatmul.mubr.msk.f32.gmra.mrb[42].mxu1 %vm2937_vm6, %v12308_v0  ;;  %10157 = vmatmul.mubr.msk.f32.gmra.mrb[18].mxu0 %vm2937_vm6, %v15663_v42  ;;  %v15783_v0 = vld [vmem:[#allocation129_spill] sm:$0xff] }
 0x5f1   : > { %9699 = vmatprep.mubr.msk.f32.mxu1 %vm2937_vm6, %v15538_v35  ;;  %10159 = vmatprep.mubr.msk.f32.mxu0 %vm2937_vm6, %v15665_v29  ;;  %v15788_v35 = vld [vmem:[#allocation47_spill] sm:$0xff]  ;;  %v15793_v42 = vld [vmem:[#allocation53_spill] sm:$0xff]  ;;  %v15796_v29 = vld [vmem:[#allocation52_spill] sm:$0xff] }
 0x5f4   : > { %9700 = vmatmul.mubr.msk.f32.gmra.mrb[44].mxu1 %vm2937_vm6, %v12350_v27  ;;  %10160 = vmatmul.mubr.msk.f32.gmra.mrb[20].mxu0 %vm2937_vm6, %v15667_v18  ;;  %v15782_v27 = vld [vmem:[#allocation36_spill] sm:$0xff]  ;;  %v15791_v18 = vld [vmem:[#allocation114_spill] sm:$0xff] }
 0x5f5   : > { %9702 = vmatprep.mubr.msk.f32.mxu1 %vm2937_vm6, %v15543_v57  ;;  %10162 = vmatprep.mubr.msk.f32.mxu0 %vm2937_vm6, %v15668_v3  ;;  %v15787_v57 = vld [vmem:[#allocation6_spill] sm:$0xff]  ;;  %v15795_v3 = vld [vmem:[#allocation145_spill] sm:$0xff] }
 0x5f8   : > { %9703 = vmatmul.mubr.msk.f32.gmra.mrb[46].mxu1 %vm2937_vm6, %v15541_v17  ;;  %10163 = vmatmul.mubr.msk.f32.gmra.mrb[22].mxu0 %vm2937_vm6, %v15669_v5  ;;  %v15789_v17 = vld [vmem:[#allocation99_spill] sm:$0xff] }
 0x5f9   : > { %9705 = vmatprep.mubr.msk.f32.mxu1 %vm2937_vm6, %v15546_v10  ;;  %10165 = vmatprep.mubr.msk.f32.mxu0 %vm2937_vm6, %v15670_v48  ;;  %v15790_v10 = vld [vmem:[#allocation42_spill] sm:$0xff]  ;;  %v15800_v5 = vld [vmem:[#allocation55_spill] sm:$0xff]  ;;  %v15801_v48 = vld [vmem:[#allocation137_spill] sm:$0xff] }
 0x5fc   : > { %9706 = vmatmul.mubr.msk.f32.gmra.mrb[48].mxu1 %vm2937_vm6, %v12438_v28  ;;  %10166 = vmatmul.mubr.msk.f32.gmra.mrb[24].mxu0 %vm2937_vm6, %v15671_v4  ;;  %v15784_v28 = vld [vmem:[#allocation102_spill] sm:$0xff]  ;;  %v15802_v4 = vld [vmem:[#allocation103_spill] sm:$0xff] }
 0x5fd   : > { %9708 = vmatprep.mubr.msk.f32.mxu1 %vm2937_vm6, %v15776_v39  ;;  %10168 = vmatprep.mubr.msk.f32.mxu0 %vm2937_vm6, %v15672_v20  ;;  %v15803_v20 = vld [vmem:[#allocation135_spill] sm:$0xff]  ;;  %v15822_v39 = vld [vmem:[#allocation72_spill] sm:$0xff] }
 0x600   : > { %9709 = vmatmul.mubr.msk.f32.gmra.mrb[50].mxu1 %vm2937_vm6, %v15777_v12  ;;  %10169 = vmatmul.mubr.msk.f32.gmra.mrb[26].mxu0 %vm2937_vm6, %v15674_v11  ;;  %v15804_v11 = vld [vmem:[#allocation128_spill] sm:$0xff]  ;;  %v15823_v12 = vld [vmem:[#allocation146_spill] sm:$0xff] }
 0x601   : > { %9711 = vmatprep.mubr.msk.f32.mxu1 %vm2937_vm6, %v15778_v22  ;;  %10171 = vmatprep.mubr.msk.f32.mxu0 %vm2937_vm6, %v15676_v21  ;;  %v15805_v21 = vld [vmem:[#allocation101_spill] sm:$0xff] }
 0x602   : > { %v15824_v22 = vld [vmem:[#allocation33_spill] sm:$0xff] }
 0x604   : > { %9712 = vmatmul.mubr.msk.f32.gmra.mrb[52].mxu1 %vm2937_vm6, %v15779_v14  ;;  %10172 = vmatmul.mubr.msk.f32.gmra.mrb[28].mxu0 %vm2937_vm6, %v15678_v43  ;;  %v15806_v43 = vld [vmem:[#allocation7_spill] sm:$0xff]  ;;  %v15825_v14 = vld [vmem:[#allocation125_spill] sm:$0xff] }
 0x605   : > { %9714 = vmatprep.mubr.msk.f32.mxu1 %vm2937_vm6, %v15780_v53  ;;  %10174 = vmatprep.mubr.msk.f32.mxu0 %vm2937_vm6, %v15680_v8  ;;  %v15807_v8 = vld [vmem:[#allocation119_spill] sm:$0xff]  ;;  %v15826_v53 = vld [vmem:[#allocation60_spill] sm:$0xff] }
 0x608   : > { %9715 = vmatmul.mubr.msk.f32.gmra.mrb[54].mxu1 %vm2937_vm6, %v15781_v60  ;;  %10175 = vmatmul.mubr.msk.f32.gmra.mrb[30].mxu0 %vm2937_vm6, %v15682_v62  ;;  %v15808_v62 = vld [vmem:[#allocation139_spill] sm:$0xff] }
 0x609   : > { %9717 = vmatprep.mubr.msk.f32.mxu1 %vm2937_vm6, %v15782_v27  ;;  %10177 = vmatprep.mubr.msk.f32.mxu0 %vm2937_vm6, %v15783_v0  ;;  %v15827_v60 = vld [vmem:[#allocation127_spill] sm:$0xff]  ;;  %v15828_v27 = vld [vmem:[#allocation61_spill] sm:$0xff]  ;;  %v15829_v0 = vld [vmem:[#allocation130_spill] sm:$0xff] }
 0x60c   : > { %9718 = vmatmul.mubr.msk.f32.gmra.mrb[56].mxu1 %vm2937_vm6, %v15784_v28  ;;  %10178 = vmatmul.mubr.msk.f32.gmra.mrb[32].mxu0 %vm2937_vm6, %v15785_v56  ;;  %v15831_v28 = vld [vmem:[#allocation23_spill] sm:$0xff] }
 0x60d   : > { %9720 = vmatprep.mubr.msk.f32.mxu1 %vm2937_vm6, %v15786_v41  ;;  %10180 = vmatprep.mubr.msk.f32.mxu0 %vm2937_vm6, %v15787_v57  ;;  %v15833_v56 = vld [vmem:[#allocation107_spill] sm:$0xff]  ;;  %v15835_v41 = vld [vmem:[#allocation141_spill] sm:$0xff]  ;;  %v15837_v57 = vld [vmem:[#allocation132_spill] sm:$0xff] }
 0x610   : > { %9721 = vmatmul.mubr.msk.f32.gmra.mrb[58].mxu1 %vm2937_vm6, %v15788_v35  ;;  %10181 = vmatmul.mubr.msk.f32.gmra.mrb[34].mxu0 %vm2937_vm6, %v15789_v17  ;;  %v15838_v35 = vld [vmem:[#allocation88_spill] sm:$0xff] }
 0x611   : > { %9723 = vmatprep.mubr.msk.f32.mxu1 %vm2937_vm6, %v15790_v10  ;;  %10183 = vmatprep.mubr.msk.f32.mxu0 %vm2937_vm6, %v15791_v18  ;;  %v15839_v17 = vld [vmem:[#allocation64_spill] sm:$0xff]  ;;  %v15841_v18 = vld [vmem:[#allocation70_spill] sm:$0xff] }
 0x612   : > { %v15840_v10 = vld [vmem:[#allocation44_spill] sm:$0xff] }
 0x614   : > { %9724 = vmatmul.mubr.msk.f32.gmra.mrb[60].mxu1 %vm2937_vm6, %v15792_v16  ;;  %10184 = vmatmul.mubr.msk.f32.gmra.mrb[36].mxu0 %vm2937_vm6, %v15793_v42  ;;  %v15842_v16 = vld [vmem:[#allocation109_spill] sm:$0xff]  ;;  %v15843_v42 = vld [vmem:[#allocation35_spill] sm:$0xff] }
 0x615   : > { %9726 = vmatprep.mubr.msk.f32.mxu1 %vm2937_vm6, %v15794_v52  ;;  %10186 = vmatprep.mubr.msk.f32.mxu0 %vm2937_vm6, %v15795_v3  ;;  %v15844_v52 = vld [vmem:[#allocation48_spill] sm:$0xff]  ;;  %v15845_v3 = vld [vmem:[#allocation10_spill] sm:$0xff] }
 0x618   : > { %9727 = vmatmul.mubr.msk.f32.gmra.mrb[62].mxu1 %vm2937_vm6, %v15796_v29  ;;  %10187 = vmatmul.mubr.msk.f32.gmra.mrb[38].mxu0 %vm2937_vm6, %v15797_v55  ;;  %v15846_v29 = vld [vmem:[#allocation49_spill] sm:$0xff] }
 0x619   : > { %9729 = vmatprep.mubr.msk.f32.mxu1 %vm2937_vm6, %v15798_v24  ;;  %10189 = vmatprep.mubr.msk.f32.mxu0 %vm2937_vm6, %v15799_v63  ;;  %v15847_v55 = vld [vmem:[#allocation73_spill] sm:$0xff]  ;;  %v15848_v24 = vld [vmem:[#allocation46_spill] sm:$0xff]  ;;  %v15849_v63 = vld [vmem:[#allocation4_spill] sm:$0xff] }
 0x61c   : > { %9730 = vmatmul.mubr.msk.f32.gmra.mrb[64].mxu1 %vm2937_vm6, %v15800_v5  ;;  %10190 = vmatmul.mubr.msk.f32.gmra.mrb[40].mxu0 %vm2937_vm6, %v15801_v48  ;;  %v15850_v5 = vld [vmem:[#allocation115_spill] sm:$0xff]  ;;  %v15851_v48 = vld [vmem:[#allocation54_spill] sm:$0xff] }
 0x61d   : > { %9732 = vmatprep.mubr.msk.f32.mxu1 %vm2937_vm6, %v15802_v4  ;;  %10192 = vmatprep.mubr.msk.f32.mxu0 %vm2937_vm6, %v15803_v20  ;;  %v15852_v4 = vld [vmem:[#allocation161_spill] sm:$0xff]  ;;  %v15853_v20 = vld [vmem:[#allocation118_spill] sm:$0xff] }
 0x620   : > { %9733 = vmatmul.mubr.msk.f32.gmra.mrb[66].mxu1 %vm2937_vm6, %v15804_v11  ;;  %10193 = vmatmul.mubr.msk.f32.gmra.mrb[42].mxu0 %vm2937_vm6, %v15805_v21  ;;  %v15854_v11 = vld [vmem:[#allocation154_spill] sm:$0xff]  ;;  %v15855_v21 = vld [vmem:[#allocation56_spill] sm:$0xff] }
 0x621   : > { %9735 = vmatprep.mubr.msk.f32.mxu1 %vm2937_vm6, %v15806_v43  ;;  %10195 = vmatprep.mubr.msk.f32.mxu0 %vm2937_vm6, %v15807_v8  ;;  %v7032_v43 = vrot.slane %v13796_v31, 2  ;;  %v7031_v8 = vrot.slane %v13784_v59, 2  ;;  %v7038_v31 = vrot.slane %v14085_v2, 2  ;;  %v15861_v2 = vld [vmem:[#allocation142_spill] sm:$0xff] }
 0x623   : > { %v7033_v59 = vsel %vm3969_vm8, %v7031_v8, %v7032_v43 }
 0x624   : > { %9736 = vmatmul.mubr.msk.f32.gmra.mrb[68].mxu1 %vm2937_vm6, %v15808_v62  ;;  %10196 = vmatmul.mubr.msk.f32.gmra.mrb[44].mxu0 %vm2937_vm6, %v15809_v46  ;;  %v15857_v62 = vld [vmem:[#allocation156_spill] sm:$0xff]  ;;  %v7034_v46 = vrot.slane %v13802_v58, 2 }
 0x625   : > { %9738 = vmatprep.mubr.msk.f32.mxu1 %vm2937_vm6, %v15810_v51  ;;  %10198 = vmatprep.mubr.msk.f32.mxu0 %vm2937_vm6, %v15811_v1  ;;  %v7036_v51 = vrot.slane %v13813_v15, 2  ;;  %v15858_v1 = vld [vmem:[#allocation16_spill] sm:$0xff]  ;;  %v15859_v15 = vld [vmem:[#allocation147_spill] sm:$0xff] }
 0x626   : > { %v7035_v58 = vsel %vm3969_vm8, %v7032_v43, %v7034_v46 }
 0x628   : > { %9739 = vmatmul.mubr.msk.f32.gmra.mrb[70].mxu1 %vm2937_vm6, %v15812_v40  ;;  %10199 = vmatmul.mubr.msk.f32.gmra.mrb[46].mxu0 %vm2937_vm6, %v15813_v45  ;;  %v15863_v40 = vld [vmem:[#allocation74_spill] sm:$0xff]  ;;  %v15864_v45 = vld [vmem:[#allocation3_spill] sm:$0xff] }
 0x629   : > { %9741 = vmatprep.mubr.msk.f32.mxu1 %vm2937_vm6, %v15814_v13  ;;  %10201 = vmatprep.mubr.msk.f32.mxu0 %vm2937_vm6, %v15815_v61  ;;  %v15865_v13 = vld [vmem:[#allocation108_spill] sm:$0xff]  ;;  %v15866_v61 = vld [vmem:[#allocation2_spill] sm:$0xff] }
 0x62c   : > { %9742 = vmatmul.mubr.msk.f32.gmra.mrb[72].mxu1 %vm2937_vm6, %v15816_v36  ;;  %10202 = vmatmul.mubr.msk.f32.gmra.mrb[48].mxu0 %vm2937_vm6, %v15817_v7 }
 0x62d   : > { %9744 = vmatprep.mubr.msk.f32.mxu1 %vm2937_vm6, %v15818_v26  ;;  %10204 = vmatprep.mubr.msk.f32.mxu0 %vm2937_vm6, %v15819_v47 }
 0x630   : > { %9745 = vmatmul.mubr.msk.f32.gmra.mrb[74].mxu1 %vm2937_vm6, %v15820_v25  ;;  %10205 = vmatmul.mubr.msk.f32.gmra.mrb[50].mxu0 %vm2937_vm6, %v15821_v23 }
 0x631   : > { %9747 = vmatprep.mubr.msk.f32.mxu1 %vm2937_vm6, %v15822_v39  ;;  %10207 = vmatprep.mubr.msk.f32.mxu0 %vm2937_vm6, %v15823_v12 }
 0x634   : > { %9748 = vmatmul.mubr.msk.f32.gmra.mrb[76].mxu1 %vm2937_vm6, %v15824_v22  ;;  %10208 = vmatmul.mubr.msk.f32.gmra.mrb[52].mxu0 %vm2937_vm6, %v15825_v14 }
 0x635   : > { %9750 = vmatprep.mubr.msk.f32.mxu1 %vm2937_vm6, %v15662_v49  ;;  %10210 = vmatprep.mubr.msk.f32.mxu0 %vm2937_vm6, %v15826_v53  ;;  %v15830_v49 = vld [vmem:[#allocation12_spill] sm:$0xff] }
 0x638   : > { %9751 = vmatmul.mubr.msk.f32.gmra.mrb[78].mxu1 %vm2937_vm6, %v15664_v9  ;;  %10211 = vmatmul.mubr.msk.f32.gmra.mrb[54].mxu0 %vm2937_vm6, %v15827_v60  ;;  %v15832_v9 = vld [vmem:[#allocation86_spill] sm:$0xff] }
 0x639   : > { %9753 = vmatprep.mubr.msk.f32.mxu1 %vm2937_vm6, %v15666_v37  ;;  %10213 = vmatprep.mubr.msk.f32.mxu0 %vm2937_vm6, %v15828_v27  ;;  %v15834_v37 = vld [vmem:[#allocation40_spill] sm:$0xff] }
 0x63c   : > { %9754 = vmatmul.mubr.msk.f32.gmra.mrb[80].mxu1 %vm2937_vm6, %v13496_v38  ;;  %10214 = vmatmul.mubr.msk.f32.gmra.mrb[56].mxu0 %vm2937_vm6, %v15829_v0  ;;  %v15836_v38 = vld [vmem:[#allocation38_spill] sm:$0xff] }
 0x63d   : > { %9809 = vmatprep.mubr.msk.f32.mxu1 %vm2937_vm6, %v15830_v49  ;;  %10216 = vmatprep.mubr.msk.f32.mxu0 %vm2937_vm6, %v15831_v28 }
 0x640   : > { %9810 = vmatmul.mubr.msk.f32.vlgmr.msra.gmra.mrb[52].mxu1 %vm2937_vm6, %v15832_v9  ;;  %10217 = vmatmul.mubr.msk.f32.gmra.mrb[58].mxu0 %vm2937_vm6, %v15833_v56 }
 0x641   : > { %9812 = vmatprep.mubr.msk.f32.mxu1 %vm2937_vm6, %v15834_v37  ;;  %10219 = vmatprep.mubr.msk.f32.mxu0 %vm2937_vm6, %v15835_v41  ;;  %v14414_v37 = vld [vmem:[%s14812_s4] ss:$0 sm:$0xff] }
 0x644   : > { %9813 = vmatmul.mubr.msk.f32.gmra.mrb[54].mxu1 %vm2937_vm6, %v15836_v38  ;;  %10220 = vmatmul.mubr.msk.f32.gmra.mrb[60].mxu0 %vm2937_vm6, %v15837_v57 }
 0x645   : > { %9815 = vmatprep.mubr.msk.f32.mxu1 %vm2937_vm6, %v15838_v35  ;;  %10222 = vmatprep.mubr.msk.f32.mxu0 %vm2937_vm6, %v15839_v17 }
 0x648   : > { %9816 = vmatmul.mubr.msk.f32.gmra.mrb[56].mxu1 %vm2937_vm6, %v15840_v10  ;;  %10223 = vmatmul.mubr.msk.f32.gmra.mrb[62].mxu0 %vm2937_vm6, %v15841_v18  ;;  %v14422_v10 = vld [vmem:[%s14813_s5] ss:$0 sm:$0xff] }
 0x649   : > { %9818 = vmatprep.mubr.msk.f32.mxu1 %vm2937_vm6, %v15842_v16  ;;  %10225 = vmatprep.mubr.msk.f32.mxu0 %vm2937_vm6, %v15843_v42 }
 0x64c   : > { %9819 = vmatmul.mubr.msk.f32.gmra.mrb[58].mxu1 %vm2937_vm6, %v15844_v52  ;;  %10226 = vmatmul.mubr.msk.f32.gmra.mrb[64].mxu0 %vm2937_vm6, %v15845_v3 }
 0x64d   : > { %9821 = vmatprep.mubr.msk.f32.mxu1 %vm2937_vm6, %v15846_v29  ;;  %10228 = vmatprep.mubr.msk.f32.mxu0 %vm2937_vm6, %v15847_v55  ;;  %v14432_v55 = vld [vmem:[%s14814_s6] ss:$0 sm:$0xff] }
 0x650   : > { %9822 = vmatmul.mubr.msk.f32.gmra.mrb[60].mxu1 %vm2937_vm6, %v15848_v24  ;;  %10229 = vmatmul.mubr.msk.f32.gmra.mrb[66].mxu0 %vm2937_vm6, %v15849_v63 }
 0x651   : > { %9824 = vmatprep.mubr.msk.f32.mxu1 %vm2937_vm6, %v15850_v5  ;;  %10231 = vmatprep.mubr.msk.f32.mxu0 %vm2937_vm6, %v15756_v33  ;;  %v15856_v33 = vld [vmem:[#allocation155_spill] sm:$0xff] }
 0x654   : > { %9825 = vmatmul.mubr.msk.f32.gmra.mrb[62].mxu1 %vm2937_vm6, %v15851_v48  ;;  %10232 = vmatmul.mubr.msk.f32.gmra.mrb[68].mxu0 %vm2937_vm6, %v15852_v4 }
 0x655   : > { %9827 = vmatprep.mubr.msk.f32.mxu1 %vm2937_vm6, %v15853_v20  ;;  %10234 = vmatprep.mubr.msk.f32.mxu0 %vm2937_vm6, %v15854_v11 }
 0x658   : > { %9828 = vmatmul.mubr.msk.f32.gmra.mrb[64].mxu1 %vm2937_vm6, %v15855_v21  ;;  %10235 = vmatmul.mubr.msk.f32.gmra.mrb[70].mxu0 %vm2937_vm6, %v15856_v33 }
 0x659   : > { %9830 = vmatprep.mubr.msk.f32.mxu1 %vm2937_vm6, %v15761_v50  ;;  %10237 = vmatprep.mubr.msk.f32.mxu0 %vm2937_vm6, %v15857_v62  ;;  %v7037_v50 = vsel %vm3969_vm8, %v7034_v46, %v7036_v51 }
 0x65c   : > { %9831 = vmatmul.mubr.msk.f32.gmra.mrb[66].mxu1 %vm2937_vm6, %v15763_v19  ;;  %10238 = vmatmul.mubr.msk.f32.gmra.mrb[72].mxu0 %vm2937_vm6, %v15858_v1  ;;  %v7039_v19 = vsel %vm3969_vm8, %v7036_v51, %v7038_v31 }
 0x65d   : > { %9833 = vmatprep.mubr.msk.f32.mxu1 %vm2937_vm6, %v15765_v6  ;;  %10240 = vmatprep.mubr.msk.f32.mxu0 %vm2937_vm6, %v7033_v59  ;;  %v15860_v6 = vld [vmem:[#allocation136_spill] sm:$0xff] }
 0x660   : > { %9834 = vmatmul.mubr.msk.f32.gmra.mrb[68].mxu1 %vm2937_vm6, %v15767_v34  ;;  %10241 = vmatmul.mubr.msk.f32.gmra.mrb[74].mxu0 %vm2937_vm6, %v7035_v58  ;;  %v15862_v34 = vld [vmem:[#allocation67_spill] sm:$0xff] }
 0x661   : > { %9836 = vmatprep.mubr.msk.f32.mxu1 %vm2937_vm6, %v15859_v15  ;;  %10243 = vmatprep.mubr.msk.f32.mxu0 %vm2937_vm6, %v7037_v50 }
 0x664   : > { %9837 = vmatmul.mubr.msk.f32.gmra.mrb[70].mxu1 %vm2937_vm6, %v15860_v6  ;;  %10244 = vmatmul.mubr.msk.f32.gmra.mrb[76].mxu0 %vm2937_vm6, %v7039_v19 }
 0x665   : > { %9839 = vmatprep.mubr.msk.f32.mxu1 %vm2937_vm6, %v15861_v2 }
 0x668   : > { %9840 = vmatmul.mubr.msk.f32.gmra.mrb[72].mxu1 %vm2937_vm6, %v15862_v34 }
 0x669   : > { %9842 = vmatprep.mubr.msk.f32.mxu1 %vm2937_vm6, %v15863_v40 }
 0x66c   : > { %9843 = vmatmul.mubr.msk.f32.gmra.mrb[74].mxu1 %vm2937_vm6, %v15864_v45 }
 0x66d   : > { %9845 = vmatprep.mubr.msk.f32.mxu1 %vm2937_vm6, %v15865_v13 }
 0x670   : > { %9846 = vmatmul.mubr.msk.f32.gmra.mrb[76].mxu1 %vm2937_vm6, %v15866_v61 }
 0x671   : > { %9848 = vmatprep.mubr.msk.f32.mxu1 %vm2937_vm6, %v14054_v54 }
 0x674   : > { %9849 = vmatmul.mubr.msk.f32.gmra.mrb[78].mxu1 %vm2937_vm6, %v14062_v32 }
 0x675   : > { %9851 = vmatprep.mubr.msk.f32.mxu1 %vm2937_vm6, %v14072_v30 }
 0x678   : > { %9852 = vmatmul.mubr.msk.f32.gmra.mrb[80].mxu1 %vm2937_vm6, %v14081_v44 }
 0x693   : > { %v9662_v36 = vpop.f32.mrb[18].mxu1 }
 0x694   : > { %v4775_v7 = vpop.f32.mrb[19].mxu1 }
 0x697   : > { %v9665_v26 = vpop.f32.mrb[20].mxu1 }
 0x698   : > { %v4785_v47 = vpop.f32.mrb[21].mxu1 }
 0x69b   : > { %v9668_v25 = vpop.f32.mrb[22].mxu1 }
 0x69c   : > { %v4795_v23 = vpop.f32.mrb[23].mxu1 }
 0x69f   : > { %v9671_v39 = vpop.f32.mrb[24].mxu1 }
 0x6a0   : > { %v4805_v12 = vpop.f32.mrb[25].mxu1 }
 0x6a3   : > { %v9674_v22 = vpop.f32.mrb[26].mxu1 }
 0x6a4   : > { %v14387_v14 = vpop.f32.mrb[27].mxu1 }
 0x6a7   : > { %v14389_v54 = vpop.f32.mrb[28].mxu1 }
 0x6a8   : > { %v14391_v32 = vpop.f32.mrb[29].mxu1 }
 0x6ab   : > { %v14393_v53 = vpop.f32.mrb[30].mxu1 }
 0x6ac   : > { %v14395_v30 = vpop.f32.mrb[31].mxu1 }
 0x6af   : > { %v14397_v44 = vpop.f32.mrb[32].mxu1 }
 0x6b0   : > { %v14399_v60 = vpop.f32.mrb[33].mxu1 }
 0x6b3   : > { %v14401_v27 = vpop.f32.mrb[34].mxu1 }
 0x6b4   : > { %v14403_v0 = vpop.f32.mrb[35].mxu1 }
 0x6b7   : > { %v14405_v49 = vpop.f32.mrb[36].mxu1 }
 0x6b8   : > { %v14407_v28 = vpop.f32.mrb[37].mxu1 }
 0x6bb   : > { %v14409_v9 = vpop.f32.mrb[38].mxu1  ;;  %v10152_v56 = vpop.f32.mrb[14].mxu0 }
 0x6bc   : > { %v14416_v41 = vpop.f32.mrb[39].mxu1  ;;  %v10264_v38 = vadd.f32 %v10152_v56, %v9662_v36  ;;  %v7117_v57 = vpop.f32.mrb[15].mxu0 }
 0x6bd   : > { %v10265_v35 = vadd.f32 %v7117_v57, %v4775_v7 }
 0x6be   : > { %v7508_v17 = vmul.f32 %v10264_v38, %v14414_v37 }
 0x6bf   : > { %v14424_v18 = vpop.f32.mrb[40].mxu1  ;;  %v7507_v16 = vmul.f32 %v10265_v35, %v14414_v37  ;;  %v10155_v42 = vpop.f32.mrb[16].mxu0 }
 0x6c0   : > { %v14427_v52 = vpop.f32.mrb[41].mxu1  ;;  %v10266_v3 = vadd.f32 %v10155_v42, %v9665_v26  ;;  %v7127_v29 = vpop.f32.mrb[17].mxu0  ;;  %v7579_v24 = vadd.f32 %v14422_v10, %v7508_v17 }
 0x6c1   : > { %v7578_v63 = vadd.f32 %v14422_v10, %v7507_v16  ;;  %v10267_v5 = vadd.f32 %v7127_v29, %v4785_v47 }
 0x6c2   : > { %v7510_v43 = vmul.f32 %v10266_v3, %v14414_v37  ;;  %v7714_v1 = vmul.f32 %v14432_v55, %v7579_v24  ;;  %vm7643_vm10 = vcmp.gt.f32.partialorder %v7579_v24, 0.0 }
 0x6c3   : > { %v14436_v48 = vpop.f32.mrb[42].mxu1  ;;  %v7509_v4 = vmul.f32 %v10267_v5, %v14414_v37  ;;  %v10158_v20 = vpop.f32.mrb[18].mxu0  ;;  %vm7642_vm9 = vcmp.gt.f32.partialorder %v7578_v63, 0.0  ;;  %v7713_v21 = vmul.f32 %v14432_v55, %v7578_v63 }
 0x6c4   : > { %v14439_v11 = vpop.f32.mrb[43].mxu1  ;;  %v10268_v8 = vadd.f32 %v10158_v20, %v9668_v25  ;;  %v7137_v33 = vpop.f32.mrb[19].mxu0  ;;  %v7581_v15 = vadd.f32 %v14422_v10, %v7510_v43  ;;  %v7778_v34 = vsel %vm7643_vm10, %v7579_v24, %v7714_v1 }
 0x6c5   : > { %v7580_v62 = vadd.f32 %v14422_v10, %v7509_v4  ;;  %v10269_v46 = vadd.f32 %v7137_v33, %v4795_v23  ;;  %v7777_v51 = vsel %vm7642_vm9, %v7578_v63, %v7713_v21 }
 0x6c6   : > { %7841 = vxpose.xlu0.b32.start [1/16] (narrow) %v7777_v51, 8  ;;  %v7512_v36 = vmul.f32 %v10268_v8, %v14414_v37  ;;  %vm7645_vm12 = vcmp.gt.f32.partialorder %v7581_v15, 0.0 }
 0x6c7   : > { %v14445_v59 = vpop.f32.mrb[44].mxu1  ;;  %v10161_v31 = vpop.f32.mrb[20].mxu0  ;;  %v7511_v19 = vmul.f32 %v10269_v46, %v14414_v37  ;;  %v7715_v40 = vmul.f32 %v14432_v55, %v7580_v62  ;;  %vm7644_vm11 = vcmp.gt.f32.partialorder %v7580_v62, 0.0 }
 0x6c8   : > { %v14447_v58 = vpop.f32.mrb[45].mxu1  ;;  %v10270_v50 = vadd.f32 %v10161_v31, %v9671_v39  ;;  %v7147_v6 = vpop.f32.mrb[21].mxu0  ;;  %v7716_v39 = vmul.f32 %v14432_v55, %v7581_v15  ;;  %v7583_v57 = vadd.f32 %v14422_v10, %v7512_v36 }
 0x6c9   : > { %v10271_v2 = vadd.f32 %v7147_v6, %v4805_v12  ;;  %v7582_v47 = vadd.f32 %v14422_v10, %v7511_v19  ;;  %v7779_v23 = vsel %vm7644_vm11, %v7580_v62, %v7715_v40 }
 0x6ca   : > { %7842 = vxpose.xlu0.b32.cont [2/16] (narrow) %v7778_v34, 8  ;;  %v7514_v63 = vmul.f32 %v10270_v50, %v14414_v37  ;;  %v7718_v21 = vmul.f32 %v14432_v55, %v7583_v57  ;;  %vm7647_vm14 = vcmp.gt.f32.partialorder %v7583_v57, 0.0 }
 0x6cb   : > { %v14452_v45 = vpop.f32.mrb[46].mxu1  ;;  %v10164_v13 = vpop.f32.mrb[22].mxu0  ;;  %v7513_v17 = vmul.f32 %v10271_v2, %v14414_v37  ;;  %v7717_v42 = vmul.f32 %v14432_v55, %v7582_v47  ;;  %vm7646_vm13 = vcmp.gt.f32.partialorder %v7582_v47, 0.0 }
 0x6cc   : > { %v14454_v61 = vpop.f32.mrb[47].mxu1  ;;  %v10272_v7 = vadd.f32 %v10164_v13, %v9674_v22  ;;  %v7157_v26 = vpop.f32.mrb[23].mxu0  ;;  %v7585_v8 = vadd.f32 %v14422_v10, %v7514_v63  ;;  %v7782_v51 = vsel %vm7647_vm14, %v7583_v57, %v7718_v21 }
 0x6cd   : > { %v10273_v25 = vadd.f32 %v7157_v26, %v14387_v14  ;;  %v7780_v14 = vsel %vm7645_vm12, %v7581_v15, %v7716_v39  ;;  %v7584_v4 = vadd.f32 %v14422_v10, %v7513_v17  ;;  %v7781_v20 = vsel %vm7646_vm13, %v7582_v47, %v7717_v42 }
 0x6ce   : > { %7843 = vxpose.xlu0.b32.cont [3/16] (narrow) %v7779_v23, 8  ;;  %v7516_v1 = vmul.f32 %v10272_v7, %v14414_v37  ;;  %vm7649_vm0 = vcmp.gt.f32.partialorder %v7585_v8, 0.0 }
 0x6cf   : > { %v14460_v12 = vpop.f32.mrb[48].mxu1  ;;  %v10167_v56 = vpop.f32.mrb[24].mxu0  ;;  %v7515_v33 = vmul.f32 %v10273_v25, %v14414_v37  ;;  %vm7648_vm15 = vcmp.gt.f32.partialorder %v7584_v4, 0.0 }
 0x6d0   : > { %v14462_v38 = vpop.f32.mrb[49].mxu1  ;;  %v10274_v35 = vadd.f32 %v10167_v56, %v14389_v54  ;;  %v7167_v22 = vpop.f32.mrb[25].mxu0 }
 0x6d1   : > { %v10275_v16 = vadd.f32 %v7167_v22, %v14391_v32  ;;  %v7586_v15 = vadd.f32 %v14422_v10, %v7515_v33 }
 0x6d2   : > { %7844 = vxpose.xlu0.b32.cont [4/16] (narrow) %v7780_v14, 8  ;;  %v7518_v39 = vmul.f32 %v10274_v35, %v14414_v37 }
 0x6d3   : > { %v14469_v3 = vpop.f32.mrb[50].mxu1  ;;  %v10170_v29 = vpop.f32.mrb[26].mxu0  ;;  %v7517_v36 = vmul.f32 %v10275_v16, %v14414_v37  ;;  %v7721_v47 = vmul.f32 %v14432_v55, %v7586_v15  ;;  %vm7650_vm1 = vcmp.gt.f32.partialorder %v7586_v15, 0.0 }
 0x6d4   : > { %v14471_v24 = vpop.f32.mrb[51].mxu1  ;;  %v14475_v5 = vadd.f32 %v10170_v29, %v14393_v53  ;;  %v7177_v54 = vpop.f32.mrb[27].mxu0 }
 0x6d5   : > { %v10277_v32 = vadd.f32 %v7177_v54, %v14395_v30  ;;  %v7719_v30 = vmul.f32 %v14432_v55, %v7584_v4  ;;  %v7588_v17 = vadd.f32 %v14422_v10, %v7517_v36  ;;  %v7785_v42 = vsel %vm7650_vm1, %v7586_v15, %v7721_v47 }
 0x6d6   : > { %7845 = vxpose.xlu0.b32.cont [5/16] (narrow) %v7781_v20, 8 }
 0x6d7   : > { %v10173_v43 = vpop.f32.mrb[28].mxu0  ;;  %v7783_v2 = vsel %vm7648_vm15, %v7584_v4, %v7719_v30  ;;  %v7589_v4 = vadd.f32 %v14422_v10, %v7518_v39  ;;  %v7519_v20 = vmul.f32 %v10277_v32, %v14414_v37  ;;  %vm7652_vm5 = vcmp.gt.f32.partialorder %v7588_v17, 0.0 }
 0x6d8   : > { %v14483_v62 = vadd.f32 %v10173_v43, %v14397_v44  ;;  %v7187_v53 = vpop.f32.mrb[29].mxu0  ;;  %v7720_v44 = vmul.f32 %v14432_v55, %v7585_v8  ;;  %v7520_v32 = vmul.f32 %v14475_v5, %v14414_v37 }
 0x6d9   : > { %v14486_v46 = vadd.f32 %v7187_v53, %v14399_v60  ;;  %v7587_v60 = vadd.f32 %v14422_v10, %v7516_v1  ;;  %vm7653_vm7 = vcmp.gt.f32.partialorder %v7589_v4, 0.0  ;;  %v7590_v15 = vadd.f32 %v14422_v10, %v7519_v20 }
 0x6da   : > { %7846 = vxpose.xlu0.b32.cont [6/16] (narrow) %v7782_v51, 8  ;;  %v7784_v26 = vsel %vm7649_vm0, %v7585_v8, %v7720_v44 }
 0x6db   : > { %v10176_v31 = vpop.f32.mrb[30].mxu0  ;;  %vm7651_vm2 = vcmp.gt.f32.partialorder %v7587_v60, 0.0  ;;  %v7722_v22 = vmul.f32 %v14432_v55, %v7587_v60  ;;  %vm7654_vm9 = vcmp.gt.f32.partialorder %v7590_v15, 0.0 }
 0x6dc   : > { %v10280_v50 = vadd.f32 %v10176_v31, %v14401_v27  ;;  %v7197_v6 = vpop.f32.mrb[31].mxu0 }
 0x6dd   : > { %v10281_v19 = vadd.f32 %v7197_v6, %v14403_v0  ;;  %v7786_v43 = vsel %vm7651_vm2, %v7587_v60, %v7722_v22 }
 0x6de   : > { %v7524_v34 = vmul.f32 %v10280_v50, %v14414_v37  ;;  %7847 = vxpose.xlu0.b32.cont [7/16] (narrow) %v7783_v2, 8 }
 0x6df   : > { %v7523_v40 = vmul.f32 %v10281_v19, %v14414_v37  ;;  %v10179_v13 = vpop.f32.mrb[32].mxu0 }
 0x6e0   : > { %v10282_v7 = vadd.f32 %v10179_v13, %v14405_v49  ;;  %v7207_v27 = vpop.f32.mrb[33].mxu0  ;;  %v7595_v0 = vadd.f32 %v14422_v10, %v7524_v34  ;;  %v7591_v34 = vadd.f32 %v14422_v10, %v7520_v32 }
 0x6e1   : > { %v7594_v25 = vadd.f32 %v14422_v10, %v7523_v40  ;;  %v10283_v23 = vadd.f32 %v7207_v27, %v14407_v28  ;;  %v7521_v40 = vmul.f32 %v14486_v46, %v14414_v37  ;;  %v7725_v27 = vmul.f32 %v14432_v55, %v7590_v15 }
 0x6e2   : > { %7848 = vxpose.xlu0.b32.cont [8/16] (narrow) %v7784_v26, 8  ;;  %v7526_v16 = vmul.f32 %v10282_v7, %v14414_v37  ;;  %v7730_v54 = vmul.f32 %v14432_v55, %v7595_v0  ;;  %vm7659_vm4 = vcmp.gt.f32.partialorder %v7595_v0, 0.0  ;;  %v7522_v46 = vmul.f32 %v14483_v62, %v14414_v37 }
 0x6e3   : > { %v7525_v56 = vmul.f32 %v10283_v23, %v14414_v37  ;;  %v10182_v57 = vpop.f32.mrb[34].mxu0  ;;  %vm7658_vm3 = vcmp.gt.f32.partialorder %v7594_v25, 0.0  ;;  %v7729_v49 = vmul.f32 %v14432_v55, %v7594_v25  ;;  %vm7655_vm11 = vcmp.gt.f32.partialorder %v7591_v34, 0.0 }
 0x6e4   : > { %v10284_v14 = vadd.f32 %v10182_v57, %v14409_v9  ;;  %v7217_v28 = vpop.f32.mrb[35].mxu0  ;;  %v7597_v9 = vadd.f32 %v14422_v10, %v7526_v16  ;;  %v7794_v30 = vsel %vm7659_vm4, %v7595_v0, %v7730_v54  ;;  %v7592_v39 = vadd.f32 %v14422_v10, %v7521_v40 }
 0x6e5   : > { %v7596_v35 = vadd.f32 %v14422_v10, %v7525_v56  ;;  %v10285_v29 = vadd.f32 %v7217_v28, %v14416_v41  ;;  %v7793_v63 = vsel %vm7658_vm3, %v7594_v25, %v7729_v49  ;;  %v7723_v41 = vmul.f32 %v14432_v55, %v7588_v17 }
 0x6e6   : > { %7849 = vxpose.xlu0.b32.cont [9/16] (narrow) %v7785_v42, 8  ;;  %7873 = vxpose.xlu1.b32.start [1/16] (narrow) %v7793_v63, 8  ;;  %v7528_v50 = vmul.f32 %v10284_v14, %v14414_v37  ;;  %v7732_v5 = vmul.f32 %v14432_v55, %v7597_v9  ;;  %vm7661_vm8 = vcmp.gt.f32.partialorder %v7597_v9, 0.0  ;;  %v7789_v49 = vsel %vm7654_vm9, %v7590_v15, %v7725_v27 }
 0x6e7   : > { %v10185_v21 = vpop.f32.mrb[36].mxu0  ;;  %v7527_v53 = vmul.f32 %v10285_v29, %v14414_v37  ;;  %v7731_v1 = vmul.f32 %v14432_v55, %v7596_v35  ;;  %vm7660_vm6 = vcmp.gt.f32.partialorder %v7596_v35, 0.0  ;;  %v7787_v44 = vsel %vm7652_vm5, %v7588_v17, %v7723_v41 }
 0x6e8   : > { %v10286_v8 = vadd.f32 %v10185_v21, %v14424_v18  ;;  %v7227_v33 = vpop.f32.mrb[37].mxu0  ;;  %v7724_v18 = vmul.f32 %v14432_v55, %v7589_v4  ;;  %v7599_v36 = vadd.f32 %v14422_v10, %v7528_v50  ;;  %v7796_v0 = vsel %vm7661_vm8, %v7597_v9, %v7732_v5 }
 0x6e9   : > { %v10287_v51 = vadd.f32 %v7227_v33, %v14427_v52  ;;  %v7598_v19 = vadd.f32 %v14422_v10, %v7527_v53  ;;  %v7795_v60 = vsel %vm7660_vm6, %v7596_v35, %v7731_v1  ;;  %v7593_v14 = vadd.f32 %v14422_v10, %v7522_v46 }
 0x6ea   : > { %7850 = vxpose.xlu0.b32.cont [10/16] (narrow) %v7786_v43, 8  ;;  %7874 = vxpose.xlu1.b32.cont [2/16] (narrow) %v7794_v30, 8  ;;  %v7530_v56 = vmul.f32 %v10286_v8, %v14414_v37  ;;  %v7734_v16 = vmul.f32 %v14432_v55, %v7599_v36  ;;  %vm7663_vm12 = vcmp.gt.f32.partialorder %v7599_v36, 0.0  ;;  %vm7656_vm13 = vcmp.gt.f32.partialorder %v7592_v39, 0.0 }
 0x6eb   : > { %v10188_v31 = vpop.f32.mrb[38].mxu0  ;;  %v7529_v26 = vmul.f32 %v10287_v51, %v14414_v37  ;;  %v7733_v25 = vmul.f32 %v14432_v55, %v7598_v19  ;;  %vm7662_vm10 = vcmp.gt.f32.partialorder %v7598_v19, 0.0  ;;  %vm7657_vm15 = vcmp.gt.f32.partialorder %v7593_v14, 0.0 }
 0x6ec   : > { %v10288_v6 = vadd.f32 %v10188_v31, %v14436_v48  ;;  %v7237_v52 = vpop.f32.mrb[39].mxu0  ;;  %v7788_v48 = vsel %vm7653_vm7, %v7589_v4, %v7724_v18  ;;  %v7601_v42 = vadd.f32 %v14422_v10, %v7530_v56  ;;  %v7798_v4 = vsel %vm7663_vm12, %v7599_v36, %v7734_v16 }
 0x6ed   : > { %v10289_v2 = vadd.f32 %v7237_v52, %v14439_v11  ;;  %v7600_v22 = vadd.f32 %v14422_v10, %v7529_v26  ;;  %v7797_v62 = vsel %vm7662_vm10, %v7598_v19, %v7733_v25 }
 0x6ee   : > { %7851 = vxpose.xlu0.b32.cont [11/16] (narrow) %v7787_v44, 8  ;;  %7875 = vxpose.xlu1.b32.cont [3/16] (narrow) %v7795_v60, 8  ;;  %v7532_v43 = vmul.f32 %v10288_v6, %v14414_v37  ;;  %v7736_v41 = vmul.f32 %v14432_v55, %v7601_v42  ;;  %vm7665_vm0 = vcmp.gt.f32.partialorder %v7601_v42, 0.0 }
 0x6ef   : > { %v10191_v13 = vpop.f32.mrb[40].mxu0  ;;  %v7531_v63 = vmul.f32 %v10289_v2, %v14414_v37  ;;  %v7735_v20 = vmul.f32 %v14432_v55, %v7600_v22  ;;  %vm7664_vm14 = vcmp.gt.f32.partialorder %v7600_v22, 0.0 }
 0x6f0   : > { %v14538_v7 = vadd.f32 %v10191_v13, %v14445_v59  ;;  %v7247_v11 = vpop.f32.mrb[41].mxu0  ;;  %v7726_v59 = vmul.f32 %v14432_v55, %v7591_v34  ;;  %v7603_v31 = vadd.f32 %v14422_v10, %v7532_v43  ;;  %v7800_v15 = vsel %vm7665_vm0, %v7601_v42, %v7736_v41 }
 0x6f1   : > { %v10291_v47 = vadd.f32 %v7247_v11, %v14447_v58  ;;  %v7799_v51 = vsel %vm7664_vm14, %v7600_v22, %v7735_v20 }
 0x6f2   : > { %7852 = vxpose.xlu0.b32.cont [12/16] (narrow) %v7788_v48, 8  ;;  %7876 = vxpose.xlu1.b32.cont [4/16] (narrow) %v7796_v0, 8  ;;  %v7534_v2 = vmul.f32 %v14538_v7, %v14414_v37  ;;  %v7738_v5 = vmul.f32 %v14432_v55, %v7603_v31  ;;  %vm7667_vm3 = vcmp.gt.f32.partialorder %v7603_v31, 0.0 }
 0x6f3   : > { %v10194_v23 = vpop.f32.mrb[42].mxu0  ;;  %v7533_v50 = vmul.f32 %v10291_v47, %v14414_v37 }
 0x6f4   : > { %v14550_v57 = vadd.f32 %v10194_v23, %v14452_v45  ;;  %v7257_v58 = vpop.f32.mrb[43].mxu0  ;;  %v7790_v45 = vsel %vm7655_vm11, %v7591_v34, %v7726_v59  ;;  %v7605_v11 = vadd.f32 %v14422_v10, %v7534_v2  ;;  %v7802_v26 = vsel %vm7667_vm3, %v7603_v31, %v7738_v5 }
 0x6f5   : > { %v14555_v17 = vadd.f32 %v7257_v58, %v14454_v61  ;;  %v7727_v61 = vmul.f32 %v14432_v55, %v7592_v39  ;;  %v7604_v34 = vadd.f32 %v14422_v10, %v7533_v50 }
 0x6f6   : > { %7853 = vxpose.xlu0.b32.cont [13/16] (narrow) %v7789_v49, 8  ;;  %7877 = vxpose.xlu1.b32.cont [5/16] (narrow) %v7797_v62, 8  ;;  %v7536_v23 = vmul.f32 %v14550_v57, %v14414_v37  ;;  %v7740_v56 = vmul.f32 %v14432_v55, %v7605_v11  ;;  %vm7669_vm6 = vcmp.gt.f32.partialorder %v7605_v11, 0.0 }
 0x6f7   : > { %v10197_v28 = vpop.f32.mrb[44].mxu0  ;;  %v7791_v33 = vsel %vm7656_vm13, %v7592_v39, %v7727_v61  ;;  %v7535_v7 = vmul.f32 %v14555_v17, %v14414_v37  ;;  %v7739_v0 = vmul.f32 %v14432_v55, %v7604_v34  ;;  %vm7668_vm5 = vcmp.gt.f32.partialorder %v7604_v34, 0.0 }
 0x6f8   : > { %v14562_v35 = vadd.f32 %v10197_v28, %v14460_v12  ;;  %v7267_v29 = vpop.f32.mrb[45].mxu0  ;;  %v7728_v12 = vmul.f32 %v14432_v55, %v7593_v14  ;;  %v7607_v22 = vadd.f32 %v14422_v10, %v7536_v23  ;;  %v7804_v62 = vsel %vm7669_vm6, %v7605_v11, %v7740_v56 }
 0x6f9   : > { %v14567_v54 = vadd.f32 %v7267_v29, %v14462_v38  ;;  %v7602_v38 = vadd.f32 %v14422_v10, %v7531_v63  ;;  %v7606_v59 = vadd.f32 %v14422_v10, %v7535_v7  ;;  %v7803_v39 = vsel %vm7668_vm5, %v7604_v34, %v7739_v0 }
 0x6fa   : > { %7854 = vxpose.xlu0.b32.cont [14/16] (narrow) %v7790_v45, 8  ;;  %7878 = vxpose.xlu1.b32.cont [6/16] (narrow) %v7798_v4, 8  ;;  %v7792_v18 = vsel %vm7657_vm15, %v7593_v14, %v7728_v12  ;;  %v7538_v42 = vmul.f32 %v14562_v35, %v14414_v37  ;;  %v7742_v20 = vmul.f32 %v14432_v55, %v7607_v22  ;;  %vm7671_vm8 = vcmp.gt.f32.partialorder %v7607_v22, 0.0 }
 0x6fb   : > { %v10200_v21 = vpop.f32.mrb[46].mxu0  ;;  %v7737_v52 = vmul.f32 %v14432_v55, %v7602_v38  ;;  %vm7666_vm1 = vcmp.gt.f32.partialorder %v7602_v38, 0.0  ;;  %v7537_v17 = vmul.f32 %v14567_v54, %v14414_v37  ;;  %v7741_v16 = vmul.f32 %v14432_v55, %v7606_v59 }
 0x6fc   : > { %v10296_v9 = vadd.f32 %v10200_v21, %v14469_v3  ;;  %v7277_v8 = vpop.f32.mrb[47].mxu0  ;;  %vm7670_vm7 = vcmp.gt.f32.partialorder %v7606_v59, 0.0 }
 0x6fd   : > { %v10297_v53 = vadd.f32 %v7277_v8, %v14471_v24  ;;  %v7801_v40 = vsel %vm7666_vm1, %v7602_v38, %v7737_v52  ;;  %v7608_v63 = vadd.f32 %v14422_v10, %v7537_v17  ;;  %v7805_v4 = vsel %vm7670_vm7, %v7606_v59, %v7741_v16 }
 0x6fe   : > { %v7540_v30 = vmul.f32 %v10296_v9, %v14414_v37  ;;  %7855 = vxpose.xlu0.b32.cont [15/16] (narrow) %v7791_v33, 8  ;;  %7879 = vxpose.xlu1.b32.cont [7/16] (narrow) %v7799_v51, 8  ;;  %v7806_v51 = vsel %vm7671_vm8, %v7607_v22, %v7742_v20 }
 0x6ff   : > { %v7539_v1 = vmul.f32 %v10297_v53, %v14414_v37  ;;  %v10203_v32 = vpop.f32.mrb[48].mxu0  ;;  %v7609_v53 = vadd.f32 %v14422_v10, %v7538_v42  ;;  %vm7672_vm9 = vcmp.gt.f32.partialorder %v7608_v63, 0.0 }
 0x700   : > { %v7287_v3 = vpop.f32.mrb[49].mxu0  ;;  %v7611_v6 = vadd.f32 %v14422_v10, %v7540_v30  ;;  %v7743_v30 = vmul.f32 %v14432_v55, %v7608_v63 }
 0x701   : > { %v7610_v24 = vadd.f32 %v14422_v10, %v7539_v1  ;;  %vm7673_vm12 = vcmp.gt.f32.partialorder %v7609_v53, 0.0 }
 0x702   : > { %7856 = vxpose.xlu0.b32.end [16/16] (narrow) %v7792_v18, 8  ;;  %7880 = vxpose.xlu1.b32.cont [8/16] (narrow) %v7800_v15, 8  ;;  %v7746_v48 = vmul.f32 %v14432_v55, %v7611_v6  ;;  %vm7675_vm4 = vcmp.gt.f32.partialorder %v7611_v6, 0.0  ;;  %v7807_v2 = vsel %vm7672_vm9, %v7608_v63, %v7743_v30 }
 0x703   : > { %v10206_v44 = vpop.f32.mrb[50].mxu0  ;;  %vm7674_vm2 = vcmp.gt.f32.partialorder %v7610_v24, 0.0  ;;  %v7745_v19 = vmul.f32 %v14432_v55, %v7610_v24 }
 0x704   : > { %v7297_v60 = vpop.f32.mrb[51].mxu0  ;;  %v7810_v47 = vsel %vm7675_vm4, %v7611_v6, %v7746_v48 }
 0x705   : > { %v7809_v13 = vsel %vm7674_vm2, %v7610_v24, %v7745_v19 }
 0x706   : > { %7881 = vxpose.xlu1.b32.cont [9/16] (narrow) %v7801_v40, 8  ;;  %7905 = vxpose.xlu0.b32.start [1/16] (narrow) %v7809_v13, 8 }
 0x707   : > { %v10209_v36 = vpop.f32.mrb[52].mxu0 }
 0x708   : > { %v7307_v27 = vpop.f32.mrb[53].mxu0 }
 0x70a   : > { %7882 = vxpose.xlu1.b32.cont [10/16] (narrow) %v7802_v26, 8  ;;  %7906 = vxpose.xlu0.b32.cont [2/16] (narrow) %v7810_v47, 8 }
 0x70b   : > { %v14594_v25 = vpop.f32.mrb[54].mxu0 }
 0x70c   : > { %v14596_v46 = vpop.f32.mrb[55].mxu0 }
 0x70e   : > { %7883 = vxpose.xlu1.b32.cont [11/16] (narrow) %v7803_v39, 8 }
 0x70f   : > { %v14602_v58 = vpop.f32.mrb[56].mxu0 }
 0x710   : > { %v14604_v49 = vpop.f32.mrb[57].mxu0 }
 0x712   : > { %7884 = vxpose.xlu1.b32.cont [12/16] (narrow) %v7804_v62, 8 }
 0x713   : > { %v9811_v57 = vpop.f32.mrb[52].mxu1  ;;  %v14610_v28 = vpop.f32.mrb[58].mxu0 }
 0x714   : > { %v10298_v14 = vadd.f32 %v10203_v32, %v9811_v57  ;;  %v5415_v45 = vpop.f32.mrb[53].mxu1  ;;  %v14614_v61 = vpop.f32.mrb[59].mxu0 }
 0x715   : > { %v10299_v29 = vadd.f32 %v7287_v3, %v5415_v45 }
 0x716   : > { %v7542_v54 = vmul.f32 %v10298_v14, %v14414_v37  ;;  %7885 = vxpose.xlu1.b32.cont [13/16] (narrow) %v7805_v4, 8 }
 0x717   : > { %v7541_v21 = vmul.f32 %v10299_v29, %v14414_v37  ;;  %v9814_v12 = vpop.f32.mrb[54].mxu1  ;;  %v14620_v9 = vpop.f32.mrb[60].mxu0 }
 0x718   : > { %v10300_v43 = vadd.f32 %v10206_v44, %v9814_v12  ;;  %v5425_v8 = vpop.f32.mrb[55].mxu1  ;;  %v7613_v35 = vadd.f32 %v14422_v10, %v7542_v54  ;;  %v14624_v38 = vpop.f32.mrb[61].mxu0 }
 0x719   : > { %v7612_v33 = vadd.f32 %v14422_v10, %v7541_v21  ;;  %v10301_v41 = vadd.f32 %v7297_v60, %v5425_v8  ;;  %v7744_v60 = vmul.f32 %v14432_v55, %v7609_v53 }
 0x71a   : > { %7886 = vxpose.xlu1.b32.cont [14/16] (narrow) %v7806_v51, 8  ;;  %v7544_v3 = vmul.f32 %v10300_v43, %v14414_v37  ;;  %v7748_v19 = vmul.f32 %v14432_v55, %v7613_v35  ;;  %vm7677_vm11 = vcmp.gt.f32.partialorder %v7613_v35, 0.0 }
 0x71b   : > { %v7543_v1 = vmul.f32 %v10301_v41, %v14414_v37  ;;  %v9817_v32 = vpop.f32.mrb[56].mxu1  ;;  %vm7676_vm10 = vcmp.gt.f32.partialorder %v7612_v33, 0.0  ;;  %v7747_v31 = vmul.f32 %v14432_v55, %v7612_v33  ;;  %v14631_v15 = vpop.f32.mrb[62].mxu0  ;;  %v7808_v47 = vsel %vm7673_vm12, %v7609_v53, %v7744_v60 }
 0x71c   : > { %v10302_v18 = vadd.f32 %v10209_v36, %v9817_v32  ;;  %v5435_v50 = vpop.f32.mrb[57].mxu1  ;;  %v14634_v52 = vpop.f32.mrb[63].mxu0  ;;  %v7615_v34 = vadd.f32 %v14422_v10, %v7544_v3  ;;  %v7812_v7 = vsel %vm7677_vm11, %v7613_v35, %v7748_v19 }
 0x71d   : > { %v7614_v6 = vadd.f32 %v14422_v10, %v7543_v1  ;;  %v10303_v24 = vadd.f32 %v7307_v27, %v5435_v50  ;;  %v7811_v44 = vsel %vm7676_vm10, %v7612_v33, %v7747_v31 }
 0x71e   : > { %7907 = vxpose.xlu0.b32.cont [3/16] (narrow) %v7811_v44, 8  ;;  %7887 = vxpose.xlu1.b32.cont [15/16] (narrow) %v7807_v2, 8  ;;  %v7546_v23 = vmul.f32 %v10302_v18, %v14414_v37  ;;  %v7750_v62 = vmul.f32 %v14432_v55, %v7615_v34  ;;  %vm7679_vm14 = vcmp.gt.f32.partialorder %v7615_v34, 0.0 }
 0x71f   : > { %v9820_v5 = vpop.f32.mrb[58].mxu1  ;;  %v14640_v13 = vpop.f32.mrb[64].mxu0  ;;  %v7545_v36 = vmul.f32 %v10303_v24, %v14414_v37  ;;  %v7749_v26 = vmul.f32 %v14432_v55, %v7614_v6  ;;  %vm7678_vm13 = vcmp.gt.f32.partialorder %v7614_v6, 0.0 }
 0x720   : > { %v10304_v40 = vadd.f32 %v14594_v25, %v9820_v5  ;;  %v5445_v48 = vpop.f32.mrb[59].mxu1  ;;  %v14644_v27 = vpop.f32.mrb[65].mxu0  ;;  %v7617_v57 = vadd.f32 %v14422_v10, %v7546_v23  ;;  %v7814_v63 = vsel %vm7679_vm14, %v7615_v34, %v7750_v62 }
 0x721   : > { %v10305_v11 = vadd.f32 %v14596_v46, %v5445_v48  ;;  %v7616_v56 = vadd.f32 %v14422_v10, %v7545_v36  ;;  %v7813_v17 = vsel %vm7678_vm13, %v7614_v6, %v7749_v26 }
 0x722   : > { %7908 = vxpose.xlu0.b32.cont [4/16] (narrow) %v7812_v7, 8  ;;  %7888 = vxpose.xlu1.b32.end [16/16] (narrow) %v7808_v47, 8  ;;  %v7548_v4 = vmul.f32 %v10304_v40, %v14414_v37  ;;  %v7752_v33 = vmul.f32 %v14432_v55, %v7617_v57  ;;  %vm7681_vm0 = vcmp.gt.f32.partialorder %v7617_v57, 0.0 }
 0x723   : > { %v9823_v0 = vpop.f32.mrb[60].mxu1  ;;  %v14649_v59 = vpop.f32.mrb[66].mxu0  ;;  %v7547_v42 = vmul.f32 %v10305_v11, %v14414_v37  ;;  %v7751_v54 = vmul.f32 %v14432_v55, %v7616_v56  ;;  %vm7680_vm15 = vcmp.gt.f32.partialorder %v7616_v56, 0.0 }
 0x724   : > { %v10306_v25 = vadd.f32 %v14602_v58, %v9823_v0  ;;  %v5455_v39 = vpop.f32.mrb[61].mxu1  ;;  %v14653_v22 = vpop.f32.mrb[67].mxu0  ;;  %v7619_v41 = vadd.f32 %v14422_v10, %v7548_v4  ;;  %v7816_v31 = vsel %vm7681_vm0, %v7617_v57, %v7752_v33 }
 0x725   : > { %v10307_v46 = vadd.f32 %v14604_v49, %v5455_v39  ;;  %v7618_v43 = vadd.f32 %v14422_v10, %v7547_v42  ;;  %v7815_v35 = vsel %vm7680_vm15, %v7616_v56, %v7751_v54 }
 0x726   : > { %7909 = vxpose.xlu0.b32.cont [5/16] (narrow) %v7813_v17, 8  ;;  %v7550_v18 = vmul.f32 %v10306_v25, %v14414_v37  ;;  %v7754_v6 = vmul.f32 %v14432_v55, %v7619_v41  ;;  %vm7683_vm2 = vcmp.gt.f32.partialorder %v7619_v41, 0.0 }
 0x727   : > { %v9826_v16 = vpop.f32.mrb[62].mxu1  ;;  %v14660_v58 = vpop.f32.mrb[68].mxu0  ;;  %v7753_v3 = vmul.f32 %v14432_v55, %v7618_v43  ;;  %vm7682_vm1 = vcmp.gt.f32.partialorder %v7618_v43, 0.0 }
 0x728   : > { %v14658_v14 = vadd.f32 %v14610_v28, %v9826_v16  ;;  %v5465_v45 = vpop.f32.mrb[63].mxu1  ;;  %v14664_v29 = vpop.f32.mrb[69].mxu0  ;;  %v7621_v36 = vadd.f32 %v14422_v10, %v7550_v18  ;;  %v7818_v11 = vsel %vm7683_vm2, %v7619_v41, %v7754_v6 }
 0x729   : > { %v10309_v49 = vadd.f32 %v14614_v61, %v5465_v45  ;;  %v7817_v48 = vsel %vm7682_vm1, %v7618_v43, %v7753_v3 }
 0x72a   : > { %7910 = vxpose.xlu0.b32.cont [6/16] (narrow) %v7814_v63, 8  ;;  %vm7685_vm6 = vcmp.gt.f32.partialorder %v7621_v36, 0.0  ;;  %v7756_v45 = vmul.f32 %v14432_v55, %v7621_v36 }
 0x72b   : > { %v9829_v20 = vpop.f32.mrb[64].mxu1  ;;  %v14671_v21 = vpop.f32.mrb[70].mxu0 }
 0x72c   : > { %v14669_v28 = vadd.f32 %v14620_v9, %v9829_v20  ;;  %v5475_v12 = vpop.f32.mrb[65].mxu1  ;;  %v14677_v8 = vpop.f32.mrb[71].mxu0  ;;  %v7549_v9 = vmul.f32 %v10307_v46, %v14414_v37  ;;  %v7820_v33 = vsel %vm7685_vm6, %v7621_v36, %v7756_v45 }
 0x72d   : > { %v14675_v61 = vadd.f32 %v14624_v38, %v5475_v12 }
 0x72e   : > { %7911 = vxpose.xlu0.b32.cont [7/16] (narrow) %v7815_v35, 8 }
 0x72f   : > { %v9832_v53 = vpop.f32.mrb[66].mxu1  ;;  %v14683_v30 = vpop.f32.mrb[72].mxu0  ;;  %v7553_v35 = vmul.f32 %v14675_v61, %v14414_v37  ;;  %v7554_v61 = vmul.f32 %v14669_v28, %v14414_v37 }
 0x730   : > { %v10312_v51 = vadd.f32 %v14631_v15, %v9832_v53  ;;  %v5485_v1 = vpop.f32.mrb[67].mxu1  ;;  %v14686_v32 = vpop.f32.mrb[73].mxu0 }
 0x731   : > { %v10313_v38 = vadd.f32 %v14634_v52, %v5485_v1  ;;  %v7620_v52 = vadd.f32 %v14422_v10, %v7549_v9  ;;  %v7624_v18 = vadd.f32 %v14422_v10, %v7553_v35 }
 0x732   : > { %v7556_v50 = vmul.f32 %v10312_v51, %v14414_v37  ;;  %7912 = vxpose.xlu0.b32.cont [8/16] (narrow) %v7816_v31, 8 }
 0x733   : > { %v7555_v15 = vmul.f32 %v10313_v38, %v14414_v37  ;;  %v9835_v24 = vpop.f32.mrb[68].mxu1  ;;  %v14695_v19 = vpop.f32.mrb[74].mxu0  ;;  %vm7684_vm4 = vcmp.gt.f32.partialorder %v7620_v52, 0.0  ;;  %v7755_v39 = vmul.f32 %v14432_v55, %v7620_v52  ;;  %vm7688_vm12 = vcmp.gt.f32.partialorder %v7624_v18, 0.0 }
 0x734   : > { %v10314_v44 = vadd.f32 %v14640_v13, %v9835_v24  ;;  %v5495_v2 = vpop.f32.mrb[69].mxu1  ;;  %v7627_v60 = vadd.f32 %v14422_v10, %v7556_v50  ;;  %v14701_v40 = vpop.f32.mrb[75].mxu0  ;;  %v7551_v13 = vmul.f32 %v10309_v49, %v14414_v37  ;;  %v7759_v36 = vmul.f32 %v14432_v55, %v7624_v18 }
 0x735   : > { %v7626_v5 = vadd.f32 %v14422_v10, %v7555_v15  ;;  %v10315_v34 = vadd.f32 %v14644_v27, %v5495_v2  ;;  %v7819_v54 = vsel %vm7684_vm4, %v7620_v52, %v7755_v39 }
 0x736   : > { %7913 = vxpose.xlu0.b32.cont [9/16] (narrow) %v7817_v48, 8  ;;  %v7558_v27 = vmul.f32 %v10314_v44, %v14414_v37  ;;  %v7762_v16 = vmul.f32 %v14432_v55, %v7627_v60  ;;  %vm7691_vm5 = vcmp.gt.f32.partialorder %v7627_v60, 0.0 }
 0x737   : > { %v7557_v7 = vmul.f32 %v10315_v34, %v14414_v37  ;;  %v9838_v26 = vpop.f32.mrb[70].mxu1  ;;  %vm7690_vm3 = vcmp.gt.f32.partialorder %v7626_v5, 0.0  ;;  %v7761_v47 = vmul.f32 %v14432_v55, %v7626_v5  ;;  %v14715_v23 = vpop.f32.mrb[76].mxu0 }
 0x738   : > { %v10316_v0 = vadd.f32 %v14649_v59, %v9838_v26  ;;  %v5505_v25 = vpop.f32.mrb[71].mxu1  ;;  %v14720_v17 = vpop.f32.mrb[77].mxu0  ;;  %v7552_v59 = vmul.f32 %v14658_v14, %v14414_v37  ;;  %v7629_v42 = vadd.f32 %v14422_v10, %v7558_v27  ;;  %v7826_v20 = vsel %vm7691_vm5, %v7627_v60, %v7762_v16 }
 0x739   : > { %v7628_v56 = vadd.f32 %v14422_v10, %v7557_v7  ;;  %v10317_v46 = vadd.f32 %v14653_v22, %v5505_v25  ;;  %v7825_v62 = vsel %vm7690_vm3, %v7626_v5, %v7761_v47  ;;  %v7622_v22 = vadd.f32 %v14422_v10, %v7551_v13 }
 0x73a   : > { %7914 = vxpose.xlu0.b32.cont [10/16] (narrow) %v7818_v11, 8  ;;  %7937 = vxpose.xlu1.b32.start [1/16] (narrow) %v7825_v62, 8  ;;  %v7623_v43 = vadd.f32 %v14422_v10, %v7552_v59  ;;  %v7560_v41 = vmul.f32 %v10316_v0, %v14414_v37  ;;  %v7764_v31 = vmul.f32 %v14432_v55, %v7629_v42  ;;  %vm7693_vm9 = vcmp.gt.f32.partialorder %v7629_v42, 0.0  ;;  %v10820_v59 = vld [vmem:[%s14812_s4] ss:$0 sm:$0xff] }
 0x73b   : > { %v9841_v57 = vpop.f32.mrb[72].mxu1  ;;  %v7559_v4 = vmul.f32 %v10317_v46, %v14414_v37  ;;  %v7763_v12 = vmul.f32 %v14432_v55, %v7628_v56  ;;  %vm7692_vm7 = vcmp.gt.f32.partialorder %v7628_v56, 0.0  ;;  %vm7686_vm8 = vcmp.gt.f32.partialorder %v7622_v22, 0.0 }
 0x73c   : > { %v10318_v49 = vadd.f32 %v14660_v58, %v9841_v57  ;;  %v5515_v63 = vpop.f32.mrb[73].mxu1  ;;  %v7757_v9 = vmul.f32 %v14432_v55, %v7622_v22  ;;  %vm7687_vm10 = vcmp.gt.f32.partialorder %v7623_v43, 0.0  ;;  %v7631_v50 = vadd.f32 %v14422_v10, %v7560_v41 }
 0x73d   : > { %v10319_v14 = vadd.f32 %v14664_v29, %v5515_v63  ;;  %v7630_v51 = vadd.f32 %v14422_v10, %v7559_v4  ;;  %v7827_v38 = vsel %vm7692_vm7, %v7628_v56, %v7763_v12  ;;  %v7828_v44 = vsel %vm7693_vm9, %v7629_v42, %v7764_v31 }
 0x73e   : > { %7915 = vxpose.xlu0.b32.cont [11/16] (narrow) %v7819_v54, 8  ;;  %7938 = vxpose.xlu1.b32.cont [2/16] (narrow) %v7826_v20, 8  ;;  %v7821_v15 = vsel %vm7686_vm8, %v7622_v22, %v7757_v9  ;;  %v7766_v26 = vmul.f32 %v14432_v55, %v7631_v50  ;;  %vm7695_vm13 = vcmp.gt.f32.partialorder %v7631_v50, 0.0  ;;  %v7823_v25 = vsel %vm7688_vm12, %v7624_v18, %v7759_v36 }
 0x73f   : > { %v9844_v58 = vpop.f32.mrb[74].mxu1  ;;  %v7561_v24 = vmul.f32 %v10319_v14, %v14414_v37  ;;  %v7765_v28 = vmul.f32 %v14432_v55, %v7630_v51  ;;  %vm7694_vm11 = vcmp.gt.f32.partialorder %v7630_v51, 0.0  ;;  %v10822_v14 = vld [vmem:[%s14814_s6] ss:$0 sm:$0xff] }
 0x740   : > { %v10320_v53 = vadd.f32 %v14671_v21, %v9844_v58  ;;  %v5525_v29 = vpop.f32.mrb[75].mxu1  ;;  %v7758_v21 = vmul.f32 %v14432_v55, %v7623_v43  ;;  %v7830_v46 = vsel %vm7695_vm13, %v7631_v50, %v7766_v26 }
 0x741   : > { %v10321_v1 = vadd.f32 %v14677_v8, %v5525_v29  ;;  %v7632_v11 = vadd.f32 %v14422_v10, %v7561_v24  ;;  %v7829_v7 = vsel %vm7694_vm11, %v7630_v51, %v7765_v28 }
 0x742   : > { %7916 = vxpose.xlu0.b32.cont [12/16] (narrow) %v7820_v33, 8  ;;  %7939 = vxpose.xlu1.b32.cont [3/16] (narrow) %v7827_v38, 8  ;;  %v7822_v60 = vsel %vm7687_vm10, %v7623_v43, %v7758_v21 }
 0x743   : > { %v9847_v3 = vpop.f32.mrb[76].mxu1  ;;  %v7563_v56 = vmul.f32 %v10321_v1, %v14414_v37  ;;  %v7767_v62 = vmul.f32 %v14432_v55, %v7632_v11  ;;  %vm7696_vm15 = vcmp.gt.f32.partialorder %v7632_v11, 0.0 }
 0x744   : > { %v10322_v8 = vadd.f32 %v14683_v30, %v9847_v3  ;;  %v5535_v6 = vpop.f32.mrb[77].mxu1  ;;  %v7625_v30 = vadd.f32 %v14422_v10, %v7554_v61 }
 0x745   : > { %v10323_v52 = vadd.f32 %v14686_v32, %v5535_v6  ;;  %v7562_v32 = vmul.f32 %v10318_v49, %v14414_v37  ;;  %v7634_v57 = vadd.f32 %v14422_v10, %v7563_v56  ;;  %v7831_v45 = vsel %vm7696_vm15, %v7632_v11, %v7767_v62  ;;  %v10821_v37 = vld [vmem:[%s14813_s5] ss:$0 sm:$0xff] }
 0x746   : > { %7917 = vxpose.xlu0.b32.cont [13/16] (narrow) %v7821_v15, 8  ;;  %7940 = vxpose.xlu1.b32.cont [4/16] (narrow) %v7828_v44, 8  ;;  %v7857_v5 = vpop.trf.xlu0  ;;  %vm7689_vm14 = vcmp.gt.f32.partialorder %v7625_v30, 0.0  ;;  %v7760_v39 = vmul.f32 %v14432_v55, %v7625_v30  ;;  %v7566_v54 = vmul.f32 %v10820_v59, %v10322_v8 }
 0x747   : > { %v9850_v2 = vpop.f32.mrb[78].mxu1  ;;  %7969 = vst [vmem:[%s14761_s11] sm:$0xff] %v7857_v5  ;;  %v7633_v27 = vadd.f32 %v14422_v10, %v7562_v32  ;;  %v7565_v42 = vmul.f32 %v10820_v59, %v10323_v52  ;;  %v7769_v63 = vmul.f32 %v14432_v55, %v7634_v57  ;;  %vm7698_vm1 = vcmp.gt.f32.partialorder %v7634_v57, 0.0 }
 0x748   : > { %v10324_v34 = vadd.f32 %v14695_v19, %v9850_v2  ;;  %v5545_v48 = vpop.f32.mrb[79].mxu1  ;;  %v7824_v16 = vsel %vm7689_vm14, %v7625_v30, %v7760_v39  ;;  %v7637_v12 = vadd.f32 %v10821_v37, %v7566_v54 }
 0x749   : > { %v10325_v13 = vadd.f32 %v14701_v40, %v5545_v48  ;;  %v7768_v22 = vmul.f32 %v14432_v55, %v7633_v27  ;;  %vm7697_vm0 = vcmp.gt.f32.partialorder %v7633_v27, 0.0  ;;  %v7636_v4 = vadd.f32 %v10821_v37, %v7565_v42 }
 0x74a   : > { %7918 = vxpose.xlu0.b32.cont [14/16] (narrow) %v7822_v60, 8  ;;  %7941 = vxpose.xlu1.b32.cont [5/16] (narrow) %v7829_v7, 8  ;;  %v7833_v10 = vsel %vm7698_vm1, %v7634_v57, %v7769_v63  ;;  %v7568_v55 = vmul.f32 %v10820_v59, %v10324_v34  ;;  %vm7701_vm4 = vcmp.gt.f32.partialorder %v7637_v12, 0.0 }
 0x74b   : > { %v9853_v47 = vpop.f32.mrb[80].mxu1  ;;  %v7832_v49 = vsel %vm7697_vm0, %v7633_v27, %v7768_v22  ;;  %v7567_v43 = vmul.f32 %v10820_v59, %v10325_v13  ;;  %v7771_v58 = vmul.f32 %v10822_v14, %v7636_v4  ;;  %vm7700_vm3 = vcmp.gt.f32.partialorder %v7636_v4, 0.0 }
 0x74c   : > { %v10326_v19 = vadd.f32 %v14715_v23, %v9853_v47  ;;  %v5555_v0 = vpop.f32.mrb[81].mxu1  ;;  %v7564_v23 = vmul.f32 %v10820_v59, %v10320_v53  ;;  %v7772_v53 = vmul.f32 %v10822_v14, %v7637_v12  ;;  %v7639_v29 = vadd.f32 %v10821_v37, %v7568_v55 }
 0x74d   : > { %v10327_v40 = vadd.f32 %v14720_v17, %v5555_v0  ;;  %v7638_v33 = vadd.f32 %v10821_v37, %v7567_v43  ;;  %v7835_v41 = vsel %vm7700_vm3, %v7636_v4, %v7771_v58 }
 0x74e   : > { %7919 = vxpose.xlu0.b32.cont [15/16] (narrow) %v7823_v25, 8  ;;  %7942 = vxpose.xlu1.b32.cont [6/16] (narrow) %v7830_v46, 8  ;;  %v7635_v17 = vadd.f32 %v10821_v37, %v7564_v23  ;;  %v7836_v51 = vsel %vm7701_vm4, %v7637_v12, %v7772_v53  ;;  %v7570_v31 = vmul.f32 %v10820_v59, %v10326_v19  ;;  %vm7703_vm6 = vcmp.gt.f32.partialorder %v7639_v29, 0.0 }
 0x74f   : > { %v7569_v9 = vmul.f32 %v10820_v59, %v10327_v40  ;;  %v7773_v1 = vmul.f32 %v10822_v14, %v7638_v33  ;;  %vm7702_vm5 = vcmp.gt.f32.partialorder %v7638_v33, 0.0  ;;  %v7774_v21 = vmul.f32 %v10822_v14, %v7639_v29 }
 0x750   : > { %v7770_v20 = vmul.f32 %v10822_v14, %v7635_v17  ;;  %vm7699_vm2 = vcmp.gt.f32.partialorder %v7635_v17, 0.0  ;;  %v7641_v18 = vadd.f32 %v10821_v37, %v7570_v31 }
 0x751   : > { %v7640_v61 = vadd.f32 %v10821_v37, %v7569_v9  ;;  %v7837_v3 = vsel %vm7702_vm5, %v7638_v33, %v7773_v1  ;;  %v7838_v50 = vsel %vm7703_vm6, %v7639_v29, %v7774_v21 }
 0x752   : > { %7920 = vxpose.xlu0.b32.end [16/16] (narrow) %v7824_v16, 8  ;;  %7943 = vxpose.xlu1.b32.cont [7/16] (narrow) %v7831_v45, 8  ;;  %v7834_v35 = vsel %vm7699_vm2, %v7635_v17, %v7770_v20  ;;  %v7776_v15 = vmul.f32 %v10822_v14, %v7641_v18  ;;  %vm7705_vm8 = vcmp.gt.f32.partialorder %v7641_v18, 0.0 }
 0x753   : > { %v7775_v8 = vmul.f32 %v10822_v14, %v7640_v61  ;;  %vm7704_vm7 = vcmp.gt.f32.partialorder %v7640_v61, 0.0 }
 0x754   : > { %v7840_v24 = vsel %vm7705_vm8, %v7641_v18, %v7776_v15 }
 0x755   : > { %v7839_v6 = vsel %vm7704_vm7, %v7640_v61, %v7775_v8 }
 0x756   : > { %7944 = vxpose.xlu1.b32.cont [8/16] (narrow) %v7832_v49, 8 }
 0x75a   : > { %7945 = vxpose.xlu1.b32.cont [9/16] (narrow) %v7833_v10, 8 }
 0x75e   : > { %7946 = vxpose.xlu1.b32.cont [10/16] (narrow) %v7834_v35, 8 }
 0x762   : > { %7947 = vxpose.xlu1.b32.cont [11/16] (narrow) %v7835_v41, 8 }
 0x766   : > { %7948 = vxpose.xlu1.b32.cont [12/16] (narrow) %v7836_v51, 8  ;;  %v7889_v38 = vpop.trf.xlu1 }
 0x767   : > { %7970 = vst [vmem:[%s14761_s11 + $0x8] sm:$0xff] %v7889_v38 }
 0x76a   : > { %7949 = vxpose.xlu1.b32.cont [13/16] (narrow) %v7837_v3, 8 }
 0x76e   : > { %7950 = vxpose.xlu1.b32.cont [14/16] (narrow) %v7838_v50, 8 }
 0x772   : > { %7951 = vxpose.xlu1.b32.cont [15/16] (narrow) %v7839_v6, 8 }
 0x776   : > { %7952 = vxpose.xlu1.b32.end [16/16] (narrow) %v7840_v24, 8 }
 0x796   : > { %v7921_v52 = vpop.trf.xlu0 }
 0x797   : > { %7971 = vst [vmem:[%s14761_s11 + $0x10] sm:$0xff] %v7921_v52 }
 0x7ba   : > { %v7953_v44 = vpop.trf.xlu1 }
 0x7bb   : > { %7972 = vst [vmem:[%s14761_s11 + $0x18] sm:$0xff] %v7953_v44 }
 0x7bc PF: > { %s17_s28 = sadd.s32 1, %s10861_s28   ;;  %s15868_s24 = smov %s10853_s26 }
 0x7bd   : > { %p14_p7 = scmp.ge.s32.totalorder %s17_s28, 6   ;;  %s15869_s25 = smov %s10857_s27 }
 0x7be   : > { %s15870_s26 = smov %s15873_s29  ;;  %s15871_s27 = smov %s15877_s30 }
 0x7bf   :  { %16 = sbr.rel (!%p14_p7) target bundleno = 3 (0x3), region = 79 }

</bundles_post_ra>
